<compile_context>
chip_gen: v7x
topology: tpu7x:2x2x1
jax: 0.10.0
libtpu: 0.0.40
codegen_flags: <defaults>
</compile_context>

<pallas_src>
import functools

import jax
import jax.numpy as jnp
from jax.experimental import pallas as pl
from jax.experimental.pallas import tpu as pltpu

LANE = 128


def _round_up(x, m):
    return ((x + m - 1) // m) * m


# ------------------------------- kernels -------------------------------------

def fused_gcn_kernel(ahat_ref, x_ref, w1_ref, b1_ref, w2_ref, b2_ref,
                     w3_ref, b3_ref, wl_ref, bl_ref, out_ref):
    """All three GraphConv layers + final Linear, everything VMEM-resident."""
    ahat = ahat_ref[...]
    # Layer 1 (aggregate-first, in=128pad < 512): h1 = relu((A X) W1 + b1)
    agg = jnp.dot(ahat, x_ref[...], preferred_element_type=jnp.float32)
    h1 = jnp.dot(agg.astype(jnp.bfloat16), w1_ref[...],
                 preferred_element_type=jnp.float32)
    h1 = jnp.maximum(h1 + b1_ref[...], 0.0).astype(jnp.bfloat16)
    # (dropout p=0.5: identity in eval mode)
    # Layer 2 (weight-first, 512 -> 128): h2 = relu(A (h1 W2) + b2)
    z1 = jnp.dot(h1, w2_ref[...], preferred_element_type=jnp.float32)
    h2 = jnp.dot(ahat, z1.astype(jnp.bfloat16), preferred_element_type=jnp.float32)
    h2 = jnp.maximum(h2 + b2_ref[...], 0.0).astype(jnp.bfloat16)
    # Layer 3 (weight-first, 128 -> 128pad): h3 = relu(A (h2 W3) + b3)
    z2 = jnp.dot(h2, w3_ref[...], preferred_element_type=jnp.float32)
    h3 = jnp.dot(ahat, z2.astype(jnp.bfloat16), preferred_element_type=jnp.float32)
    h3 = jnp.maximum(h3 + b3_ref[...], 0.0).astype(jnp.bfloat16)
    # Final Linear (lane-padded): out = h3 WL + bL
    out = jnp.dot(h3, wl_ref[...], preferred_element_type=jnp.float32) + bl_ref[...]
    out_ref[...] = out.astype(out_ref.dtype)


def layer1_kernel(ahat_ref, x_ref, w1_ref, b1_ref, w2_ref, z1_ref):
    # aggregate-first: h1 = relu((Ahat_rows @ X) @ W1 + b1); emit Z1 = h1 @ W2
    agg = jnp.dot(ahat_ref[...], x_ref[...], preferred_element_type=jnp.float32)
    h = jnp.dot(agg.astype(jnp.bfloat16), w1_ref[...],
                preferred_element_type=jnp.float32)
    h = jnp.maximum(h + b1_ref[...], 0.0)
    z1_ref[...] = jnp.dot(h.astype(jnp.bfloat16), w2_ref[...],
                          preferred_element_type=jnp.float32).astype(z1_ref.dtype)


def layer2_kernel(ahat_ref, z1_ref, b2_ref, w3_ref, z2_ref):
    # h2 = relu(Ahat_rows @ Z1 + b2); emit Z2 = h2 @ W3 (W3 lane-padded)
    h = jnp.dot(ahat_ref[...], z1_ref[...], preferred_element_type=jnp.float32)
    h = jnp.maximum(h + b2_ref[...], 0.0)
    z2_ref[...] = jnp.dot(h.astype(jnp.bfloat16), w3_ref[...],
                          preferred_element_type=jnp.float32).astype(z2_ref.dtype)


def layer3_kernel(ahat_ref, z2_ref, b3_ref, wl_ref, bl_ref, out_ref):
    # h3 = relu(Ahat_rows @ Z2 + b3); fused final Linear out = h3 @ WL + bL
    h = jnp.dot(ahat_ref[...], z2_ref[...], preferred_element_type=jnp.float32)
    h = jnp.maximum(h + b3_ref[...], 0.0)
    out = jnp.dot(h.astype(jnp.bfloat16), wl_ref[...],
                  preferred_element_type=jnp.float32) + bl_ref[...]
    out_ref[...] = out.astype(out_ref.dtype)


# ------------------------------- wrappers -------------------------------------

def _full_spec(shape):
    nd = len(shape)
    return pl.BlockSpec(shape, lambda i: (0,) * nd)


def _vmem_budget_bytes():
    """Conservative per-core VMEM budget (v7x: 64 MiB/TC, v5e/v6e: 128 MiB)."""
    phys = 64 << 20
    try:
        info = pltpu.get_tpu_info()
        phys = int(getattr(info, "vmem_capacity_bytes", phys))
    except Exception:
        pass
    return min(int(phys * 0.65), 96 << 20)


def _fused_vmem_estimate(n, in_p):
    """Estimated VMEM for the single fused call (double-buffered blocks +
    f32 intermediates the compiler keeps live)."""
    bf2, f4 = 2, 4
    weights = (in_p * 512 + 512 * 128 + 2 * 128 * 128) * bf2 + (512 + 3 * 128) * f4
    inputs = (n * n + n * in_p) * bf2
    out = n * LANE * f4
    inter = n * 512 * f4 + 5 * n * LANE * f4
    return 2 * (inputs + weights + out) + inter + (2 << 20)


def _fused_forward(ahat, x, params, budget):
    w1, b1, w2, b2, w3, b3, wl, bl = params
    n = ahat.shape[0]
    arrays = (ahat, x, w1, b1, w2, b2, w3, b3, wl, bl)
    return pl.pallas_call(
        fused_gcn_kernel,
        out_shape=jax.ShapeDtypeStruct((n, wl.shape[1]), jnp.float32),
        grid=(1,),
        in_specs=[_full_spec(a.shape) for a in arrays],
        out_specs=_full_spec((n, wl.shape[1])),
        compiler_params=pltpu.CompilerParams(
            dimension_semantics=("arbitrary",),
            vmem_limit_bytes=int(budget)),
    )(*arrays)


def _tiled_forward(ahat, x, params, budget):
    w1, b1, w2, b2, w3, b3, wl, bl = params
    n = ahat.shape[0]

    # resident (non-row-tiled) operand bytes per layer call
    res1 = sum(a.size * a.dtype.itemsize for a in (x, w1, b1, w2))
    res2 = n * LANE * 2 + sum(a.size * a.dtype.itemsize for a in (b2, w3))
    res3 = n * LANE * 2 + sum(a.size * a.dtype.itemsize for a in (b3, wl, bl))

    def layer_vmem(tm, resident, out_itemsize):
        # double-buffered bf16 Ahat row tile + double-buffered resident blocks
        # + double-buffered output tile + headroom (no extra outer 2x).
        return (2 * tm * n * 2) + 2 * resident + (2 * tm * LANE * out_itemsize) \
            + (2 << 20)

    # Largest row tile that fits the budget; keep grid >= 2 so the "parallel"
    # row axis can feed both TensorCores on v7x.
    tm = LANE
    for cand in (512, 256):
        if (n % cand == 0 and n // cand >= 2
                and max(layer_vmem(cand, r, 4) for r in (res1, res2, res3)) <= budget):
            tm = cand
            break
    grid = (n // tm,)

    def row_spec(cols):
        return pl.BlockSpec((tm, cols), lambda i: (i, 0))

    def cparams(resident, out_itemsize):
        vmem = min(max(layer_vmem(tm, resident, out_itemsize), 16 << 20), budget)
        return pltpu.CompilerParams(dimension_semantics=("parallel",),
                                    vmem_limit_bytes=int(vmem))

    # Layer 1 (+ fused W2 projection):  Z1 = relu((A X) W1 + b1) @ W2
    z1 = pl.pallas_call(
        layer1_kernel,
        out_shape=jax.ShapeDtypeStruct((n, w2.shape[1]), jnp.bfloat16),
        grid=grid,
        in_specs=[row_spec(n), _full_spec(x.shape), _full_spec(w1.shape),
                  _full_spec(b1.shape), _full_spec(w2.shape)],
        out_specs=row_spec(w2.shape[1]),
        compiler_params=cparams(res1, 2),
    )(ahat, x, w1, b1, w2)

    # Layer 2 (+ fused padded W3 projection)
    z2 = pl.pallas_call(
        layer2_kernel,
        out_shape=jax.ShapeDtypeStruct((n, w3.shape[1]), jnp.bfloat16),
        grid=grid,
        in_specs=[row_spec(n), _full_spec(z1.shape), _full_spec(b2.shape),
                  _full_spec(w3.shape)],
        out_specs=row_spec(w3.shape[1]),
        compiler_params=cparams(res2, 2),
    )(ahat, z1, b2, w3)

    # Layer 3 + fused final Linear (lane-padded to 128)
    return pl.pallas_call(
        layer3_kernel,
        out_shape=jax.ShapeDtypeStruct((n, wl.shape[1]), jnp.float32),
        grid=grid,
        in_specs=[row_spec(n), _full_spec(z2.shape), _full_spec(b3.shape),
                  _full_spec(wl.shape), _full_spec(bl.shape)],
        out_specs=row_spec(wl.shape[1]),
        compiler_params=cparams(res3, 4),
    )(ahat, z2, b3, wl, bl)


def gcn_forward(ahat_bf, x_bf, params, *, out_size, n_valid, force_path=None):
    """Eval-mode GCN forward on padded bf16 inputs from prepare_inputs()."""
    n = ahat_bf.shape[0]
    budget = _vmem_budget_bytes()
    fused_ok = _fused_vmem_estimate(n, x_bf.shape[1]) <= budget
    path = force_path or ("fused" if fused_ok else "tiled")
    if path == "fused":
        out = _fused_forward(ahat_bf, x_bf, params, budget)
    else:
        out = _tiled_forward(ahat_bf, x_bf, params, budget)
    return out[:n_valid, :out_size]


# --------------------------- params / inputs ----------------------------------

def make_params(key, in_size, out_size):
    """Raw (unpadded, f32) parameters matching the PyTorch module."""
    gcv = [in_size, 512, 128, 32]
    keys = jax.random.split(key, 5)
    params = []
    for i, (fi, fo) in enumerate(zip(gcv[:-1], gcv[1:])):
        scale = jnp.sqrt(6.0 / (fi + fo))                    # Glorot uniform
        w = jax.random.uniform(keys[i], (fi, fo), jnp.float32, -scale, scale)
        b = jnp.zeros((1, fo), jnp.float32)                  # GraphConv bias init
        params += [w, b]
    scale = jnp.sqrt(1.0 / gcv[-1])                          # nn.Linear default
    wl = jax.random.uniform(keys[3], (gcv[-1], out_size), jnp.float32, -scale, scale)
    bl = jax.random.uniform(keys[4], (1, out_size), jnp.float32, -scale, scale)
    params += [wl, bl]
    return tuple(params)


def prepare_params(params):
    """Zero-pad narrow dims to 128 lanes; cast weights to bf16 (biases stay f32)."""
    w1, b1, w2, b2, w3, b3, wl, bl = params

    def pad_to(a, rows, cols):
        return jnp.pad(a, ((0, rows - a.shape[0]), (0, cols - a.shape[1])))

    in_p = _round_up(w1.shape[0], LANE)        # 64  -> 128
    f3_p = _round_up(w3.shape[1], LANE)        # 32  -> 128
    out_p = _round_up(wl.shape[1], LANE)       # out -> 128

    w1p = pad_to(w1, in_p, w1.shape[1])
    w3p = pad_to(w3, w3.shape[0], f3_p)
    b3p = pad_to(b3, 1, f3_p)
    wlp = pad_to(wl, f3_p, out_p)
    blp = pad_to(bl, 1, out_p)

    return (w1p.astype(jnp.bfloat16), b1,
            w2.astype(jnp.bfloat16), b2,
            w3p.astype(jnp.bfloat16), b3p,
            wlp.astype(jnp.bfloat16), blp)


def prepare_inputs(ahat, features, in_size_padded):
    """Pad node count to a multiple of 128 and features to the padded input
    width; cast to bf16.  Hoist/cache per graph for repeated inference."""
    n = features.shape[0]
    n_pad = _round_up(n, LANE)
    x = jnp.pad(features, ((0, n_pad - n), (0, in_size_padded - features.shape[1])))
    a = jnp.pad(ahat, ((0, n_pad - n), (0, n_pad - n)))
    return a.astype(jnp.bfloat16), x.astype(jnp.bfloat16)


def make_normalized_adjacency(key, n):
    """Random undirected graph, self-loops, symmetric norm (DGL norm='both')."""
    a = (jax.random.uniform(key, (n, n)) > 0.7).astype(jnp.float32)
    a = jnp.maximum(a, a.T)
    a = jnp.maximum(a, jnp.eye(n))
    deg = jnp.sum(a, axis=1)
    d = 1.0 / jnp.sqrt(deg)
    return a * d[:, None] * d[None, :]


def gcn_reference(ahat, features, raw_params):
    """Pure-JAX f32 reference matching the PyTorch forward (eval mode)."""
    w1, b1, w2, b2, w3, b3, wl, bl = raw_params
    h = features
    for w, b in ((w1, b1), (w2, b2), (w3, b3)):
        h = jnp.maximum(ahat @ (h @ w) + b, 0.0)
    return h @ wl + bl


if __name__ == "__main__":
    key = jax.random.PRNGKey(0)
    k_feat, k_adj, k_par = jax.random.split(key, 3)

    N = 256           # graph nodes
    IN_SIZE = 64      # input feature size
    OUT_SIZE = 4      # e.g. 4 IEMOCAP emotion classes

    features = jax.random.normal(k_feat, (N, IN_SIZE), jnp.float32)
    ahat = make_normalized_adjacency(k_adj, N)
    raw_params = make_params(k_par, IN_SIZE, OUT_SIZE)
    params = prepare_params(raw_params)

    # Hoisted once per graph (avoids re-casting the N^2 adjacency per call).
    ahat_bf, x_bf = prepare_inputs(ahat, features, params[0].shape[0])

    fwd_auto = jax.jit(functools.partial(
        gcn_forward, out_size=OUT_SIZE, n_valid=N))          # picks fused at N=256
    fwd_tiled = jax.jit(functools.partial(
        gcn_forward, out_size=OUT_SIZE, n_valid=N, force_path="tiled"))

    out = fwd_auto(ahat_bf, x_bf, params)
    out_tiled = fwd_tiled(ahat_bf, x_bf, params)
    jax.block_until_ready((out, out_tiled))

    ref = gcn_reference(ahat, features, raw_params)
    rel_fused = float(jnp.linalg.norm(out - ref) / jnp.linalg.norm(ref))
    rel_tiled = float(jnp.linalg.norm(out_tiled - ref) / jnp.linalg.norm(ref))

    assert out.shape == (N, OUT_SIZE) and out.dtype == jnp.float32
    assert out_tiled.shape == (N, OUT_SIZE)
    assert bool(jnp.all(jnp.isfinite(out))) and bool(jnp.all(jnp.isfinite(out_tiled)))
    assert rel_fused < 8e-2, f"fused path relative error too large: {rel_fused:.4f}"
    assert rel_tiled < 8e-2, f"tiled path relative error too large: {rel_tiled:.4f}"
    print("KERNEL_OK")
</pallas_src>

<mosaic_0001>
module attributes {stable_mosaic.version = 11 : i64} {
  func.func @fused_gcn_kernel(%arg0: i32, %arg1: memref<256x256xbf16, #tpu.memory_space<vmem>>, %arg2: memref<256x128xbf16, #tpu.memory_space<vmem>>, %arg3: memref<128x512xbf16, #tpu.memory_space<vmem>>, %arg4: memref<1x512xf32, #tpu.memory_space<vmem>>, %arg5: memref<512x128xbf16, #tpu.memory_space<vmem>>, %arg6: memref<1x128xf32, #tpu.memory_space<vmem>>, %arg7: memref<128x128xbf16, #tpu.memory_space<vmem>>, %arg8: memref<1x128xf32, #tpu.memory_space<vmem>>, %arg9: memref<128x128xbf16, #tpu.memory_space<vmem>>, %arg10: memref<1x128xf32, #tpu.memory_space<vmem>>, %arg11: memref<256x128xf32, #tpu.memory_space<vmem>>) attributes {dimension_semantics = [#tpu.dimension_semantics<arbitrary>], iteration_bounds = array<i64: 1>, scalar_prefetch = 0 : i64, scratch_operands = 0 : i64, tpu.core_type = #tpu.core_type<tc>, window_params = [{pipeline_mode = #tpu.pipeline_mode<synchronous>, transform_indices = @transform_0, window_bounds = array<i64: 256, 256>}, {pipeline_mode = #tpu.pipeline_mode<synchronous>, transform_indices = @transform_1, window_bounds = array<i64: 256, 128>}, {pipeline_mode = #tpu.pipeline_mode<synchronous>, transform_indices = @transform_2, window_bounds = array<i64: 128, 512>}, {pipeline_mode = #tpu.pipeline_mode<synchronous>, transform_indices = @transform_3, window_bounds = array<i64: 1, 512>}, {pipeline_mode = #tpu.pipeline_mode<synchronous>, transform_indices = @transform_4, window_bounds = array<i64: 512, 128>}, {pipeline_mode = #tpu.pipeline_mode<synchronous>, transform_indices = @transform_5, window_bounds = array<i64: 1, 128>}, {pipeline_mode = #tpu.pipeline_mode<synchronous>, transform_indices = @transform_6, window_bounds = array<i64: 128, 128>}, {pipeline_mode = #tpu.pipeline_mode<synchronous>, transform_indices = @transform_7, window_bounds = array<i64: 1, 128>}, {pipeline_mode = #tpu.pipeline_mode<synchronous>, transform_indices = @transform_8, window_bounds = array<i64: 128, 128>}, {pipeline_mode = #tpu.pipeline_mode<synchronous>, transform_indices = @transform_9, window_bounds = array<i64: 1, 128>}, {pipeline_mode = #tpu.pipeline_mode<synchronous>, transform_indices = @transform_10, window_bounds = array<i64: 256, 128>}]} {
    %c0 = arith.constant 0 : index
    %c0_0 = arith.constant 0 : index
    %0 = vector.load %arg1[%c0, %c0_0] : memref<256x256xbf16, #tpu.memory_space<vmem>>, vector<256x256xbf16>
    %c0_1 = arith.constant 0 : index
    %c0_2 = arith.constant 0 : index
    %1 = vector.load %arg2[%c0_1, %c0_2] : memref<256x128xbf16, #tpu.memory_space<vmem>>, vector<256x128xbf16>
    %cst = arith.constant dense<0.000000e+00> : vector<256x128xf32>
    %2 = tpu.matmul %0, %1, %cst {dimension_numbers = #tpu.dot_dimension_numbers<[1], [0], [0], [1], [0, 0, 1, 1], [], []>} : vector<256x256xbf16>, vector<256x128xbf16>, vector<256x128xf32> -> vector<256x128xf32>
    %3 = arith.truncf %2 : vector<256x128xf32> to vector<256x128xbf16>
    %c0_3 = arith.constant 0 : index
    %c0_4 = arith.constant 0 : index
    %4 = vector.load %arg3[%c0_3, %c0_4] : memref<128x512xbf16, #tpu.memory_space<vmem>>, vector<128x512xbf16>
    %cst_5 = arith.constant dense<0.000000e+00> : vector<256x512xf32>
    %5 = tpu.matmul %3, %4, %cst_5 {dimension_numbers = #tpu.dot_dimension_numbers<[1], [0], [0], [1], [0, 0, 1, 1], [], []>} : vector<256x128xbf16>, vector<128x512xbf16>, vector<256x512xf32> -> vector<256x512xf32>
    %c0_6 = arith.constant 0 : index
    %c0_7 = arith.constant 0 : index
    %6 = vector.load %arg4[%c0_6, %c0_7] : memref<1x512xf32, #tpu.memory_space<vmem>>, vector<1x512xf32>
    %7 = vector.broadcast %6 : vector<1x512xf32> to vector<256x512xf32>
    %8 = arith.addf %5, %7 : vector<256x512xf32>
    %cst_8 = arith.constant 0.000000e+00 : f32
    %9 = vector.broadcast %cst_8 : f32 to vector<256x512xf32>
    %10 = arith.maximumf %8, %9 : vector<256x512xf32>
    %11 = arith.truncf %10 : vector<256x512xf32> to vector<256x512xbf16>
    %c0_9 = arith.constant 0 : index
    %c0_10 = arith.constant 0 : index
    %12 = vector.load %arg5[%c0_9, %c0_10] : memref<512x128xbf16, #tpu.memory_space<vmem>>, vector<512x128xbf16>
    %cst_11 = arith.constant dense<0.000000e+00> : vector<256x128xf32>
    %13 = tpu.matmul %11, %12, %cst_11 {dimension_numbers = #tpu.dot_dimension_numbers<[1], [0], [0], [1], [0, 0, 1, 1], [], []>} : vector<256x512xbf16>, vector<512x128xbf16>, vector<256x128xf32> -> vector<256x128xf32>
    %14 = arith.truncf %13 : vector<256x128xf32> to vector<256x128xbf16>
    %cst_12 = arith.constant dense<0.000000e+00> : vector<256x128xf32>
    %15 = tpu.matmul %0, %14, %cst_12 {dimension_numbers = #tpu.dot_dimension_numbers<[1], [0], [0], [1], [0, 0, 1, 1], [], []>} : vector<256x256xbf16>, vector<256x128xbf16>, vector<256x128xf32> -> vector<256x128xf32>
    %c0_13 = arith.constant 0 : index
    %c0_14 = arith.constant 0 : index
    %16 = vector.load %arg6[%c0_13, %c0_14] : memref<1x128xf32, #tpu.memory_space<vmem>>, vector<1x128xf32>
    %17 = vector.broadcast %16 : vector<1x128xf32> to vector<256x128xf32>
    %18 = arith.addf %15, %17 : vector<256x128xf32>
    %cst_15 = arith.constant 0.000000e+00 : f32
    %19 = vector.broadcast %cst_15 : f32 to vector<256x128xf32>
    %20 = arith.maximumf %18, %19 : vector<256x128xf32>
    %21 = arith.truncf %20 : vector<256x128xf32> to vector<256x128xbf16>
    %c0_16 = arith.constant 0 : index
    %c0_17 = arith.constant 0 : index
    %22 = vector.load %arg7[%c0_16, %c0_17] : memref<128x128xbf16, #tpu.memory_space<vmem>>, vector<128x128xbf16>
    %cst_18 = arith.constant dense<0.000000e+00> : vector<256x128xf32>
    %23 = tpu.matmul %21, %22, %cst_18 {dimension_numbers = #tpu.dot_dimension_numbers<[1], [0], [0], [1], [0, 0, 1, 1], [], []>} : vector<256x128xbf16>, vector<128x128xbf16>, vector<256x128xf32> -> vector<256x128xf32>
    %24 = arith.truncf %23 : vector<256x128xf32> to vector<256x128xbf16>
    %cst_19 = arith.constant dense<0.000000e+00> : vector<256x128xf32>
    %25 = tpu.matmul %0, %24, %cst_19 {dimension_numbers = #tpu.dot_dimension_numbers<[1], [0], [0], [1], [0, 0, 1, 1], [], []>} : vector<256x256xbf16>, vector<256x128xbf16>, vector<256x128xf32> -> vector<256x128xf32>
    %c0_20 = arith.constant 0 : index
    %c0_21 = arith.constant 0 : index
    %26 = vector.load %arg8[%c0_20, %c0_21] : memref<1x128xf32, #tpu.memory_space<vmem>>, vector<1x128xf32>
    %27 = vector.broadcast %26 : vector<1x128xf32> to vector<256x128xf32>
    %28 = arith.addf %25, %27 : vector<256x128xf32>
    %cst_22 = arith.constant 0.000000e+00 : f32
    %29 = vector.broadcast %cst_22 : f32 to vector<256x128xf32>
    %30 = arith.maximumf %28, %29 : vector<256x128xf32>
    %31 = arith.truncf %30 : vector<256x128xf32> to vector<256x128xbf16>
    %c0_23 = arith.constant 0 : index
    %c0_24 = arith.constant 0 : index
    %32 = vector.load %arg9[%c0_23, %c0_24] : memref<128x128xbf16, #tpu.memory_space<vmem>>, vector<128x128xbf16>
    %cst_25 = arith.constant dense<0.000000e+00> : vector<256x128xf32>
    %33 = tpu.matmul %31, %32, %cst_25 {dimension_numbers = #tpu.dot_dimension_numbers<[1], [0], [0], [1], [0, 0, 1, 1], [], []>} : vector<256x128xbf16>, vector<128x128xbf16>, vector<256x128xf32> -> vector<256x128xf32>
    %c0_26 = arith.constant 0 : index
    %c0_27 = arith.constant 0 : index
    %34 = vector.load %arg10[%c0_26, %c0_27] : memref<1x128xf32, #tpu.memory_space<vmem>>, vector<1x128xf32>
    %35 = vector.broadcast %34 : vector<1x128xf32> to vector<256x128xf32>
    %36 = arith.addf %33, %35 : vector<256x128xf32>
    %c0_28 = arith.constant 0 : index
    %c0_29 = arith.constant 0 : index
    %37 = vector.load %arg11[%c0_28, %c0_29] : memref<256x128xf32, #tpu.memory_space<vmem>>, vector<256x128xf32>
    tpu.vector_store %arg11[%c0_28, %c0_29], %36 {strides = array<i32>} : memref<256x128xf32, #tpu.memory_space<vmem>>, vector<256x128xf32>,
    return
  }
  func.func @transform_0(%arg0: i32) -> (i32, i32) {
    %c0_i32 = arith.constant 0 : i32
    %c0_i32_0 = arith.constant 0 : i32
    %c0_i32_1 = arith.constant 0 : i32
    return %c0_i32, %c0_i32_0 : i32, i32
  }
  func.func @transform_1(%arg0: i32) -> (i32, i32) {
    %c0_i32 = arith.constant 0 : i32
    %c0_i32_0 = arith.constant 0 : i32
    %c0_i32_1 = arith.constant 0 : i32
    return %c0_i32, %c0_i32_0 : i32, i32
  }
  func.func @transform_2(%arg0: i32) -> (i32, i32) {
    %c0_i32 = arith.constant 0 : i32
    %c0_i32_0 = arith.constant 0 : i32
    %c0_i32_1 = arith.constant 0 : i32
    return %c0_i32, %c0_i32_0 : i32, i32
  }
  func.func @transform_3(%arg0: i32) -> (i32, i32) {
    %c0_i32 = arith.constant 0 : i32
    %c0_i32_0 = arith.constant 0 : i32
    %c0_i32_1 = arith.constant 0 : i32
    return %c0_i32, %c0_i32_0 : i32, i32
  }
  func.func @transform_4(%arg0: i32) -> (i32, i32) {
    %c0_i32 = arith.constant 0 : i32
    %c0_i32_0 = arith.constant 0 : i32
    %c0_i32_1 = arith.constant 0 : i32
    return %c0_i32, %c0_i32_0 : i32, i32
  }
  func.func @transform_5(%arg0: i32) -> (i32, i32) {
    %c0_i32 = arith.constant 0 : i32
    %c0_i32_0 = arith.constant 0 : i32
    %c0_i32_1 = arith.constant 0 : i32
    return %c0_i32, %c0_i32_0 : i32, i32
  }
  func.func @transform_6(%arg0: i32) -> (i32, i32) {
    %c0_i32 = arith.constant 0 : i32
    %c0_i32_0 = arith.constant 0 : i32
    %c0_i32_1 = arith.constant 0 : i32
    return %c0_i32, %c0_i32_0 : i32, i32
  }
  func.func @transform_7(%arg0: i32) -> (i32, i32) {
    %c0_i32 = arith.constant 0 : i32
    %c0_i32_0 = arith.constant 0 : i32
    %c0_i32_1 = arith.constant 0 : i32
    return %c0_i32, %c0_i32_0 : i32, i32
  }
  func.func @transform_8(%arg0: i32) -> (i32, i32) {
    %c0_i32 = arith.constant 0 : i32
    %c0_i32_0 = arith.constant 0 : i32
    %c0_i32_1 = arith.constant 0 : i32
    return %c0_i32, %c0_i32_0 : i32, i32
  }
  func.func @transform_9(%arg0: i32) -> (i32, i32) {
    %c0_i32 = arith.constant 0 : i32
    %c0_i32_0 = arith.constant 0 : i32
    %c0_i32_1 = arith.constant 0 : i32
    return %c0_i32, %c0_i32_0 : i32, i32
  }
  func.func @transform_10(%arg0: i32) -> (i32, i32) {
    %c0_i32 = arith.constant 0 : i32
    %c0_i32_0 = arith.constant 0 : i32
    %c0_i32_1 = arith.constant 0 : i32
    return %c0_i32, %c0_i32_0 : i32, i32
  }
}

</mosaic_0001>

<bundles_post_ra>
// kernel: gcn_forward.1
= control target key start
LH: loop header
LB: loop body
LE: loop exit
PB: predicated region body
PF: predicated region fallthrough
CT: control target
= control target key end

     0   :  { %15 = vsyncpa [#allocation3], 0  ;;  %s4863_s0 = inlined_call_operand.hbm [shape: bf16[256,256], index: 0, kind: input, shape index: {}]   ;;  %s4864_s1 = inlined_call_operand.hbm [shape: bf16[256,128], index: 1, kind: input, shape index: {}]   ;;  %s4865_s2 = inlined_call_operand.hbm [shape: bf16[128,512], index: 2, kind: input, shape index: {}]   ;;  %s4866_s3 = inlined_call_operand.vmem [shape: f32[1,512], index: 3, kind: input, shape index: {}]   ;;  %s4867_s4 = inlined_call_operand.hbm [shape: bf16[512,128], index: 4, kind: input, shape index: {}]   ;;  %s4868_s5 = inlined_call_operand.vmem [shape: f32[1,128], index: 5, kind: input, shape index: {}]   ;;  %s4869_s6 = inlined_call_operand.hbm [shape: bf16[128,128], index: 6, kind: input, shape index: {}]   ;;  %s4870_s7 = inlined_call_operand.vmem [shape: f32[1,128], index: 7, kind: input, shape index: {}]   ;;  %s4871_s8 = inlined_call_operand.hbm [shape: bf16[128,128], index: 8, kind: input, shape index: {}]   ;;  %s4872_s9 = inlined_call_operand.vmem [shape: f32[1,128], index: 9, kind: input, shape index: {}]   ;;  %s4873_s10 = inlined_call_operand.vmem [shape: f32[256,128], index: 10, kind: output, shape index: {}]  }
   0x1   :  { %16 = vsyncpa [#allocation5], 0 }
   0x2   :  { %17 = vsyncpa [#allocation8], 0 }
   0x3   :  { %18 = vsyncpa [#allocation11], 0  ;;  %s4126_s13 = smov [#allocation4]   ;;  %s3986_s17 = scalar_lea.hbm %s4864_s1, 2048 }
   0x4   :  { %s36_s14 = sshll.u32 %s4126_s13, 4  ;;  %p3987_p0 = scmp.ne.s32.totalorder %s4864_s1, %s3986_s17  ;;  %s37_s14 = int_to_ptr.vmem [resolvable:$true] %s36_s14 }
   0x5   :  { %p3990_p1 = scmp.lt.u32.totalorder %s3986_s17, %s4864_s1 }
   0x7   :  { %p3992_p2 = pnand %p3990_p1, %p3987_p0 }
   0x9   :  { %3995 = shalt.err (!%p3992_p2)
}
   0xa   :  { %s3996_s22 = scalar_lea.vmem %s37_s14, 2048  ;;  %p4001_p4 = scmp.lt.s32.totalorder %s37_s14, %s37_s14 }
   0xb   :  { %p3997_p3 = scmp.ne.s32.totalorder %s37_s14, %s3996_s22  ;;  %p4002_p5 = scmp.lt.s32.totalorder %s3996_s22, %s3996_s22 }
   0xd   :  { %p4003_p6 = por %p4002_p5, %p4001_p4 }
   0xf   :  { %p4004_p7 = pnand %p4003_p6, %p3997_p3 }
  0x11   :  { %4007 = shalt.err (!%p4004_p7)
}
  0x12   :  { %s4127_s23 = smov 64   ;;  %s4128_s24 = smov 4  }
  0x13   :  { %42 = dma.hbm_to_vmem [thread:$0]  %s4864_s1, 2048, %s37_s14, [#allocation5], %s4127_s23, %s4127_s23, %s4128_s24  }
  0x14   :  { %s4129_s27 = smov [#allocation7]   ;;  %s4130_s29 = smov [#allocation2]  }
  0x15   :  { %s62_s28 = sshll.u32 %s4129_s27, 4  ;;  %s24_s30 = sshll.u32 %s4130_s29, 4  ;;  %s63_s28 = int_to_ptr.vmem [resolvable:$true] %s62_s28  ;;  %s25_s30 = int_to_ptr.vmem [resolvable:$true] %s24_s30 }
  0x16   :  { %s4008_s13 = scalar_lea.hbm %s4867_s4, 4096 }
  0x17   :  { %p4009_p8 = scmp.ne.s32.totalorder %s4867_s4, %s4008_s13  ;;  %p4012_p9 = scmp.lt.u32.totalorder %s4008_s13, %s4867_s4 }
  0x19   :  { %p4014_p10 = pnand %p4012_p9, %p4009_p8 }
  0x1b   :  { %4017 = shalt.err (!%p4014_p10)
}
  0x1c   :  { %s4018_s1 = scalar_lea.vmem %s63_s28, 4096  ;;  %p4023_p12 = scmp.lt.s32.totalorder %s63_s28, %s63_s28 }
  0x1d   :  { %p4019_p11 = scmp.ne.s32.totalorder %s63_s28, %s4018_s1  ;;  %p4024_p13 = scmp.lt.s32.totalorder %s4018_s1, %s4018_s1 }
  0x1f   :  { %p4025_p0 = por %p4024_p13, %p4023_p12 }
  0x21   :  { %p4026_p1 = pnand %p4025_p0, %p4019_p11 }
  0x23   :  { %4029 = shalt.err (!%p4026_p1)
}
  0x24   :  { %68 = dma.hbm_to_vmem [thread:$0]  %s4867_s4, 4096, %s63_s28, [#allocation8], %s4127_s23, %s4127_s23, %s4128_s24  }
  0x25   :  { %s4030_s22 = scalar_lea.hbm %s4863_s0, 4096 }
  0x26   :  { %p4031_p2 = scmp.ne.s32.totalorder %s4863_s0, %s4030_s22  ;;  %p4034_p3 = scmp.lt.u32.totalorder %s4030_s22, %s4863_s0 }
  0x28   :  { %p4036_p4 = pnand %p4034_p3, %p4031_p2 }
  0x2a   :  { %4039 = shalt.err (!%p4036_p4)
}
  0x2b   :  { %s4040_s11 = scalar_lea.vmem %s25_s30, 4096  ;;  %p4045_p6 = scmp.lt.s32.totalorder %s25_s30, %s25_s30 }
  0x2c   :  { %p4041_p5 = scmp.ne.s32.totalorder %s25_s30, %s4040_s11  ;;  %p4046_p7 = scmp.lt.s32.totalorder %s4040_s11, %s4040_s11 }
  0x2e   :  { %p4047_p8 = por %p4046_p7, %p4045_p6 }
  0x30   :  { %p4048_p9 = pnand %p4047_p8, %p4041_p5 }
  0x32   :  { %4051 = shalt.err (!%p4048_p9)
}
  0x33   :  { %s4131_s4 = smov 128   ;;  %s4132_s28 = smov 8  }
  0x34   :  { %30 = dma.hbm_to_vmem [thread:$0]  %s4863_s0, 4096, %s25_s30, [#allocation3], %s4131_s4, %s4131_s4, %s4132_s28  }
  0x35   :  { %s4133_s15 = smov [#allocation6]   ;;  %s4052_s1 = scalar_lea.hbm %s4865_s2, 4096 }
  0x36   :  { %s48_s16 = sshll.u32 %s4133_s15, 4  ;;  %p4053_p10 = scmp.ne.s32.totalorder %s4865_s2, %s4052_s1  ;;  %s49_s16 = int_to_ptr.vmem [resolvable:$true] %s48_s16 }
  0x37   :  { %p4056_p11 = scmp.lt.u32.totalorder %s4052_s1, %s4865_s2 }
  0x39   :  { %p4058_p12 = pnand %p4056_p11, %p4053_p10 }
  0x3b   :  { %4061 = shalt.err (!%p4058_p12)
}
  0x3c   :  { %s4062_s22 = scalar_lea.vmem %s49_s16, 4096  ;;  %p4067_p0 = scmp.lt.s32.totalorder %s49_s16, %s49_s16 }
  0x3d   :  { %p4063_p13 = scmp.ne.s32.totalorder %s49_s16, %s4062_s22  ;;  %p4068_p1 = scmp.lt.s32.totalorder %s4062_s22, %s4062_s22 }
  0x3f   :  { %p4069_p2 = por %p4068_p1, %p4067_p0 }
  0x41   :  { %p4070_p3 = pnand %p4069_p2, %p4063_p13 }
  0x43   :  { %4073 = shalt.err (!%p4070_p3)
}
  0x44   :  { %s4134_s0 = smov 256   ;;  %s4135_s30 = smov 16  }
  0x45   :  { %54 = dma.hbm_to_vmem [thread:$0]  %s4865_s2, 4096, %s49_s16, [#allocation5], %s4134_s0, %s4134_s0, %s4135_s30  }
  0x46   :  { %s4136_s27 = smov [#allocation9]   ;;  %s4137_s11 = smov [#allocation10]  }
  0x47   :  { %s76_s29 = sshll.u32 %s4136_s27, 4  ;;  %s90_s4 = sshll.u32 %s4137_s11, 4  ;;  %s77_s29 = int_to_ptr.vmem [resolvable:$true] %s76_s29  ;;  %s4248_s4 = int_to_ptr.vmem [resolvable:$true] %s90_s4 }
  0x48   :  { %s4074_s13 = scalar_lea.hbm %s4869_s6, 1024 }
  0x49   :  { %p4075_p4 = scmp.ne.s32.totalorder %s4869_s6, %s4074_s13  ;;  %p4078_p5 = scmp.lt.u32.totalorder %s4074_s13, %s4869_s6 }
  0x4b   :  { %p4080_p6 = pnand %p4078_p5, %p4075_p4 }
  0x4d   :  { %4083 = shalt.err (!%p4080_p6)
}
  0x4e   :  { %s4084_s2 = scalar_lea.vmem %s77_s29, 1024  ;;  %p4089_p8 = scmp.lt.s32.totalorder %s77_s29, %s77_s29 }
  0x4f   :  { %p4085_p7 = scmp.ne.s32.totalorder %s77_s29, %s4084_s2  ;;  %p4090_p9 = scmp.lt.s32.totalorder %s4084_s2, %s4084_s2 }
  0x51   :  { %p4091_p10 = por %p4090_p9, %p4089_p8 }
  0x53   :  { %p4092_p11 = pnand %p4091_p10, %p4085_p7 }
  0x55   :  { %4095 = shalt.err (!%p4092_p11)
}
  0x56   :  { %82 = dma.hbm_to_vmem [thread:$0]  %s4869_s6, 1024, %s77_s29, [#allocation8], %s4127_s23, %s4127_s23, %s4128_s24  }
  0x57   :  { %s4096_s21 = scalar_lea.hbm %s4871_s8, 1024 }
  0x58   :  { %p4097_p12 = scmp.ne.s32.totalorder %s4871_s8, %s4096_s21  ;;  %p4100_p13 = scmp.lt.u32.totalorder %s4096_s21, %s4871_s8 }
  0x5a   :  { %p4102_p0 = pnand %p4100_p13, %p4097_p12 }
  0x5c   :  { %4105 = shalt.err (!%p4102_p0)
}
  0x5d   :  { %s4106_s26 = scalar_lea.vmem %s4248_s4, 1024  ;;  %p4111_p2 = scmp.lt.s32.totalorder %s4248_s4, %s4248_s4 }
  0x5e   :  { %p4107_p1 = scmp.ne.s32.totalorder %s4248_s4, %s4106_s26  ;;  %p4112_p3 = scmp.lt.s32.totalorder %s4106_s26, %s4106_s26 }
  0x60   :  { %p4113_p4 = por %p4112_p3, %p4111_p2 }
  0x62   :  { %p4114_p5 = pnand %p4113_p4, %p4107_p1 }
  0x64   :  { %4117 = shalt.err (!%p4114_p5)
}
  0x65   :  { %96 = dma.hbm_to_vmem [thread:$0]  %s4871_s8, 1024, %s4248_s4, [#allocation11], %s4127_s23, %s4127_s23, %s4128_s24  }
  0x66   :  { %4118 = dma.done.wait [#allocation3], 4096  }
  0x67   :  { %4119 = vsyncadd [#allocation3], 4294963200 }
  0x68   :  { %4120 = dma.done.wait [#allocation5], 6144  }
  0x69   :  { %4121 = vsyncadd [#allocation5], 4294961152 }
  0x6a   :  { %4122 = dma.done.wait [#allocation8], 5120  }
  0x6b   :  { %4123 = vsyncadd [#allocation8], 4294962176 }
  0x6c   :  { %4124 = dma.done.wait [#allocation11], 1024  }
  0x6d   :  { %4125 = vsyncadd [#allocation11], 4294966272  ;;  %v3794_v0 = vld [vmem:[#allocation4 + $0x40] sm:$0xff]   ;;  %v3796_v2 = vld [vmem:[#allocation4 + $0x48] sm:$0xff]  }
  0x6e   :  { %v3795_v1 = vld [vmem:[#allocation4] sm:$0xff]   ;;  %3077 = vmatprep.subr.bf16.mxu0 %v3794_v0  ;;  %v3797_v3 = vld [vmem:[#allocation4 + $0x8] sm:$0xff]   ;;  %v3798_v4 = vld [vmem:[#allocation4 + $0x50] sm:$0xff]  }
  0x6f   :  { %3078 = vmatpush3.bf16.msra.mxu0 %v3795_v1  ;;  %v3799_v5 = vld [vmem:[#allocation4 + $0x10] sm:$0xff]   ;;  %v3800_v6 = vld [vmem:[#allocation4 + $0x58] sm:$0xff]   ;;  %v3802_v8 = vld [vmem:[#allocation4 + $0x60] sm:$0xff]  }
  0x70   :  { %3079 = vmatprep.subr.bf16.mxu0 %v3796_v2  ;;  %v3801_v7 = vld [vmem:[#allocation4 + $0x18] sm:$0xff]   ;;  %v3803_v9 = vld [vmem:[#allocation4 + $0x20] sm:$0xff]   ;;  %v3804_v10 = vld [vmem:[#allocation4 + $0x68] sm:$0xff]  }
  0x71   :  { %v3810_v11 = vld [vmem:[#allocation2 + $0x4] ss:$8 sps:$4 sm:$0xff]   ;;  %v3806_v13 = vld [vmem:[#allocation4 + $0x70] sm:$0xff]   ;;  %v3808_v15 = vld [vmem:[#allocation4 + $0x78] sm:$0xff]  }
  0x72   :  { %470 = vmatprep.mubr.bf16.mxu0 %v3810_v11  ;;  %v3805_v12 = vld [vmem:[#allocation4 + $0x28] sm:$0xff]   ;;  %v3807_v14 = vld [vmem:[#allocation4 + $0x30] sm:$0xff]   ;;  %v3809_v16 = vld [vmem:[#allocation4 + $0x38] sm:$0xff]  }
  0x73   :  { %3080 = vmatpush3.bf16.msra.mxu0 %v3797_v3  ;;  %v3812_v17 = vld [vmem:[#allocation2] ss:$8 sps:$4 sm:$0xff]   ;;  %v3813_v18 = vld [vmem:[#allocation2 + $0x14] ss:$8 sps:$4 sm:$0xff]   ;;  %v3815_v19 = vld [vmem:[#allocation2 + $0x10] ss:$8 sps:$4 sm:$0xff]  }
  0x74   :  { %3081 = vmatprep.subr.bf16.mxu0 %v3798_v4  ;;  %v3816_v20 = vld [vmem:[#allocation2 + $0x24] ss:$8 sps:$4 sm:$0xff]   ;;  %v3858_v21 = vld [vmem:[#allocation6 + $0x8] ss:$16 sps:$4 sm:$0xff]   ;;  %v3866_v26 = vld [vmem:[#allocation6] ss:$16 sps:$4 sm:$0xff]  }
  0x75   :  { %v3860_v22 = vld [vmem:[#allocation6 + $0xc] ss:$16 sps:$4 sm:$0xff]   ;;  %v3861_v23 = vld [vmem:[#allocation6 + $0x28] ss:$16 sps:$4 sm:$0xff]   ;;  %v3864_v25 = vld [vmem:[#allocation6 + $0x4] ss:$16 sps:$4 sm:$0xff]  }
  0x76   :  { %v3863_v24 = vld [vmem:[#allocation6 + $0x2c] ss:$16 sps:$4 sm:$0xff]   ;;  %v3867_v27 = vld [vmem:[#allocation6 + $0x24] ss:$16 sps:$4 sm:$0xff]   ;;  %829 = vmatprep.subr.bf16.mxu1 %v3864_v25  ;;  %v3869_v28 = vld [vmem:[#allocation6 + $0x20] ss:$16 sps:$4 sm:$0xff]  }
  0x77   :  { %3082 = vmatpush3.bf16.msra.mxu0 %v3799_v5  ;;  %830 = vmatpush1.bf16.msra.mxu1 %v3866_v26  ;;  %v3870_v29 = vld [vmem:[#allocation6 + $0x44] ss:$16 sps:$4 sm:$0xff]   ;;  %v3874_v30 = vld [vmem:[#allocation6 + $0x4c] ss:$16 sps:$4 sm:$0xff]   ;;  %v3872_v31 = vld [vmem:[#allocation6 + $0x48] ss:$16 sps:$4 sm:$0xff]  }
  0x78   :  { %3083 = vmatprep.subr.bf16.mxu0 %v3800_v6  ;;  %831 = vmatprep.subr.bf16.mxu1 %v3867_v27  ;;  %v3818_v32 = vld [vmem:[#allocation2 + $0x20] ss:$8 sps:$4 sm:$0xff]   ;;  %v3819_v33 = vld [vmem:[#allocation2 + $0x34] ss:$8 sps:$4 sm:$0xff]   ;;  %v3821_v40 = vld [vmem:[#allocation2 + $0x30] ss:$8 sps:$4 sm:$0xff]  }
  0x79   :  { %v3875_v34 = vld [vmem:[#allocation6 + $0x40] ss:$16 sps:$4 sm:$0xff]   ;;  %v3880_v35 = vld [vmem:[#allocation6 + $0x6c] ss:$16 sps:$4 sm:$0xff]   ;;  %v3876_v36 = vld [vmem:[#allocation6 + $0x64] ss:$16 sps:$4 sm:$0xff]  }
  0x7a   :  { %v3878_v37 = vld [vmem:[#allocation6 + $0x68] ss:$16 sps:$4 sm:$0xff]   ;;  %v3886_v38 = vld [vmem:[#allocation6 + $0x8c] ss:$16 sps:$4 sm:$0xff]   ;;  %v3881_v39 = vld [vmem:[#allocation6 + $0x60] ss:$16 sps:$4 sm:$0xff]  }
  0x7b   :  { %3084 = vmatpush3.bf16.msra.mxu0 %v3801_v7  ;;  %832 = vmatpush1.bf16.msra.mxu1 %v3869_v28  ;;  %v3882_v41 = vld [vmem:[#allocation6 + $0x84] ss:$16 sps:$4 sm:$0xff]   ;;  %v3884_v42 = vld [vmem:[#allocation6 + $0x88] ss:$16 sps:$4 sm:$0xff]   ;;  %v3892_v44 = vld [vmem:[#allocation6 + $0xac] ss:$16 sps:$4 sm:$0xff]  }
  0x7c   :  { %3085 = vmatprep.subr.bf16.mxu0 %v3802_v8  ;;  %833 = vmatprep.subr.bf16.mxu1 %v3870_v29  ;;  %v3822_v43 = vld [vmem:[#allocation2 + $0x44] ss:$8 sps:$4 sm:$0xff]   ;;  %v3887_v45 = vld [vmem:[#allocation6 + $0x80] ss:$16 sps:$4 sm:$0xff]   ;;  %v3890_v47 = vld [vmem:[#allocation6 + $0xa8] ss:$16 sps:$4 sm:$0xff]  }
  0x7d   :  { %v3888_v46 = vld [vmem:[#allocation6 + $0xa4] ss:$16 sps:$4 sm:$0xff]   ;;  %v3893_v48 = vld [vmem:[#allocation6 + $0xa0] ss:$16 sps:$4 sm:$0xff]   ;;  %v3898_v0 = vld [vmem:[#allocation6 + $0xcc] ss:$16 sps:$4 sm:$0xff]  }
  0x7e   :  { %v3824_v49 = vld [vmem:[#allocation2 + $0x40] ss:$8 sps:$4 sm:$0xff]   ;;  %v3825_v50 = vld [vmem:[#allocation2 + $0x54] ss:$8 sps:$4 sm:$0xff]   ;;  %v3827_v51 = vld [vmem:[#allocation2 + $0x50] ss:$8 sps:$4 sm:$0xff]  }
  0x7f   :  { %3086 = vmatpush3.bf16.msra.mxu0 %v3803_v9  ;;  %834 = vmatpush1.bf16.msra.mxu1 %v3875_v34  ;;  %v3828_v52 = vld [vmem:[#allocation2 + $0x64] ss:$8 sps:$4 sm:$0xff]   ;;  %v3830_v53 = vld [vmem:[#allocation2 + $0x60] ss:$8 sps:$4 sm:$0xff]   ;;  %v3831_v54 = vld [vmem:[#allocation2 + $0x74] ss:$8 sps:$4 sm:$0xff]  }
  0x80   :  { %3087 = vmatprep.subr.bf16.mxu0 %v3804_v10  ;;  %835 = vmatprep.subr.bf16.mxu1 %v3876_v36  ;;  %v3833_v55 = vld [vmem:[#allocation2 + $0x70] ss:$8 sps:$4 sm:$0xff]   ;;  %v3834_v56 = vld [vmem:[#allocation2 + $0x84] ss:$8 sps:$4 sm:$0xff]   ;;  %v3836_v57 = vld [vmem:[#allocation2 + $0x80] ss:$8 sps:$4 sm:$0xff]  }
  0x81   :  { %v3837_v58 = vld [vmem:[#allocation2 + $0x94] ss:$8 sps:$4 sm:$0xff]   ;;  %v3839_v59 = vld [vmem:[#allocation2 + $0x90] ss:$8 sps:$4 sm:$0xff]   ;;  %v3840_v60 = vld [vmem:[#allocation2 + $0xa4] ss:$8 sps:$4 sm:$0xff]  }
  0x82   :  { %v3842_v61 = vld [vmem:[#allocation2 + $0xa0] ss:$8 sps:$4 sm:$0xff]   ;;  %v3843_v62 = vld [vmem:[#allocation2 + $0xb4] ss:$8 sps:$4 sm:$0xff]   ;;  %v3845_v3 = vld [vmem:[#allocation2 + $0xb0] ss:$8 sps:$4 sm:$0xff]  }
  0x83   :  { %3088 = vmatpush3.bf16.msra.mxu0 %v3805_v12  ;;  %836 = vmatpush1.bf16.msra.mxu1 %v3881_v39  ;;  %v3894_v63 = vld [vmem:[#allocation6 + $0xc4] ss:$16 sps:$4 sm:$0xff]   ;;  %v3896_v1 = vld [vmem:[#allocation6 + $0xc8] ss:$16 sps:$4 sm:$0xff]   ;;  %v3899_v2 = vld [vmem:[#allocation6 + $0xc0] ss:$16 sps:$4 sm:$0xff]  }
  0x84   :  { %3089 = vmatprep.subr.bf16.mxu0 %v3806_v13  ;;  %837 = vmatprep.subr.bf16.mxu1 %v3882_v41  ;;  %v3846_v4 = vld [vmem:[#allocation2 + $0xc4] ss:$8 sps:$4 sm:$0xff]   ;;  %v3902_v7 = vld [vmem:[#allocation6 + $0xe8] ss:$16 sps:$4 sm:$0xff]   ;;  %v3905_v8 = vld [vmem:[#allocation6 + $0xe0] ss:$16 sps:$4 sm:$0xff]  }
  0x85   :  { %v3900_v5 = vld [vmem:[#allocation6 + $0xe4] ss:$16 sps:$4 sm:$0xff]   ;;  %v3904_v6 = vld [vmem:[#allocation6 + $0xec] ss:$16 sps:$4 sm:$0xff]   ;;  %v4138_v9 = vmov 0  }
  0x86   :  { %861 = vmatprep.mubr.bf16.mxu1 %v4138_v9  ;;  %v3848_v10 = vld [vmem:[#allocation2 + $0xc0] ss:$8 sps:$4 sm:$0xff]   ;;  %v3849_v11 = vld [vmem:[#allocation2 + $0xd4] ss:$8 sps:$4 sm:$0xff]   ;;  %v3851_v12 = vld [vmem:[#allocation2 + $0xd0] ss:$8 sps:$4 sm:$0xff]  }
  0x87   :  { %3090 = vmatpush3.bf16.msra.mxu0 %v3807_v14  ;;  %838 = vmatpush1.bf16.msra.mxu1 %v3887_v45  ;;  %v3852_v13 = vld [vmem:[#allocation2 + $0xe4] ss:$8 sps:$4 sm:$0xff]   ;;  %v3854_v14 = vld [vmem:[#allocation2 + $0xe0] ss:$8 sps:$4 sm:$0xff]   ;;  %v3916_v41 = vld [vmem:[#allocation7 + $0x10] sm:$0xff]  }
  0x88   :  { %3091 = vmatprep.subr.bf16.mxu0 %v3808_v15  ;;  %839 = vmatprep.subr.bf16.mxu1 %v3888_v46  ;;  %v3855_v15 = vld [vmem:[#allocation2 + $0xf4] ss:$8 sps:$4 sm:$0xff]   ;;  %v3908_v26 = vld [vmem:[#allocation7] sm:$0xff]   ;;  %v3910_v28 = vld [vmem:[#allocation7 + $0x48] sm:$0xff]  }
  0x89   :  { %v3909_v27 = vld [vmem:[#allocation7 + $0x80] sm:$0xff]   ;;  %v3911_v29 = vld [vmem:[#allocation7 + $0xc8] sm:$0xff]  }
  0x8a   :  { %v3912_v34 = vld [vmem:[#allocation7 + $0x8] sm:$0xff]  }
  0x8b   :  { %3092 = vmatpush3.bf16.msra.mxu0 %v3809_v16  ;;  %840 = vmatpush1.bf16.msra.mxu1 %v3893_v48  ;;  %v3857_v16 = vld [vmem:[#allocation2 + $0xf0] ss:$8 sps:$4 sm:$0xff]  }
  0x8c   :  { %1022 = vmatprep.subr.bf16.mxu0 %v3860_v22  ;;  %841 = vmatprep.subr.bf16.mxu1 %v3894_v63 }
  0x8e   :  { %471 = vmatmul.mubr.bf16.vlgmr.msra.gmra.mrb[0].mxu0 %v3812_v17 }
  0x8f   :  { %478 = vmatprep.mubr.bf16.mxu0 %v3813_v18  ;;  %1023 = vmatpush1.bf16.msra.mxu0 %v3858_v21  ;;  %v3906_v18 = vld [vmem:[#allocation7 + $0x40] sm:$0xff]  }
  0x90   :  { %1024 = vmatprep.subr.bf16.mxu0 %v3863_v24  ;;  %842 = vmatpush1.bf16.msra.mxu1 %v3899_v2 }
  0x91   :  { %843 = vmatprep.subr.bf16.mxu1 %v3900_v5 }
  0x93   :  { %1025 = vmatpush1.bf16.msra.mxu0 %v3861_v23 }
  0x94   :  { %1026 = vmatprep.subr.bf16.mxu0 %v3874_v30  ;;  %844 = vmatpush1.bf16.msra.mxu1 %v3905_v8 }
  0x95   :  { %3189 = vmatprep.subr.bf16.mxu1 %v3906_v18 }
  0x96   :  { %479 = vmatmul.mubr.bf16.gmra.mrb[4].mxu0 %v3815_v19  ;;  %v3907_v19 = vld [vmem:[#allocation7 + $0xc0] sm:$0xff]  }
  0x97   :  { %486 = vmatprep.mubr.bf16.mxu0 %v3816_v20  ;;  %1027 = vmatpush1.bf16.msra.mxu0 %v3872_v31 }
  0x98   :  { %1028 = vmatprep.subr.bf16.mxu0 %v3880_v35  ;;  %v3913_v35 = vld [vmem:[#allocation7 + $0x88] sm:$0xff]  }
  0x9b   :  { %1029 = vmatpush1.bf16.msra.mxu0 %v3878_v37  ;;  %v3914_v37 = vld [vmem:[#allocation7 + $0x50] sm:$0xff]  }
  0x9c   :  { %1030 = vmatprep.subr.bf16.mxu0 %v3886_v38  ;;  %v3915_v38 = vld [vmem:[#allocation7 + $0xd0] sm:$0xff]  }
  0x9e   :  { %487 = vmatmul.mubr.bf16.gmra.mrb[8].mxu0 %v3818_v32 }
  0x9f   :  { %494 = vmatprep.mubr.bf16.mxu0 %v3819_v33  ;;  %1031 = vmatpush1.bf16.msra.mxu0 %v3884_v42  ;;  %v3917_v42 = vld [vmem:[#allocation7 + $0x90] sm:$0xff]  }
  0xa0   :  { %1032 = vmatprep.subr.bf16.mxu0 %v3892_v44  ;;  %v3919_v44 = vld [vmem:[#allocation7 + $0xd8] sm:$0xff]  }
  0xa3   :  { %1033 = vmatpush1.bf16.msra.mxu0 %v3890_v47 }
  0xa4   :  { %1034 = vmatprep.subr.bf16.mxu0 %v3898_v0 }
  0xa6   :  { %495 = vmatmul.mubr.bf16.gmra.mrb[12].mxu0 %v3821_v40 }
  0xa7   :  { %502 = vmatprep.mubr.bf16.mxu0 %v3822_v43  ;;  %1035 = vmatpush1.bf16.msra.mxu0 %v3896_v1  ;;  %v3918_v43 = vld [vmem:[#allocation7 + $0x58] sm:$0xff]  }
  0xa8   :  { %1036 = vmatprep.subr.bf16.mxu0 %v3904_v6 }
  0xab   :  { %1037 = vmatpush1.bf16.msra.mxu0 %v3902_v7 }
  0xac   :  { %3301 = vmatprep.subr.bf16.mxu0 %v3907_v19 }
  0xae   :  { %503 = vmatmul.mubr.bf16.gmra.mrb[16].mxu0 %v3824_v49  ;;  %v3920_v49 = vld [vmem:[#allocation7 + $0x18] sm:$0xff]  }
  0xaf   :  { %510 = vmatprep.mubr.bf16.mxu0 %v3825_v50  ;;  %v3921_v50 = vld [vmem:[#allocation7 + $0x98] sm:$0xff]  }
  0xb6   :  { %511 = vmatmul.mubr.bf16.gmra.mrb[20].mxu0 %v3827_v51 }
  0xb7   :  { %518 = vmatprep.mubr.bf16.mxu0 %v3828_v52  ;;  %v3922_v52 = vld [vmem:[#allocation7 + $0x60] sm:$0xff]  }
  0xbe   :  { %519 = vmatmul.mubr.bf16.gmra.mrb[24].mxu0 %v3830_v53  ;;  %v3923_v53 = vld [vmem:[#allocation7 + $0xe0] sm:$0xff]  }
  0xbf   :  { %526 = vmatprep.mubr.bf16.mxu0 %v3831_v54 }
  0xc6   :  { %527 = vmatmul.mubr.bf16.gmra.mrb[28].mxu0 %v3833_v55 }
  0xc7   :  { %534 = vmatprep.mubr.bf16.mxu0 %v3834_v56  ;;  %v3924_v56 = vld [vmem:[#allocation7 + $0x20] sm:$0xff]  }
  0xce   :  { %535 = vmatmul.mubr.bf16.gmra.mrb[32].mxu0 %v3836_v57  ;;  %v3925_v57 = vld [vmem:[#allocation7 + $0xa0] sm:$0xff]  }
  0xcf   :  { %542 = vmatprep.mubr.bf16.mxu0 %v3837_v58  ;;  %v3926_v58 = vld [vmem:[#allocation7 + $0x68] sm:$0xff]  }
  0xd6   :  { %543 = vmatmul.mubr.bf16.gmra.mrb[36].mxu0 %v3839_v59  ;;  %v3927_v59 = vld [vmem:[#allocation7 + $0xe8] sm:$0xff]  }
  0xd7   :  { %550 = vmatprep.mubr.bf16.mxu0 %v3840_v60 }
  0xde   :  { %551 = vmatmul.mubr.bf16.gmra.mrb[40].mxu0 %v3842_v61 }
  0xdf   :  { %558 = vmatprep.mubr.bf16.mxu0 %v3843_v62 }
  0xe6   :  { %559 = vmatmul.mubr.bf16.gmra.mrb[44].mxu0 %v3845_v3 }
  0xe7   :  { %566 = vmatprep.mubr.bf16.mxu0 %v3846_v4 }
  0xee   :  { %567 = vmatmul.mubr.bf16.gmra.mrb[48].mxu0 %v3848_v10 }
  0xef   :  { %574 = vmatprep.mubr.bf16.mxu0 %v3849_v11 }
  0xf6   :  { %575 = vmatmul.mubr.bf16.gmra.mrb[52].mxu0 %v3851_v12 }
  0xf7   :  { %582 = vmatprep.mubr.bf16.mxu0 %v3852_v13 }
  0xfe   :  { %583 = vmatmul.mubr.bf16.gmra.mrb[56].mxu0 %v3854_v14 }
  0xff   :  { %590 = vmatprep.mubr.bf16.mxu0 %v3855_v15 }
 0x106   :  { %591 = vmatmul.mubr.bf16.gmra.mrb[60].mxu0 %v3857_v16 }
 0x107   :  { %1054 = vmatprep.mubr.bf16.mxu0 %v4138_v9 }
 0x161   :  { %v3093_v17 = vpop.f32.mrb[0].mxu0 }
 0x162   :  { %v3094_v20 = vpop.f32.mrb[1].mxu0 }
 0x163   :  { %v3095_v21 = vadd.f32 %v3094_v20, %v3093_v17  ;;  %v3096_v22 = vpop.f32.mrb[2].mxu0 }
 0x164   :  { %v3097_v23 = vpop.f32.mrb[3].mxu0 }
 0x165   :  { %v3098_v24 = vadd.f32 %v3097_v23, %v3096_v22 }
 0x167   :  { %v599_v25 = vpack.c.bf16 %v3098_v24, %v3095_v21 }
 0x169   :  { %v3099_v30 = vpop.f32.mrb[4].mxu0  ;;  %862 = vmatmul.mubr.bf16.vlgmr.msra.gmra.mrb[0].mxu1 %v599_v25  ;;  %1055 = vmatmul.mubr.bf16.vlgmr.msra.gmra.mrb[64].mxu0 %v599_v25 }
 0x16a   :  { %v3100_v31 = vpop.f32.mrb[5].mxu0  ;;  %871 = vmatprep.mubr.bf16.mxu1 %v4138_v9  ;;  %1064 = vmatprep.mubr.bf16.mxu0 %v4138_v9 }
 0x16b   :  { %v3101_v32 = vadd.f32 %v3100_v31, %v3099_v30  ;;  %v3102_v33 = vpop.f32.mrb[6].mxu0  ;;  %3190 = vmatpush3.bf16.msra.mxu1 %v3908_v26  ;;  %3302 = vmatpush3.bf16.msra.mxu0 %v3909_v27 }
 0x16c   :  { %v3103_v36 = vpop.f32.mrb[7].mxu0  ;;  %3191 = vmatprep.subr.bf16.mxu1 %v3910_v28  ;;  %3303 = vmatprep.subr.bf16.mxu0 %v3911_v29 }
 0x16d   :  { %v3104_v39 = vadd.f32 %v3103_v36, %v3102_v33 }
 0x16f   :  { %v600_v40 = vpack.c.bf16 %v3104_v39, %v3101_v32  ;;  %3192 = vmatpush3.bf16.msra.mxu1 %v3912_v34  ;;  %3304 = vmatpush3.bf16.msra.mxu0 %v3913_v35 }
 0x170   :  { %3193 = vmatprep.subr.bf16.mxu1 %v3914_v37  ;;  %3305 = vmatprep.subr.bf16.mxu0 %v3915_v38 }
 0x171   :  { %v3105_v45 = vpop.f32.mrb[8].mxu0  ;;  %872 = vmatmul.mubr.bf16.gmra.mrb[4].mxu1 %v600_v40  ;;  %1065 = vmatmul.mubr.bf16.gmra.mrb[68].mxu0 %v600_v40 }
 0x172   :  { %v3106_v46 = vpop.f32.mrb[9].mxu0  ;;  %881 = vmatprep.mubr.bf16.mxu1 %v4138_v9  ;;  %1074 = vmatprep.mubr.bf16.mxu0 %v4138_v9 }
 0x173   :  { %v3107_v47 = vadd.f32 %v3106_v46, %v3105_v45  ;;  %v3108_v48 = vpop.f32.mrb[10].mxu0  ;;  %3194 = vmatpush3.bf16.msra.mxu1 %v3916_v41  ;;  %3306 = vmatpush3.bf16.msra.mxu0 %v3917_v42 }
 0x174   :  { %v3109_v51 = vpop.f32.mrb[11].mxu0  ;;  %3195 = vmatprep.subr.bf16.mxu1 %v3918_v43  ;;  %3307 = vmatprep.subr.bf16.mxu0 %v3919_v44 }
 0x175   :  { %v3110_v54 = vadd.f32 %v3109_v51, %v3108_v48 }
 0x177   :  { %v601_v55 = vpack.c.bf16 %v3110_v54, %v3107_v47  ;;  %3196 = vmatpush3.bf16.msra.mxu1 %v3920_v49  ;;  %3308 = vmatpush3.bf16.msra.mxu0 %v3921_v50 }
 0x178   :  { %3197 = vmatprep.subr.bf16.mxu1 %v3922_v52  ;;  %3309 = vmatprep.subr.bf16.mxu0 %v3923_v53 }
 0x179   :  { %v3111_v60 = vpop.f32.mrb[12].mxu0  ;;  %882 = vmatmul.mubr.bf16.gmra.mrb[8].mxu1 %v601_v55  ;;  %1075 = vmatmul.mubr.bf16.gmra.mrb[72].mxu0 %v601_v55  ;;  %v3928_v55 = vld [vmem:[#allocation7 + $0x28] sm:$0xff]  }
 0x17a   :  { %v3112_v61 = vpop.f32.mrb[13].mxu0  ;;  %891 = vmatprep.mubr.bf16.mxu1 %v4138_v9  ;;  %1084 = vmatprep.mubr.bf16.mxu0 %v4138_v9 }
 0x17b   :  { %v3113_v62 = vadd.f32 %v3112_v61, %v3111_v60  ;;  %v3114_v63 = vpop.f32.mrb[14].mxu0  ;;  %3198 = vmatpush3.bf16.msra.mxu1 %v3924_v56  ;;  %3310 = vmatpush3.bf16.msra.mxu0 %v3925_v57  ;;  %v3929_v56 = vld [vmem:[#allocation7 + $0xa8] sm:$0xff]   ;;  %v3930_v61 = vld [vmem:[#allocation7 + $0x70] sm:$0xff]  }
 0x17c   :  { %v3115_v0 = vpop.f32.mrb[15].mxu0  ;;  %3199 = vmatprep.subr.bf16.mxu1 %v3926_v58  ;;  %3311 = vmatprep.subr.bf16.mxu0 %v3927_v59 }
 0x17d   :  { %v3116_v1 = vadd.f32 %v3115_v0, %v3114_v63  ;;  %v3932_v63 = vld [vmem:[#allocation7 + $0x30] sm:$0xff]  }
 0x17e   :  { %v3933_v0 = vld [vmem:[#allocation7 + $0xb0] sm:$0xff]  }
 0x17f   :  { %v602_v2 = vpack.c.bf16 %v3116_v1, %v3113_v62  ;;  %3200 = vmatpush3.bf16.msra.mxu1 %v3928_v55  ;;  %3312 = vmatpush3.bf16.msra.mxu0 %v3929_v56  ;;  %v3931_v62 = vld [vmem:[#allocation7 + $0xf0] sm:$0xff]  }
 0x180   :  { %3201 = vmatprep.subr.bf16.mxu1 %v3930_v61  ;;  %3313 = vmatprep.subr.bf16.mxu0 %v3931_v62 }
 0x181   :  { %v3117_v3 = vpop.f32.mrb[16].mxu0  ;;  %892 = vmatmul.mubr.bf16.gmra.mrb[12].mxu1 %v602_v2  ;;  %1085 = vmatmul.mubr.bf16.gmra.mrb[76].mxu0 %v602_v2 }
 0x182   :  { %v3118_v4 = vpop.f32.mrb[17].mxu0  ;;  %901 = vmatprep.mubr.bf16.mxu1 %v4138_v9  ;;  %1094 = vmatprep.mubr.bf16.mxu0 %v4138_v9 }
 0x183   :  { %v3119_v5 = vadd.f32 %v3118_v4, %v3117_v3  ;;  %v3120_v6 = vpop.f32.mrb[18].mxu0  ;;  %3202 = vmatpush3.bf16.msra.mxu1 %v3932_v63  ;;  %3314 = vmatpush3.bf16.msra.mxu0 %v3933_v0  ;;  %v3934_v3 = vld [vmem:[#allocation7 + $0x78] sm:$0xff]  }
 0x184   :  { %v3121_v7 = vpop.f32.mrb[19].mxu0  ;;  %v3935_v4 = vld [vmem:[#allocation7 + $0xf8] sm:$0xff]   ;;  %3203 = vmatprep.subr.bf16.mxu1 %v3934_v3 }
 0x185   :  { %v3122_v8 = vadd.f32 %v3121_v7, %v3120_v6  ;;  %v3936_v6 = vld [vmem:[#allocation7 + $0x38] sm:$0xff]   ;;  %3315 = vmatprep.subr.bf16.mxu0 %v3935_v4 }
 0x186   :  { %v3937_v7 = vld [vmem:[#allocation7 + $0xb8] sm:$0xff]  }
 0x187   :  { %v603_v10 = vpack.c.bf16 %v3122_v8, %v3119_v5  ;;  %3204 = vmatpush3.bf16.msra.mxu1 %v3936_v6  ;;  %3316 = vmatpush3.bf16.msra.mxu0 %v3937_v7 }
 0x189   :  { %v3123_v11 = vpop.f32.mrb[20].mxu0  ;;  %902 = vmatmul.mubr.bf16.gmra.mrb[16].mxu1 %v603_v10  ;;  %1095 = vmatmul.mubr.bf16.gmra.mrb[80].mxu0 %v603_v10 }
 0x18a   :  { %v3124_v12 = vpop.f32.mrb[21].mxu0  ;;  %911 = vmatprep.mubr.bf16.mxu1 %v4138_v9  ;;  %1104 = vmatprep.mubr.bf16.mxu0 %v4138_v9 }
 0x18b   :  { %v3125_v13 = vadd.f32 %v3124_v12, %v3123_v11  ;;  %v3126_v14 = vpop.f32.mrb[22].mxu0 }
 0x18c   :  { %v3127_v15 = vpop.f32.mrb[23].mxu0 }
 0x18d   :  { %v3128_v16 = vadd.f32 %v3127_v15, %v3126_v14 }
 0x18f   :  { %v604_v17 = vpack.c.bf16 %v3128_v16, %v3125_v13 }
 0x191   :  { %v3129_v18 = vpop.f32.mrb[24].mxu0  ;;  %912 = vmatmul.mubr.bf16.gmra.mrb[20].mxu1 %v604_v17  ;;  %1105 = vmatmul.mubr.bf16.gmra.mrb[84].mxu0 %v604_v17 }
 0x192   :  { %v3130_v19 = vpop.f32.mrb[25].mxu0  ;;  %921 = vmatprep.mubr.bf16.mxu1 %v4138_v9  ;;  %1114 = vmatprep.mubr.bf16.mxu0 %v4138_v9 }
 0x193   :  { %v3131_v20 = vadd.f32 %v3130_v19, %v3129_v18  ;;  %v3132_v21 = vpop.f32.mrb[26].mxu0 }
 0x194   :  { %v3133_v22 = vpop.f32.mrb[27].mxu0 }
 0x195   :  { %v3134_v23 = vadd.f32 %v3133_v22, %v3132_v21 }
 0x197   :  { %v605_v24 = vpack.c.bf16 %v3134_v23, %v3131_v20 }
 0x199   :  { %v3135_v25 = vpop.f32.mrb[28].mxu0  ;;  %922 = vmatmul.mubr.bf16.gmra.mrb[24].mxu1 %v605_v24  ;;  %1115 = vmatmul.mubr.bf16.gmra.mrb[88].mxu0 %v605_v24 }
 0x19a   :  { %v3136_v26 = vpop.f32.mrb[29].mxu0  ;;  %931 = vmatprep.mubr.bf16.mxu1 %v4138_v9  ;;  %1124 = vmatprep.mubr.bf16.mxu0 %v4138_v9 }
 0x19b   :  { %v3137_v27 = vadd.f32 %v3136_v26, %v3135_v25  ;;  %v3138_v28 = vpop.f32.mrb[30].mxu0 }
 0x19c   :  { %v3139_v29 = vpop.f32.mrb[31].mxu0 }
 0x19d   :  { %v3140_v30 = vadd.f32 %v3139_v29, %v3138_v28 }
 0x19f   :  { %v606_v31 = vpack.c.bf16 %v3140_v30, %v3137_v27 }
 0x1a1   :  { %v3141_v32 = vpop.f32.mrb[32].mxu0  ;;  %932 = vmatmul.mubr.bf16.gmra.mrb[28].mxu1 %v606_v31  ;;  %1125 = vmatmul.mubr.bf16.gmra.mrb[92].mxu0 %v606_v31 }
 0x1a2   :  { %v3142_v33 = vpop.f32.mrb[33].mxu0  ;;  %941 = vmatprep.mubr.bf16.mxu1 %v4138_v9  ;;  %1134 = vmatprep.mubr.bf16.mxu0 %v4138_v9 }
 0x1a3   :  { %v3143_v34 = vadd.f32 %v3142_v33, %v3141_v32  ;;  %v3144_v35 = vpop.f32.mrb[34].mxu0 }
 0x1a4   :  { %v3145_v36 = vpop.f32.mrb[35].mxu0 }
 0x1a5   :  { %v3146_v37 = vadd.f32 %v3145_v36, %v3144_v35  ;;  %v649_v35 = vlaneseq }
 0x1a7   :  { %v607_v38 = vpack.c.bf16 %v3146_v37, %v3143_v34  ;;  %v650_v36 = vshrl.u32 %v649_v35, 7 }
 0x1a9   :  { %v3147_v39 = vpop.f32.mrb[36].mxu0  ;;  %942 = vmatmul.mubr.bf16.gmra.mrb[32].mxu1 %v607_v38  ;;  %1135 = vmatmul.mubr.bf16.gmra.mrb[96].mxu0 %v607_v38  ;;  %v651_v37 = vsub.s32 0, %v650_v36  ;;  %v659_v38 = vsub.s32 2, %v650_v36 }
 0x1aa   :  { %v3148_v40 = vpop.f32.mrb[37].mxu0  ;;  %951 = vmatprep.mubr.bf16.mxu1 %v4138_v9  ;;  %1144 = vmatprep.mubr.bf16.mxu0 %v4138_v9 }
 0x1ab   :  { %v3149_v41 = vadd.f32 %v3148_v40, %v3147_v39  ;;  %v3150_v42 = vpop.f32.mrb[38].mxu0  ;;  %v647_v39 = vld [vmem:[%s4866_s3] sm:$0xf]  ;;  %v655_v40 = vsub.s32 1, %v650_v36 }
 0x1ac   :  { %v3151_v43 = vpop.f32.mrb[39].mxu0 }
 0x1ad   :  { %v3152_v44 = vadd.f32 %v3151_v43, %v3150_v42  ;;  %v4320_v42 = vrot.slane %v647_v39, %v651_v37  ;;  %v4324_v43 = vrot.slane %v647_v39, %v655_v40 }
 0x1af   :  { %v608_v45 = vpack.c.bf16 %v3152_v44, %v3149_v41  ;;  %v663_v41 = vsub.s32 3, %v650_v36 }
 0x1b1   :  { %v3153_v46 = vpop.f32.mrb[40].mxu0  ;;  %952 = vmatmul.mubr.bf16.gmra.mrb[36].mxu1 %v608_v45  ;;  %1145 = vmatmul.mubr.bf16.gmra.mrb[100].mxu0 %v608_v45  ;;  %v4326_v44 = vrot.slane %v647_v39, %v663_v41 }
 0x1b2   :  { %v3154_v47 = vpop.f32.mrb[41].mxu0  ;;  %961 = vmatprep.mubr.bf16.mxu1 %v4138_v9  ;;  %1154 = vmatprep.mubr.bf16.mxu0 %v4138_v9 }
 0x1b3   :  { %v3155_v48 = vadd.f32 %v3154_v47, %v3153_v46  ;;  %v3156_v49 = vpop.f32.mrb[42].mxu0 }
 0x1b4   :  { %v3157_v50 = vpop.f32.mrb[43].mxu0 }
 0x1b5   :  { %v3158_v51 = vadd.f32 %v3157_v50, %v3156_v49 }
 0x1b7   :  { %v609_v52 = vpack.c.bf16 %v3158_v51, %v3155_v48 }
 0x1b9   :  { %v3159_v53 = vpop.f32.mrb[44].mxu0  ;;  %962 = vmatmul.mubr.bf16.gmra.mrb[40].mxu1 %v609_v52  ;;  %1155 = vmatmul.mubr.bf16.gmra.mrb[104].mxu0 %v609_v52 }
 0x1ba   :  { %v3160_v54 = vpop.f32.mrb[45].mxu0  ;;  %971 = vmatprep.mubr.bf16.mxu1 %v4138_v9  ;;  %1164 = vmatprep.mubr.bf16.mxu0 %v4138_v9 }
 0x1bb   :  { %v3161_v57 = vadd.f32 %v3160_v54, %v3159_v53  ;;  %v3162_v58 = vpop.f32.mrb[46].mxu0 }
 0x1bc   :  { %v3163_v59 = vpop.f32.mrb[47].mxu0 }
 0x1bd   :  { %v3164_v60 = vadd.f32 %v3163_v59, %v3162_v58 }
 0x1bf   :  { %v610_v1 = vpack.c.bf16 %v3164_v60, %v3161_v57 }
 0x1c1   :  { %v3165_v2 = vpop.f32.mrb[48].mxu0  ;;  %972 = vmatmul.mubr.bf16.gmra.mrb[44].mxu1 %v610_v1  ;;  %1165 = vmatmul.mubr.bf16.gmra.mrb[108].mxu0 %v610_v1 }
 0x1c2   :  { %v3166_v5 = vpop.f32.mrb[49].mxu0  ;;  %981 = vmatprep.mubr.bf16.mxu1 %v4138_v9  ;;  %1174 = vmatprep.mubr.bf16.mxu0 %v4138_v9 }
 0x1c3   :  { %v3167_v8 = vadd.f32 %v3166_v5, %v3165_v2  ;;  %v3168_v10 = vpop.f32.mrb[50].mxu0 }
 0x1c4   :  { %v3169_v11 = vpop.f32.mrb[51].mxu0 }
 0x1c5   :  { %v3170_v12 = vadd.f32 %v3169_v11, %v3168_v10 }
 0x1c7   :  { %v611_v13 = vpack.c.bf16 %v3170_v12, %v3167_v8 }
 0x1c9   :  { %v3171_v14 = vpop.f32.mrb[52].mxu0  ;;  %982 = vmatmul.mubr.bf16.gmra.mrb[48].mxu1 %v611_v13  ;;  %1175 = vmatmul.mubr.bf16.gmra.mrb[112].mxu0 %v611_v13 }
 0x1ca   :  { %v3172_v15 = vpop.f32.mrb[53].mxu0  ;;  %991 = vmatprep.mubr.bf16.mxu1 %v4138_v9  ;;  %1184 = vmatprep.mubr.bf16.mxu0 %v4138_v9 }
 0x1cb   :  { %v3173_v16 = vadd.f32 %v3172_v15, %v3171_v14  ;;  %v3174_v17 = vpop.f32.mrb[54].mxu0 }
 0x1cc   :  { %v3175_v18 = vpop.f32.mrb[55].mxu0 }
 0x1cd   :  { %v3176_v19 = vadd.f32 %v3175_v18, %v3174_v17 }
 0x1cf   :  { %v612_v20 = vpack.c.bf16 %v3176_v19, %v3173_v16 }
 0x1d1   :  { %v3177_v21 = vpop.f32.mrb[56].mxu0  ;;  %992 = vmatmul.mubr.bf16.gmra.mrb[52].mxu1 %v612_v20  ;;  %1185 = vmatmul.mubr.bf16.gmra.mrb[116].mxu0 %v612_v20 }
 0x1d2   :  { %v3178_v22 = vpop.f32.mrb[57].mxu0  ;;  %1001 = vmatprep.mubr.bf16.mxu1 %v4138_v9  ;;  %1194 = vmatprep.mubr.bf16.mxu0 %v4138_v9 }
 0x1d3   :  { %v3179_v23 = vadd.f32 %v3178_v22, %v3177_v21  ;;  %v3180_v24 = vpop.f32.mrb[58].mxu0 }
 0x1d4   :  { %v3181_v25 = vpop.f32.mrb[59].mxu0 }
 0x1d5   :  { %v3182_v26 = vadd.f32 %v3181_v25, %v3180_v24 }
 0x1d7   :  { %v613_v27 = vpack.c.bf16 %v3182_v26, %v3179_v23 }
 0x1d9   :  { %v3183_v28 = vpop.f32.mrb[60].mxu0  ;;  %1002 = vmatmul.mubr.bf16.gmra.mrb[56].mxu1 %v613_v27  ;;  %1195 = vmatmul.mubr.bf16.gmra.mrb[120].mxu0 %v613_v27 }
 0x1da   :  { %v3184_v29 = vpop.f32.mrb[61].mxu0  ;;  %1011 = vmatprep.mubr.bf16.mxu1 %v4138_v9  ;;  %1204 = vmatprep.mubr.bf16.mxu0 %v4138_v9  ;;  %v4322_v9 = vrot.slane %v647_v39, %v659_v38 }
 0x1db   :  { %v3185_v30 = vadd.f32 %v3184_v29, %v3183_v28  ;;  %v3186_v31 = vpop.f32.mrb[62].mxu0 }
 0x1dc   :  { %v3187_v32 = vpop.f32.mrb[63].mxu0 }
 0x1dd   :  { %v3188_v33 = vadd.f32 %v3187_v32, %v3186_v31 }
 0x1df   :  { %v614_v34 = vpack.c.bf16 %v3188_v33, %v3185_v30 }
 0x1e1   :  { %1012 = vmatmul.mubr.bf16.gmra.mrb[60].mxu1 %v614_v34  ;;  %1205 = vmatmul.mubr.bf16.gmra.mrb[124].mxu0 %v614_v34 }
 0x23c   :  { %v863_v45 = vpop.f32.mrb[0].mxu1  ;;  %v1056_v46 = vpop.f32.mrb[64].mxu0 }
 0x23d   :  { %v864_v47 = vadd.f32 %v863_v45, %v4320_v42  ;;  %v1057_v48 = vadd.f32 %v1056_v46, %v4322_v9  ;;  %v865_v49 = vpop.f32.mrb[1].mxu1  ;;  %v1058_v50 = vpop.f32.mrb[65].mxu0 }
 0x23e   :  { %v866_v51 = vadd.f32 %v865_v49, %v4324_v43  ;;  %v1059_v52 = vadd.f32 %v1058_v50, %v4326_v44  ;;  %v867_v53 = vpop.f32.mrb[2].mxu1  ;;  %v1060_v54 = vpop.f32.mrb[66].mxu0 }
 0x23f   :  { %v868_v55 = vadd.f32 %v867_v53, %v4320_v42  ;;  %v1061_v56 = vadd.f32 %v1060_v54, %v4322_v9  ;;  %v869_v57 = vpop.f32.mrb[3].mxu1  ;;  %v1062_v58 = vpop.f32.mrb[67].mxu0  ;;  %v1215_v61 = vmax.f32 %v864_v47, 0.0  ;;  %v1217_v62 = vmax.f32 %v1057_v48, 0.0 }
 0x240   :  { %v870_v59 = vadd.f32 %v869_v57, %v4324_v43  ;;  %v1063_v60 = vadd.f32 %v1062_v58, %v4326_v44  ;;  %v1216_v1 = vmax.f32 %v866_v51, 0.0  ;;  %v1218_v2 = vmax.f32 %v1059_v52, 0.0 }
 0x241   :  { %v1219_v63 = vmax.f32 %v868_v55, 0.0  ;;  %v1221_v0 = vmax.f32 %v1061_v56, 0.0 }
 0x242   :  { %v1220_v3 = vmax.f32 %v870_v59, 0.0  ;;  %v1222_v4 = vmax.f32 %v1063_v60, 0.0 }
 0x243   :  { %v1343_v5 = vpack.c.bf16 %v1219_v63, %v1215_v61  ;;  %v1345_v6 = vpack.c.bf16 %v1221_v0, %v1217_v62 }
 0x244   :  { %v1344_v7 = vpack.c.bf16 %v1220_v3, %v1216_v1  ;;  %v1346_v8 = vpack.c.bf16 %v1222_v4, %v1218_v2  ;;  %v873_v10 = vpop.f32.mrb[4].mxu1  ;;  %v1066_v11 = vpop.f32.mrb[68].mxu0 }
 0x245   :  { %v874_v12 = vadd.f32 %v873_v10, %v4320_v42  ;;  %v1067_v13 = vadd.f32 %v1066_v11, %v4322_v9  ;;  %v875_v14 = vpop.f32.mrb[5].mxu1  ;;  %v1068_v15 = vpop.f32.mrb[69].mxu0 }
 0x246   :  { %v876_v16 = vadd.f32 %v875_v14, %v4324_v43  ;;  %v1069_v17 = vadd.f32 %v1068_v15, %v4326_v44  ;;  %v877_v18 = vpop.f32.mrb[6].mxu1  ;;  %v1070_v19 = vpop.f32.mrb[70].mxu0  ;;  %1695 = vmatprep.mubr.bf16.mxu1 %v1344_v7  ;;  %1856 = vmatprep.mubr.bf16.mxu0 %v1346_v8 }
 0x247   :  { %v878_v20 = vadd.f32 %v877_v18, %v4320_v42  ;;  %v1071_v21 = vadd.f32 %v1070_v19, %v4322_v9  ;;  %v879_v22 = vpop.f32.mrb[7].mxu1  ;;  %v1072_v23 = vpop.f32.mrb[71].mxu0  ;;  %1696 = vmatmul.mubr.bf16.vlgmr.msra.gmra.mrb[64].mxu1 %v1343_v5  ;;  %1857 = vmatmul.mubr.bf16.vlgmr.msra.gmra.mrb[128].mxu0 %v1345_v6  ;;  %v1223_v26 = vmax.f32 %v874_v12, 0.0  ;;  %v1225_v27 = vmax.f32 %v1067_v13, 0.0 }
 0x248   :  { %v880_v24 = vadd.f32 %v879_v22, %v4324_v43  ;;  %v1073_v25 = vadd.f32 %v1072_v23, %v4326_v44  ;;  %v1224_v30 = vmax.f32 %v876_v16, 0.0  ;;  %v1226_v31 = vmax.f32 %v1069_v17, 0.0 }
 0x249   :  { %v1227_v28 = vmax.f32 %v878_v20, 0.0  ;;  %v1229_v29 = vmax.f32 %v1071_v21, 0.0 }
 0x24a   :  { %v1228_v32 = vmax.f32 %v880_v24, 0.0  ;;  %v1230_v33 = vmax.f32 %v1073_v25, 0.0 }
 0x24b   :  { %v1347_v34 = vpack.c.bf16 %v1227_v28, %v1223_v26  ;;  %v1349_v35 = vpack.c.bf16 %v1229_v29, %v1225_v27 }
 0x24c   :  { %v1348_v36 = vpack.c.bf16 %v1228_v32, %v1224_v30  ;;  %v1350_v37 = vpack.c.bf16 %v1230_v33, %v1226_v31  ;;  %v883_v38 = vpop.f32.mrb[8].mxu1  ;;  %v1076_v39 = vpop.f32.mrb[72].mxu0 }
 0x24d   :  { %v884_v40 = vadd.f32 %v883_v38, %v4320_v42  ;;  %v1077_v41 = vadd.f32 %v1076_v39, %v4322_v9  ;;  %v885_v45 = vpop.f32.mrb[9].mxu1  ;;  %v1078_v46 = vpop.f32.mrb[73].mxu0 }
 0x24e   :  { %v886_v47 = vadd.f32 %v885_v45, %v4324_v43  ;;  %v1079_v48 = vadd.f32 %v1078_v46, %v4326_v44  ;;  %v887_v49 = vpop.f32.mrb[10].mxu1  ;;  %v1080_v50 = vpop.f32.mrb[74].mxu0  ;;  %1703 = vmatprep.mubr.bf16.mxu1 %v1348_v36  ;;  %1864 = vmatprep.mubr.bf16.mxu0 %v1350_v37 }
 0x24f   :  { %v888_v51 = vadd.f32 %v887_v49, %v4320_v42  ;;  %v1081_v52 = vadd.f32 %v1080_v50, %v4322_v9  ;;  %v889_v53 = vpop.f32.mrb[11].mxu1  ;;  %v1082_v54 = vpop.f32.mrb[75].mxu0  ;;  %1704 = vmatmul.mubr.bf16.gmra.mrb[68].mxu1 %v1347_v34  ;;  %1865 = vmatmul.mubr.bf16.gmra.mrb[132].mxu0 %v1349_v35  ;;  %v1231_v57 = vmax.f32 %v884_v40, 0.0  ;;  %v1233_v58 = vmax.f32 %v1077_v41, 0.0 }
 0x250   :  { %v890_v55 = vadd.f32 %v889_v53, %v4324_v43  ;;  %v1083_v56 = vadd.f32 %v1082_v54, %v4326_v44  ;;  %v1232_v61 = vmax.f32 %v886_v47, 0.0  ;;  %v1234_v62 = vmax.f32 %v1079_v48, 0.0 }
 0x251   :  { %v1235_v59 = vmax.f32 %v888_v51, 0.0  ;;  %v1237_v60 = vmax.f32 %v1081_v52, 0.0 }
 0x252   :  { %v1236_v63 = vmax.f32 %v890_v55, 0.0  ;;  %v1238_v0 = vmax.f32 %v1083_v56, 0.0 }
 0x253   :  { %v1351_v1 = vpack.c.bf16 %v1235_v59, %v1231_v57  ;;  %v1353_v2 = vpack.c.bf16 %v1237_v60, %v1233_v58 }
 0x254   :  { %v1352_v3 = vpack.c.bf16 %v1236_v63, %v1232_v61  ;;  %v1354_v4 = vpack.c.bf16 %v1238_v0, %v1234_v62  ;;  %v893_v5 = vpop.f32.mrb[12].mxu1  ;;  %v1086_v6 = vpop.f32.mrb[76].mxu0 }
 0x255   :  { %v894_v7 = vadd.f32 %v893_v5, %v4320_v42  ;;  %v1087_v8 = vadd.f32 %v1086_v6, %v4322_v9  ;;  %v895_v10 = vpop.f32.mrb[13].mxu1  ;;  %v1088_v11 = vpop.f32.mrb[77].mxu0 }
 0x256   :  { %v896_v12 = vadd.f32 %v895_v10, %v4324_v43  ;;  %v1089_v13 = vadd.f32 %v1088_v11, %v4326_v44  ;;  %v897_v14 = vpop.f32.mrb[14].mxu1  ;;  %v1090_v15 = vpop.f32.mrb[78].mxu0  ;;  %1711 = vmatprep.mubr.bf16.mxu1 %v1352_v3  ;;  %1872 = vmatprep.mubr.bf16.mxu0 %v1354_v4 }
 0x257   :  { %v898_v16 = vadd.f32 %v897_v14, %v4320_v42  ;;  %v1091_v17 = vadd.f32 %v1090_v15, %v4322_v9  ;;  %v899_v18 = vpop.f32.mrb[15].mxu1  ;;  %v1092_v19 = vpop.f32.mrb[79].mxu0  ;;  %1712 = vmatmul.mubr.bf16.gmra.mrb[72].mxu1 %v1351_v1  ;;  %1873 = vmatmul.mubr.bf16.gmra.mrb[136].mxu0 %v1353_v2  ;;  %v1239_v22 = vmax.f32 %v894_v7, 0.0  ;;  %v1241_v23 = vmax.f32 %v1087_v8, 0.0 }
 0x258   :  { %v900_v20 = vadd.f32 %v899_v18, %v4324_v43  ;;  %v1093_v21 = vadd.f32 %v1092_v19, %v4326_v44  ;;  %v1240_v26 = vmax.f32 %v896_v12, 0.0  ;;  %v1242_v27 = vmax.f32 %v1089_v13, 0.0 }
 0x259   :  { %v1243_v24 = vmax.f32 %v898_v16, 0.0  ;;  %v1245_v25 = vmax.f32 %v1091_v17, 0.0 }
 0x25a   :  { %v1244_v28 = vmax.f32 %v900_v20, 0.0  ;;  %v1246_v29 = vmax.f32 %v1093_v21, 0.0 }
 0x25b   :  { %v1355_v30 = vpack.c.bf16 %v1243_v24, %v1239_v22  ;;  %v1357_v31 = vpack.c.bf16 %v1245_v25, %v1241_v23 }
 0x25c   :  { %v1356_v32 = vpack.c.bf16 %v1244_v28, %v1240_v26  ;;  %v1358_v33 = vpack.c.bf16 %v1246_v29, %v1242_v27  ;;  %v903_v34 = vpop.f32.mrb[16].mxu1  ;;  %v1096_v35 = vpop.f32.mrb[80].mxu0 }
 0x25d   :  { %v904_v36 = vadd.f32 %v903_v34, %v4320_v42  ;;  %v1097_v37 = vadd.f32 %v1096_v35, %v4322_v9  ;;  %v905_v38 = vpop.f32.mrb[17].mxu1  ;;  %v1098_v39 = vpop.f32.mrb[81].mxu0 }
 0x25e   :  { %v906_v40 = vadd.f32 %v905_v38, %v4324_v43  ;;  %v1099_v41 = vadd.f32 %v1098_v39, %v4326_v44  ;;  %v907_v45 = vpop.f32.mrb[18].mxu1  ;;  %v1100_v46 = vpop.f32.mrb[82].mxu0  ;;  %1719 = vmatprep.mubr.bf16.mxu1 %v1356_v32  ;;  %1880 = vmatprep.mubr.bf16.mxu0 %v1358_v33 }
 0x25f   :  { %v908_v47 = vadd.f32 %v907_v45, %v4320_v42  ;;  %v1101_v48 = vadd.f32 %v1100_v46, %v4322_v9  ;;  %v909_v49 = vpop.f32.mrb[19].mxu1  ;;  %v1102_v50 = vpop.f32.mrb[83].mxu0  ;;  %1720 = vmatmul.mubr.bf16.gmra.mrb[76].mxu1 %v1355_v30  ;;  %1881 = vmatmul.mubr.bf16.gmra.mrb[140].mxu0 %v1357_v31  ;;  %v1247_v53 = vmax.f32 %v904_v36, 0.0  ;;  %v1249_v54 = vmax.f32 %v1097_v37, 0.0 }
 0x260   :  { %v910_v51 = vadd.f32 %v909_v49, %v4324_v43  ;;  %v1103_v52 = vadd.f32 %v1102_v50, %v4326_v44  ;;  %v1248_v57 = vmax.f32 %v906_v40, 0.0  ;;  %v1250_v58 = vmax.f32 %v1099_v41, 0.0 }
 0x261   :  { %v1251_v55 = vmax.f32 %v908_v47, 0.0  ;;  %v1253_v56 = vmax.f32 %v1101_v48, 0.0 }
 0x262   :  { %v1252_v59 = vmax.f32 %v910_v51, 0.0  ;;  %v1254_v60 = vmax.f32 %v1103_v52, 0.0 }
 0x263   :  { %v1359_v61 = vpack.c.bf16 %v1251_v55, %v1247_v53  ;;  %v1361_v62 = vpack.c.bf16 %v1253_v56, %v1249_v54 }
 0x264   :  { %v1360_v63 = vpack.c.bf16 %v1252_v59, %v1248_v57  ;;  %v1362_v0 = vpack.c.bf16 %v1254_v60, %v1250_v58  ;;  %v913_v1 = vpop.f32.mrb[20].mxu1  ;;  %v1106_v2 = vpop.f32.mrb[84].mxu0 }
 0x265   :  { %v914_v3 = vadd.f32 %v913_v1, %v4320_v42  ;;  %v1107_v4 = vadd.f32 %v1106_v2, %v4322_v9  ;;  %v915_v5 = vpop.f32.mrb[21].mxu1  ;;  %v1108_v6 = vpop.f32.mrb[85].mxu0 }
 0x266   :  { %v916_v7 = vadd.f32 %v915_v5, %v4324_v43  ;;  %v1109_v8 = vadd.f32 %v1108_v6, %v4326_v44  ;;  %v917_v10 = vpop.f32.mrb[22].mxu1  ;;  %v1110_v11 = vpop.f32.mrb[86].mxu0  ;;  %1727 = vmatprep.mubr.bf16.mxu1 %v1360_v63  ;;  %1888 = vmatprep.mubr.bf16.mxu0 %v1362_v0 }
 0x267   :  { %v918_v12 = vadd.f32 %v917_v10, %v4320_v42  ;;  %v1111_v13 = vadd.f32 %v1110_v11, %v4322_v9  ;;  %v919_v14 = vpop.f32.mrb[23].mxu1  ;;  %v1112_v15 = vpop.f32.mrb[87].mxu0  ;;  %1728 = vmatmul.mubr.bf16.gmra.mrb[80].mxu1 %v1359_v61  ;;  %1889 = vmatmul.mubr.bf16.gmra.mrb[144].mxu0 %v1361_v62  ;;  %v1255_v18 = vmax.f32 %v914_v3, 0.0  ;;  %v1257_v19 = vmax.f32 %v1107_v4, 0.0 }
 0x268   :  { %v920_v16 = vadd.f32 %v919_v14, %v4324_v43  ;;  %v1113_v17 = vadd.f32 %v1112_v15, %v4326_v44  ;;  %v1256_v22 = vmax.f32 %v916_v7, 0.0  ;;  %v1258_v23 = vmax.f32 %v1109_v8, 0.0 }
 0x269   :  { %v1259_v20 = vmax.f32 %v918_v12, 0.0  ;;  %v1261_v21 = vmax.f32 %v1111_v13, 0.0 }
 0x26a   :  { %v1260_v24 = vmax.f32 %v920_v16, 0.0  ;;  %v1262_v25 = vmax.f32 %v1113_v17, 0.0 }
 0x26b   :  { %v1363_v26 = vpack.c.bf16 %v1259_v20, %v1255_v18  ;;  %v1365_v27 = vpack.c.bf16 %v1261_v21, %v1257_v19 }
 0x26c   :  { %v1364_v28 = vpack.c.bf16 %v1260_v24, %v1256_v22  ;;  %v1366_v29 = vpack.c.bf16 %v1262_v25, %v1258_v23  ;;  %v923_v30 = vpop.f32.mrb[24].mxu1  ;;  %v1116_v31 = vpop.f32.mrb[88].mxu0 }
 0x26d   :  { %v924_v32 = vadd.f32 %v923_v30, %v4320_v42  ;;  %v1117_v33 = vadd.f32 %v1116_v31, %v4322_v9  ;;  %v925_v34 = vpop.f32.mrb[25].mxu1  ;;  %v1118_v35 = vpop.f32.mrb[89].mxu0 }
 0x26e   :  { %v926_v36 = vadd.f32 %v925_v34, %v4324_v43  ;;  %v1119_v37 = vadd.f32 %v1118_v35, %v4326_v44  ;;  %v927_v38 = vpop.f32.mrb[26].mxu1  ;;  %v1120_v39 = vpop.f32.mrb[90].mxu0  ;;  %1735 = vmatprep.mubr.bf16.mxu1 %v1364_v28  ;;  %1896 = vmatprep.mubr.bf16.mxu0 %v1366_v29 }
 0x26f   :  { %v928_v40 = vadd.f32 %v927_v38, %v4320_v42  ;;  %v1121_v41 = vadd.f32 %v1120_v39, %v4322_v9  ;;  %v929_v45 = vpop.f32.mrb[27].mxu1  ;;  %v1122_v46 = vpop.f32.mrb[91].mxu0  ;;  %1736 = vmatmul.mubr.bf16.gmra.mrb[84].mxu1 %v1363_v26  ;;  %1897 = vmatmul.mubr.bf16.gmra.mrb[148].mxu0 %v1365_v27  ;;  %v1263_v49 = vmax.f32 %v924_v32, 0.0  ;;  %v1265_v50 = vmax.f32 %v1117_v33, 0.0 }
 0x270   :  { %v930_v47 = vadd.f32 %v929_v45, %v4324_v43  ;;  %v1123_v48 = vadd.f32 %v1122_v46, %v4326_v44  ;;  %v1264_v53 = vmax.f32 %v926_v36, 0.0  ;;  %v1266_v54 = vmax.f32 %v1119_v37, 0.0 }
 0x271   :  { %v1267_v51 = vmax.f32 %v928_v40, 0.0  ;;  %v1269_v52 = vmax.f32 %v1121_v41, 0.0 }
 0x272   :  { %v1268_v55 = vmax.f32 %v930_v47, 0.0  ;;  %v1270_v56 = vmax.f32 %v1123_v48, 0.0 }
 0x273   :  { %v1367_v57 = vpack.c.bf16 %v1267_v51, %v1263_v49  ;;  %v1369_v58 = vpack.c.bf16 %v1269_v52, %v1265_v50 }
 0x274   :  { %v1368_v59 = vpack.c.bf16 %v1268_v55, %v1264_v53  ;;  %v1370_v60 = vpack.c.bf16 %v1270_v56, %v1266_v54  ;;  %v933_v61 = vpop.f32.mrb[28].mxu1  ;;  %v1126_v62 = vpop.f32.mrb[92].mxu0 }
 0x275   :  { %v934_v63 = vadd.f32 %v933_v61, %v4320_v42  ;;  %v1127_v0 = vadd.f32 %v1126_v62, %v4322_v9  ;;  %v935_v1 = vpop.f32.mrb[29].mxu1  ;;  %v1128_v2 = vpop.f32.mrb[93].mxu0 }
 0x276   :  { %v936_v3 = vadd.f32 %v935_v1, %v4324_v43  ;;  %v1129_v4 = vadd.f32 %v1128_v2, %v4326_v44  ;;  %v937_v5 = vpop.f32.mrb[30].mxu1  ;;  %v1130_v6 = vpop.f32.mrb[94].mxu0  ;;  %1743 = vmatprep.mubr.bf16.mxu1 %v1368_v59  ;;  %1904 = vmatprep.mubr.bf16.mxu0 %v1370_v60 }
 0x277   :  { %v938_v7 = vadd.f32 %v937_v5, %v4320_v42  ;;  %v1131_v8 = vadd.f32 %v1130_v6, %v4322_v9  ;;  %v939_v10 = vpop.f32.mrb[31].mxu1  ;;  %v1132_v11 = vpop.f32.mrb[95].mxu0  ;;  %1744 = vmatmul.mubr.bf16.gmra.mrb[88].mxu1 %v1367_v57  ;;  %1905 = vmatmul.mubr.bf16.gmra.mrb[152].mxu0 %v1369_v58  ;;  %v1271_v14 = vmax.f32 %v934_v63, 0.0  ;;  %v1273_v15 = vmax.f32 %v1127_v0, 0.0 }
 0x278   :  { %v940_v12 = vadd.f32 %v939_v10, %v4324_v43  ;;  %v1133_v13 = vadd.f32 %v1132_v11, %v4326_v44  ;;  %v1272_v18 = vmax.f32 %v936_v3, 0.0  ;;  %v1274_v19 = vmax.f32 %v1129_v4, 0.0 }
 0x279   :  { %v1275_v16 = vmax.f32 %v938_v7, 0.0  ;;  %v1277_v17 = vmax.f32 %v1131_v8, 0.0 }
 0x27a   :  { %v1276_v20 = vmax.f32 %v940_v12, 0.0  ;;  %v1278_v21 = vmax.f32 %v1133_v13, 0.0 }
 0x27b   :  { %v1371_v22 = vpack.c.bf16 %v1275_v16, %v1271_v14  ;;  %v1373_v23 = vpack.c.bf16 %v1277_v17, %v1273_v15 }
 0x27c   :  { %v1372_v24 = vpack.c.bf16 %v1276_v20, %v1272_v18  ;;  %v1374_v25 = vpack.c.bf16 %v1278_v21, %v1274_v19  ;;  %v943_v26 = vpop.f32.mrb[32].mxu1  ;;  %v1136_v27 = vpop.f32.mrb[96].mxu0 }
 0x27d   :  { %v944_v28 = vadd.f32 %v943_v26, %v4320_v42  ;;  %v1137_v29 = vadd.f32 %v1136_v27, %v4322_v9  ;;  %v945_v30 = vpop.f32.mrb[33].mxu1  ;;  %v1138_v31 = vpop.f32.mrb[97].mxu0 }
 0x27e   :  { %v946_v32 = vadd.f32 %v945_v30, %v4324_v43  ;;  %v1139_v33 = vadd.f32 %v1138_v31, %v4326_v44  ;;  %v947_v34 = vpop.f32.mrb[34].mxu1  ;;  %v1140_v35 = vpop.f32.mrb[98].mxu0  ;;  %1751 = vmatprep.mubr.bf16.mxu1 %v1372_v24  ;;  %1912 = vmatprep.mubr.bf16.mxu0 %v1374_v25 }
 0x27f   :  { %v948_v36 = vadd.f32 %v947_v34, %v4320_v42  ;;  %v1141_v37 = vadd.f32 %v1140_v35, %v4322_v9  ;;  %v949_v38 = vpop.f32.mrb[35].mxu1  ;;  %v1142_v39 = vpop.f32.mrb[99].mxu0  ;;  %1752 = vmatmul.mubr.bf16.gmra.mrb[92].mxu1 %v1371_v22  ;;  %1913 = vmatmul.mubr.bf16.gmra.mrb[156].mxu0 %v1373_v23  ;;  %v1279_v45 = vmax.f32 %v944_v28, 0.0  ;;  %v1281_v46 = vmax.f32 %v1137_v29, 0.0 }
 0x280   :  { %v950_v40 = vadd.f32 %v949_v38, %v4324_v43  ;;  %v1143_v41 = vadd.f32 %v1142_v39, %v4326_v44  ;;  %v1280_v49 = vmax.f32 %v946_v32, 0.0  ;;  %v1282_v50 = vmax.f32 %v1139_v33, 0.0 }
 0x281   :  { %v1283_v47 = vmax.f32 %v948_v36, 0.0  ;;  %v1285_v48 = vmax.f32 %v1141_v37, 0.0 }
 0x282   :  { %v1284_v51 = vmax.f32 %v950_v40, 0.0  ;;  %v1286_v52 = vmax.f32 %v1143_v41, 0.0 }
 0x283   :  { %v1375_v53 = vpack.c.bf16 %v1283_v47, %v1279_v45  ;;  %v1377_v54 = vpack.c.bf16 %v1285_v48, %v1281_v46 }
 0x284   :  { %v1376_v55 = vpack.c.bf16 %v1284_v51, %v1280_v49  ;;  %v1378_v56 = vpack.c.bf16 %v1286_v52, %v1282_v50  ;;  %v953_v57 = vpop.f32.mrb[36].mxu1  ;;  %v1146_v58 = vpop.f32.mrb[100].mxu0 }
 0x285   :  { %v954_v59 = vadd.f32 %v953_v57, %v4320_v42  ;;  %v1147_v60 = vadd.f32 %v1146_v58, %v4322_v9  ;;  %v955_v61 = vpop.f32.mrb[37].mxu1  ;;  %v1148_v62 = vpop.f32.mrb[101].mxu0 }
 0x286   :  { %v956_v63 = vadd.f32 %v955_v61, %v4324_v43  ;;  %v1149_v0 = vadd.f32 %v1148_v62, %v4326_v44  ;;  %v957_v1 = vpop.f32.mrb[38].mxu1  ;;  %v1150_v2 = vpop.f32.mrb[102].mxu0  ;;  %1759 = vmatprep.mubr.bf16.mxu1 %v1376_v55  ;;  %1920 = vmatprep.mubr.bf16.mxu0 %v1378_v56 }
 0x287   :  { %v958_v3 = vadd.f32 %v957_v1, %v4320_v42  ;;  %v1151_v4 = vadd.f32 %v1150_v2, %v4322_v9  ;;  %v959_v5 = vpop.f32.mrb[39].mxu1  ;;  %v1152_v6 = vpop.f32.mrb[103].mxu0  ;;  %1760 = vmatmul.mubr.bf16.gmra.mrb[96].mxu1 %v1375_v53  ;;  %1921 = vmatmul.mubr.bf16.gmra.mrb[160].mxu0 %v1377_v54  ;;  %v1287_v10 = vmax.f32 %v954_v59, 0.0  ;;  %v1289_v11 = vmax.f32 %v1147_v60, 0.0 }
 0x288   :  { %v960_v7 = vadd.f32 %v959_v5, %v4324_v43  ;;  %v1153_v8 = vadd.f32 %v1152_v6, %v4326_v44  ;;  %v1288_v14 = vmax.f32 %v956_v63, 0.0  ;;  %v1290_v15 = vmax.f32 %v1149_v0, 0.0 }
 0x289   :  { %v1291_v12 = vmax.f32 %v958_v3, 0.0  ;;  %v1293_v13 = vmax.f32 %v1151_v4, 0.0 }
 0x28a   :  { %v1292_v16 = vmax.f32 %v960_v7, 0.0  ;;  %v1294_v17 = vmax.f32 %v1153_v8, 0.0 }
 0x28b   :  { %v1379_v18 = vpack.c.bf16 %v1291_v12, %v1287_v10  ;;  %v1381_v19 = vpack.c.bf16 %v1293_v13, %v1289_v11 }
 0x28c   :  { %v1380_v20 = vpack.c.bf16 %v1292_v16, %v1288_v14  ;;  %v1382_v21 = vpack.c.bf16 %v1294_v17, %v1290_v15  ;;  %v963_v22 = vpop.f32.mrb[40].mxu1  ;;  %v1156_v23 = vpop.f32.mrb[104].mxu0 }
 0x28d   :  { %v964_v24 = vadd.f32 %v963_v22, %v4320_v42  ;;  %v1157_v25 = vadd.f32 %v1156_v23, %v4322_v9  ;;  %v965_v26 = vpop.f32.mrb[41].mxu1  ;;  %v1158_v27 = vpop.f32.mrb[105].mxu0 }
 0x28e   :  { %v966_v28 = vadd.f32 %v965_v26, %v4324_v43  ;;  %v1159_v29 = vadd.f32 %v1158_v27, %v4326_v44  ;;  %v967_v30 = vpop.f32.mrb[42].mxu1  ;;  %v1160_v31 = vpop.f32.mrb[106].mxu0  ;;  %1767 = vmatprep.mubr.bf16.mxu1 %v1380_v20  ;;  %1928 = vmatprep.mubr.bf16.mxu0 %v1382_v21 }
 0x28f   :  { %v968_v32 = vadd.f32 %v967_v30, %v4320_v42  ;;  %v1161_v33 = vadd.f32 %v1160_v31, %v4322_v9  ;;  %v969_v34 = vpop.f32.mrb[43].mxu1  ;;  %v1162_v35 = vpop.f32.mrb[107].mxu0  ;;  %1768 = vmatmul.mubr.bf16.gmra.mrb[100].mxu1 %v1379_v18  ;;  %1929 = vmatmul.mubr.bf16.gmra.mrb[164].mxu0 %v1381_v19  ;;  %v1295_v38 = vmax.f32 %v964_v24, 0.0  ;;  %v1297_v39 = vmax.f32 %v1157_v25, 0.0 }
 0x290   :  { %v970_v36 = vadd.f32 %v969_v34, %v4324_v43  ;;  %v1163_v37 = vadd.f32 %v1162_v35, %v4326_v44  ;;  %v1296_v45 = vmax.f32 %v966_v28, 0.0  ;;  %v1298_v46 = vmax.f32 %v1159_v29, 0.0 }
 0x291   :  { %v1299_v40 = vmax.f32 %v968_v32, 0.0  ;;  %v1301_v41 = vmax.f32 %v1161_v33, 0.0 }
 0x292   :  { %v1300_v47 = vmax.f32 %v970_v36, 0.0  ;;  %v1302_v48 = vmax.f32 %v1163_v37, 0.0 }
 0x293   :  { %v1383_v49 = vpack.c.bf16 %v1299_v40, %v1295_v38  ;;  %v1385_v50 = vpack.c.bf16 %v1301_v41, %v1297_v39 }
 0x294   :  { %v1384_v51 = vpack.c.bf16 %v1300_v47, %v1296_v45  ;;  %v1386_v52 = vpack.c.bf16 %v1302_v48, %v1298_v46  ;;  %v973_v53 = vpop.f32.mrb[44].mxu1  ;;  %v1166_v54 = vpop.f32.mrb[108].mxu0 }
 0x295   :  { %v974_v55 = vadd.f32 %v973_v53, %v4320_v42  ;;  %v1167_v56 = vadd.f32 %v1166_v54, %v4322_v9  ;;  %v975_v57 = vpop.f32.mrb[45].mxu1  ;;  %v1168_v58 = vpop.f32.mrb[109].mxu0 }
 0x296   :  { %v976_v59 = vadd.f32 %v975_v57, %v4324_v43  ;;  %v1169_v60 = vadd.f32 %v1168_v58, %v4326_v44  ;;  %v977_v61 = vpop.f32.mrb[46].mxu1  ;;  %v1170_v62 = vpop.f32.mrb[110].mxu0  ;;  %1775 = vmatprep.mubr.bf16.mxu1 %v1384_v51  ;;  %1936 = vmatprep.mubr.bf16.mxu0 %v1386_v52 }
 0x297   :  { %v978_v63 = vadd.f32 %v977_v61, %v4320_v42  ;;  %v1171_v0 = vadd.f32 %v1170_v62, %v4322_v9  ;;  %v979_v1 = vpop.f32.mrb[47].mxu1  ;;  %v1172_v2 = vpop.f32.mrb[111].mxu0  ;;  %1776 = vmatmul.mubr.bf16.gmra.mrb[104].mxu1 %v1383_v49  ;;  %1937 = vmatmul.mubr.bf16.gmra.mrb[168].mxu0 %v1385_v50  ;;  %v1303_v5 = vmax.f32 %v974_v55, 0.0  ;;  %v1305_v6 = vmax.f32 %v1167_v56, 0.0 }
 0x298   :  { %v980_v3 = vadd.f32 %v979_v1, %v4324_v43  ;;  %v1173_v4 = vadd.f32 %v1172_v2, %v4326_v44  ;;  %v1304_v10 = vmax.f32 %v976_v59, 0.0  ;;  %v1306_v11 = vmax.f32 %v1169_v60, 0.0 }
 0x299   :  { %v1307_v7 = vmax.f32 %v978_v63, 0.0  ;;  %v1309_v8 = vmax.f32 %v1171_v0, 0.0 }
 0x29a   :  { %v1308_v12 = vmax.f32 %v980_v3, 0.0  ;;  %v1310_v13 = vmax.f32 %v1173_v4, 0.0 }
 0x29b   :  { %v1387_v14 = vpack.c.bf16 %v1307_v7, %v1303_v5  ;;  %v1389_v15 = vpack.c.bf16 %v1309_v8, %v1305_v6 }
 0x29c   :  { %v1388_v16 = vpack.c.bf16 %v1308_v12, %v1304_v10  ;;  %v1390_v17 = vpack.c.bf16 %v1310_v13, %v1306_v11  ;;  %v983_v18 = vpop.f32.mrb[48].mxu1  ;;  %v1176_v19 = vpop.f32.mrb[112].mxu0 }
 0x29d   :  { %v984_v20 = vadd.f32 %v983_v18, %v4320_v42  ;;  %v1177_v21 = vadd.f32 %v1176_v19, %v4322_v9  ;;  %v985_v22 = vpop.f32.mrb[49].mxu1  ;;  %v1178_v23 = vpop.f32.mrb[113].mxu0 }
 0x29e   :  { %v986_v24 = vadd.f32 %v985_v22, %v4324_v43  ;;  %v1179_v25 = vadd.f32 %v1178_v23, %v4326_v44  ;;  %v987_v26 = vpop.f32.mrb[50].mxu1  ;;  %v1180_v27 = vpop.f32.mrb[114].mxu0  ;;  %1783 = vmatprep.mubr.bf16.mxu1 %v1388_v16  ;;  %1944 = vmatprep.mubr.bf16.mxu0 %v1390_v17 }
 0x29f   :  { %v988_v28 = vadd.f32 %v987_v26, %v4320_v42  ;;  %v1181_v29 = vadd.f32 %v1180_v27, %v4322_v9  ;;  %v989_v30 = vpop.f32.mrb[51].mxu1  ;;  %v1182_v31 = vpop.f32.mrb[115].mxu0  ;;  %1784 = vmatmul.mubr.bf16.gmra.mrb[108].mxu1 %v1387_v14  ;;  %1945 = vmatmul.mubr.bf16.gmra.mrb[172].mxu0 %v1389_v15  ;;  %v1311_v34 = vmax.f32 %v984_v20, 0.0  ;;  %v1313_v35 = vmax.f32 %v1177_v21, 0.0 }
 0x2a0   :  { %v990_v32 = vadd.f32 %v989_v30, %v4324_v43  ;;  %v1183_v33 = vadd.f32 %v1182_v31, %v4326_v44  ;;  %v1312_v38 = vmax.f32 %v986_v24, 0.0  ;;  %v1314_v39 = vmax.f32 %v1179_v25, 0.0 }
 0x2a1   :  { %v1315_v36 = vmax.f32 %v988_v28, 0.0  ;;  %v1317_v37 = vmax.f32 %v1181_v29, 0.0 }
 0x2a2   :  { %v1316_v40 = vmax.f32 %v990_v32, 0.0  ;;  %v1318_v41 = vmax.f32 %v1183_v33, 0.0 }
 0x2a3   :  { %v1391_v45 = vpack.c.bf16 %v1315_v36, %v1311_v34  ;;  %v1393_v46 = vpack.c.bf16 %v1317_v37, %v1313_v35 }
 0x2a4   :  { %v1392_v47 = vpack.c.bf16 %v1316_v40, %v1312_v38  ;;  %v1394_v48 = vpack.c.bf16 %v1318_v41, %v1314_v39  ;;  %v993_v49 = vpop.f32.mrb[52].mxu1  ;;  %v1186_v50 = vpop.f32.mrb[116].mxu0 }
 0x2a5   :  { %v994_v51 = vadd.f32 %v993_v49, %v4320_v42  ;;  %v1187_v52 = vadd.f32 %v1186_v50, %v4322_v9  ;;  %v995_v53 = vpop.f32.mrb[53].mxu1  ;;  %v1188_v54 = vpop.f32.mrb[117].mxu0 }
 0x2a6   :  { %v996_v55 = vadd.f32 %v995_v53, %v4324_v43  ;;  %v1189_v56 = vadd.f32 %v1188_v54, %v4326_v44  ;;  %v997_v57 = vpop.f32.mrb[54].mxu1  ;;  %v1190_v58 = vpop.f32.mrb[118].mxu0  ;;  %1791 = vmatprep.mubr.bf16.mxu1 %v1392_v47  ;;  %1952 = vmatprep.mubr.bf16.mxu0 %v1394_v48 }
 0x2a7   :  { %v998_v59 = vadd.f32 %v997_v57, %v4320_v42  ;;  %v1191_v60 = vadd.f32 %v1190_v58, %v4322_v9  ;;  %v999_v61 = vpop.f32.mrb[55].mxu1  ;;  %v1192_v62 = vpop.f32.mrb[119].mxu0  ;;  %1792 = vmatmul.mubr.bf16.gmra.mrb[112].mxu1 %v1391_v45  ;;  %1953 = vmatmul.mubr.bf16.gmra.mrb[176].mxu0 %v1393_v46  ;;  %v1319_v1 = vmax.f32 %v994_v51, 0.0  ;;  %v1321_v2 = vmax.f32 %v1187_v52, 0.0 }
 0x2a8   :  { %v1000_v63 = vadd.f32 %v999_v61, %v4324_v43  ;;  %v1193_v0 = vadd.f32 %v1192_v62, %v4326_v44  ;;  %v1320_v5 = vmax.f32 %v996_v55, 0.0  ;;  %v1322_v6 = vmax.f32 %v1189_v56, 0.0 }
 0x2a9   :  { %v1323_v3 = vmax.f32 %v998_v59, 0.0  ;;  %v1325_v4 = vmax.f32 %v1191_v60, 0.0 }
 0x2aa   :  { %v1324_v7 = vmax.f32 %v1000_v63, 0.0  ;;  %v1326_v8 = vmax.f32 %v1193_v0, 0.0 }
 0x2ab   :  { %v1395_v10 = vpack.c.bf16 %v1323_v3, %v1319_v1  ;;  %v1397_v11 = vpack.c.bf16 %v1325_v4, %v1321_v2 }
 0x2ac   :  { %v1396_v12 = vpack.c.bf16 %v1324_v7, %v1320_v5  ;;  %v1398_v13 = vpack.c.bf16 %v1326_v8, %v1322_v6  ;;  %v1003_v14 = vpop.f32.mrb[56].mxu1  ;;  %v1196_v15 = vpop.f32.mrb[120].mxu0  ;;  %v4456_v7 = vld [vmem:[#allocation2 + $0x4] ss:$8 sps:$4 sm:$0xff]  }
 0x2ad   :  { %v1004_v16 = vadd.f32 %v1003_v14, %v4320_v42  ;;  %v1197_v17 = vadd.f32 %v1196_v15, %v4322_v9  ;;  %v1005_v18 = vpop.f32.mrb[57].mxu1  ;;  %v1198_v19 = vpop.f32.mrb[121].mxu0 }
 0x2ae   :  { %v1006_v20 = vadd.f32 %v1005_v18, %v4324_v43  ;;  %v1199_v21 = vadd.f32 %v1198_v19, %v4326_v44  ;;  %v1007_v22 = vpop.f32.mrb[58].mxu1  ;;  %v1200_v23 = vpop.f32.mrb[122].mxu0  ;;  %1799 = vmatprep.mubr.bf16.mxu1 %v1396_v12  ;;  %1960 = vmatprep.mubr.bf16.mxu0 %v1398_v13 }
 0x2af   :  { %v1008_v24 = vadd.f32 %v1007_v22, %v4320_v42  ;;  %v1201_v25 = vadd.f32 %v1200_v23, %v4322_v9  ;;  %v1009_v26 = vpop.f32.mrb[59].mxu1  ;;  %v1202_v27 = vpop.f32.mrb[123].mxu0  ;;  %1800 = vmatmul.mubr.bf16.gmra.mrb[116].mxu1 %v1395_v10  ;;  %1961 = vmatmul.mubr.bf16.gmra.mrb[180].mxu0 %v1397_v11  ;;  %v1327_v30 = vmax.f32 %v1004_v16, 0.0  ;;  %v1329_v31 = vmax.f32 %v1197_v17, 0.0 }
 0x2b0   :  { %v1010_v28 = vadd.f32 %v1009_v26, %v4324_v43  ;;  %v1203_v29 = vadd.f32 %v1202_v27, %v4326_v44  ;;  %v1328_v34 = vmax.f32 %v1006_v20, 0.0  ;;  %v1330_v35 = vmax.f32 %v1199_v21, 0.0 }
 0x2b1   :  { %v1331_v32 = vmax.f32 %v1008_v24, 0.0  ;;  %v1333_v33 = vmax.f32 %v1201_v25, 0.0 }
 0x2b2   :  { %v1332_v36 = vmax.f32 %v1010_v28, 0.0  ;;  %v1334_v37 = vmax.f32 %v1203_v29, 0.0 }
 0x2b3   :  { %v1399_v38 = vpack.c.bf16 %v1331_v32, %v1327_v30  ;;  %v1401_v39 = vpack.c.bf16 %v1333_v33, %v1329_v31 }
 0x2b4   :  { %v1400_v40 = vpack.c.bf16 %v1332_v36, %v1328_v34  ;;  %v1402_v41 = vpack.c.bf16 %v1334_v37, %v1330_v35  ;;  %v1013_v45 = vpop.f32.mrb[60].mxu1  ;;  %v1206_v46 = vpop.f32.mrb[124].mxu0 }
 0x2b5   :  { %v1014_v47 = vadd.f32 %v1013_v45, %v4320_v42  ;;  %v1207_v48 = vadd.f32 %v1206_v46, %v4322_v9  ;;  %v1015_v49 = vpop.f32.mrb[61].mxu1  ;;  %v1208_v50 = vpop.f32.mrb[125].mxu0 }
 0x2b6   :  { %v1016_v51 = vadd.f32 %v1015_v49, %v4324_v43  ;;  %v1209_v52 = vadd.f32 %v1208_v50, %v4326_v44  ;;  %v1017_v53 = vpop.f32.mrb[62].mxu1  ;;  %v1210_v54 = vpop.f32.mrb[126].mxu0  ;;  %1807 = vmatprep.mubr.bf16.mxu1 %v1400_v40  ;;  %1968 = vmatprep.mubr.bf16.mxu0 %v1402_v41 }
 0x2b7   :  { %v1018_v55 = vadd.f32 %v1017_v53, %v4320_v42  ;;  %v1211_v56 = vadd.f32 %v1210_v54, %v4322_v9  ;;  %v1019_v57 = vpop.f32.mrb[63].mxu1  ;;  %v1212_v58 = vpop.f32.mrb[127].mxu0  ;;  %1808 = vmatmul.mubr.bf16.gmra.mrb[120].mxu1 %v1399_v38  ;;  %1969 = vmatmul.mubr.bf16.gmra.mrb[184].mxu0 %v1401_v39  ;;  %v1335_v61 = vmax.f32 %v1014_v47, 0.0  ;;  %v1337_v62 = vmax.f32 %v1207_v48, 0.0 }
 0x2b8   :  { %v1020_v59 = vadd.f32 %v1019_v57, %v4324_v43  ;;  %v1213_v60 = vadd.f32 %v1212_v58, %v4326_v44  ;;  %v1336_v1 = vmax.f32 %v1016_v51, 0.0  ;;  %v1338_v2 = vmax.f32 %v1209_v52, 0.0 }
 0x2b9   :  { %v1339_v63 = vmax.f32 %v1018_v55, 0.0  ;;  %v1341_v0 = vmax.f32 %v1211_v56, 0.0 }
 0x2ba   :  { %v1340_v3 = vmax.f32 %v1020_v59, 0.0  ;;  %v1342_v4 = vmax.f32 %v1213_v60, 0.0 }
 0x2bb   :  { %v1403_v5 = vpack.c.bf16 %v1339_v63, %v1335_v61  ;;  %v1405_v42 = vpack.c.bf16 %v1341_v0, %v1337_v62 }
 0x2bc   :  { %v1404_v6 = vpack.c.bf16 %v1340_v3, %v1336_v1  ;;  %v1406_v9 = vpack.c.bf16 %v1342_v4, %v1338_v2 }
 0x2be   :  { %1815 = vmatprep.mubr.bf16.mxu1 %v1404_v6  ;;  %1976 = vmatprep.mubr.bf16.mxu0 %v1406_v9 }
 0x2bf   :  { %1816 = vmatmul.mubr.bf16.gmra.mrb[124].mxu1 %v1403_v5  ;;  %1977 = vmatmul.mubr.bf16.gmra.mrb[188].mxu0 %v1405_v42 }
 0x2c0   :  { %2040 = vmatprep.mubr.bf16.mxu1 %v4456_v7 }
 0x31a   :  { %v3205_v43 = vpop.f32.mrb[64].mxu1  ;;  %v3317_v44 = vpop.f32.mrb[128].mxu0 }
 0x31b   :  { %v3206_v8 = vpop.f32.mrb[65].mxu1  ;;  %v3318_v10 = vpop.f32.mrb[129].mxu0 }
 0x31c   :  { %v3207_v11 = vadd.f32 %v3206_v8, %v3205_v43  ;;  %v3319_v12 = vadd.f32 %v3318_v10, %v3317_v44  ;;  %v3208_v13 = vpop.f32.mrb[66].mxu1  ;;  %v3320_v14 = vpop.f32.mrb[130].mxu0 }
 0x31d   :  { %v3209_v15 = vpop.f32.mrb[67].mxu1  ;;  %v3321_v16 = vpop.f32.mrb[131].mxu0 }
 0x31e   :  { %v4459_v17 = vadd.f32 %v3319_v12, %v3207_v11  ;;  %v3210_v18 = vadd.f32 %v3209_v15, %v3208_v13  ;;  %v3322_v19 = vadd.f32 %v3321_v16, %v3320_v14 }
 0x320   :  { %v4461_v20 = vadd.f32 %v3322_v19, %v3210_v18 }
 0x322   :  { %v1985_v21 = vpack.c.bf16 %v4461_v20, %v4459_v17  ;;  %v3211_v22 = vpop.f32.mrb[68].mxu1  ;;  %v3323_v23 = vpop.f32.mrb[132].mxu0 }
 0x323   :  { %v3212_v24 = vpop.f32.mrb[69].mxu1  ;;  %v3324_v25 = vpop.f32.mrb[133].mxu0 }
 0x324   :  { %v3213_v26 = vadd.f32 %v3212_v24, %v3211_v22  ;;  %v3325_v27 = vadd.f32 %v3324_v25, %v3323_v23  ;;  %v3214_v28 = vpop.f32.mrb[70].mxu1  ;;  %v3326_v29 = vpop.f32.mrb[134].mxu0 }
 0x325   :  { %v3215_v30 = vpop.f32.mrb[71].mxu1  ;;  %v3327_v31 = vpop.f32.mrb[135].mxu0 }
 0x326   :  { %v4465_v32 = vadd.f32 %v3325_v27, %v3213_v26  ;;  %v3216_v33 = vadd.f32 %v3215_v30, %v3214_v28  ;;  %v3328_v34 = vadd.f32 %v3327_v31, %v3326_v29 }
 0x328   :  { %v4467_v35 = vadd.f32 %v3328_v34, %v3216_v33 }
 0x32a   :  { %v1986_v36 = vpack.c.bf16 %v4467_v35, %v4465_v32  ;;  %v3217_v37 = vpop.f32.mrb[72].mxu1  ;;  %v3329_v38 = vpop.f32.mrb[136].mxu0 }
 0x32b   :  { %v3218_v39 = vpop.f32.mrb[73].mxu1  ;;  %v3330_v40 = vpop.f32.mrb[137].mxu0 }
 0x32c   :  { %v3219_v41 = vadd.f32 %v3218_v39, %v3217_v37  ;;  %v3331_v45 = vadd.f32 %v3330_v40, %v3329_v38  ;;  %v3220_v46 = vpop.f32.mrb[74].mxu1  ;;  %v3332_v47 = vpop.f32.mrb[138].mxu0 }
 0x32d   :  { %v3221_v48 = vpop.f32.mrb[75].mxu1  ;;  %v3333_v49 = vpop.f32.mrb[139].mxu0 }
 0x32e   :  { %v4471_v50 = vadd.f32 %v3331_v45, %v3219_v41  ;;  %v3222_v51 = vadd.f32 %v3221_v48, %v3220_v46  ;;  %v3334_v52 = vadd.f32 %v3333_v49, %v3332_v47 }
 0x330   :  { %v4473_v53 = vadd.f32 %v3334_v52, %v3222_v51 }
 0x332   :  { %v1987_v54 = vpack.c.bf16 %v4473_v53, %v4471_v50  ;;  %v3223_v55 = vpop.f32.mrb[76].mxu1  ;;  %v3335_v56 = vpop.f32.mrb[140].mxu0 }
 0x333   :  { %v3224_v57 = vpop.f32.mrb[77].mxu1  ;;  %v3336_v58 = vpop.f32.mrb[141].mxu0 }
 0x334   :  { %v3225_v59 = vadd.f32 %v3224_v57, %v3223_v55  ;;  %v3337_v60 = vadd.f32 %v3336_v58, %v3335_v56  ;;  %v3226_v61 = vpop.f32.mrb[78].mxu1  ;;  %v3338_v62 = vpop.f32.mrb[142].mxu0 }
 0x335   :  { %v3227_v63 = vpop.f32.mrb[79].mxu1  ;;  %v3339_v0 = vpop.f32.mrb[143].mxu0 }
 0x336   :  { %v4477_v1 = vadd.f32 %v3337_v60, %v3225_v59  ;;  %v3228_v2 = vadd.f32 %v3227_v63, %v3226_v61  ;;  %v3340_v3 = vadd.f32 %v3339_v0, %v3338_v62 }
 0x338   :  { %v4479_v4 = vadd.f32 %v3340_v3, %v3228_v2 }
 0x33a   :  { %v1988_v5 = vpack.c.bf16 %v4479_v4, %v4477_v1  ;;  %v3229_v42 = vpop.f32.mrb[80].mxu1  ;;  %v3341_v6 = vpop.f32.mrb[144].mxu0 }
 0x33b   :  { %v3230_v9 = vpop.f32.mrb[81].mxu1  ;;  %v3342_v43 = vpop.f32.mrb[145].mxu0 }
 0x33c   :  { %v3231_v44 = vadd.f32 %v3230_v9, %v3229_v42  ;;  %v3343_v8 = vadd.f32 %v3342_v43, %v3341_v6  ;;  %v3232_v10 = vpop.f32.mrb[82].mxu1  ;;  %v3344_v11 = vpop.f32.mrb[146].mxu0 }
 0x33d   :  { %v3233_v12 = vpop.f32.mrb[83].mxu1  ;;  %v3345_v13 = vpop.f32.mrb[147].mxu0 }
 0x33e   :  { %v4483_v14 = vadd.f32 %v3343_v8, %v3231_v44  ;;  %v3234_v15 = vadd.f32 %v3233_v12, %v3232_v10  ;;  %v3346_v16 = vadd.f32 %v3345_v13, %v3344_v11 }
 0x340   :  { %v4485_v18 = vadd.f32 %v3346_v16, %v3234_v15 }
 0x342   :  { %v1989_v19 = vpack.c.bf16 %v4485_v18, %v4483_v14  ;;  %v3235_v22 = vpop.f32.mrb[84].mxu1  ;;  %v3347_v23 = vpop.f32.mrb[148].mxu0 }
 0x343   :  { %v3236_v24 = vpop.f32.mrb[85].mxu1  ;;  %v3348_v25 = vpop.f32.mrb[149].mxu0 }
 0x344   :  { %v3237_v26 = vadd.f32 %v3236_v24, %v3235_v22  ;;  %v3349_v27 = vadd.f32 %v3348_v25, %v3347_v23  ;;  %v3238_v28 = vpop.f32.mrb[86].mxu1  ;;  %v3350_v29 = vpop.f32.mrb[150].mxu0 }
 0x345   :  { %v3239_v30 = vpop.f32.mrb[87].mxu1  ;;  %v3351_v31 = vpop.f32.mrb[151].mxu0 }
 0x346   :  { %v4489_v33 = vadd.f32 %v3349_v27, %v3237_v26  ;;  %v3240_v34 = vadd.f32 %v3239_v30, %v3238_v28  ;;  %v3352_v37 = vadd.f32 %v3351_v31, %v3350_v29 }
 0x348   :  { %v4491_v38 = vadd.f32 %v3352_v37, %v3240_v34 }
 0x34a   :  { %v1990_v39 = vpack.c.bf16 %v4491_v38, %v4489_v33  ;;  %v3241_v40 = vpop.f32.mrb[88].mxu1  ;;  %v3353_v41 = vpop.f32.mrb[152].mxu0 }
 0x34b   :  { %v3242_v45 = vpop.f32.mrb[89].mxu1  ;;  %v3354_v46 = vpop.f32.mrb[153].mxu0 }
 0x34c   :  { %v3243_v47 = vadd.f32 %v3242_v45, %v3241_v40  ;;  %v3355_v48 = vadd.f32 %v3354_v46, %v3353_v41  ;;  %v3244_v49 = vpop.f32.mrb[90].mxu1  ;;  %v3356_v51 = vpop.f32.mrb[154].mxu0 }
 0x34d   :  { %v3245_v52 = vpop.f32.mrb[91].mxu1  ;;  %v3357_v55 = vpop.f32.mrb[155].mxu0 }
 0x34e   :  { %v4495_v56 = vadd.f32 %v3355_v48, %v3243_v47  ;;  %v3246_v57 = vadd.f32 %v3245_v52, %v3244_v49  ;;  %v3358_v58 = vadd.f32 %v3357_v55, %v3356_v51 }
 0x350   :  { %v4497_v59 = vadd.f32 %v3358_v58, %v3246_v57 }
 0x352   :  { %v1991_v60 = vpack.c.bf16 %v4497_v59, %v4495_v56  ;;  %v3247_v61 = vpop.f32.mrb[92].mxu1  ;;  %v3359_v62 = vpop.f32.mrb[156].mxu0  ;;  %v4534_v56 = vld [vmem:[#allocation2 + $0x14] ss:$8 sps:$4 sm:$0xff]   ;;  %v4537_v59 = vld [vmem:[#allocation2 + $0x10] ss:$8 sps:$4 sm:$0xff]  }
 0x353   :  { %v3248_v63 = vpop.f32.mrb[93].mxu1  ;;  %v3360_v0 = vpop.f32.mrb[157].mxu0 }
 0x354   :  { %v3249_v2 = vadd.f32 %v3248_v63, %v3247_v61  ;;  %v3361_v3 = vadd.f32 %v3360_v0, %v3359_v62  ;;  %v3250_v42 = vpop.f32.mrb[94].mxu1  ;;  %v3362_v6 = vpop.f32.mrb[158].mxu0 }
 0x355   :  { %v3251_v9 = vpop.f32.mrb[95].mxu1  ;;  %v3363_v43 = vpop.f32.mrb[159].mxu0 }
 0x356   :  { %v4501_v44 = vadd.f32 %v3361_v3, %v3249_v2  ;;  %v3252_v8 = vadd.f32 %v3251_v9, %v3250_v42  ;;  %v3364_v10 = vadd.f32 %v3363_v43, %v3362_v6 }
 0x358   :  { %v4503_v11 = vadd.f32 %v3364_v10, %v3252_v8 }
 0x35a   :  { %v1992_v12 = vpack.c.bf16 %v4503_v11, %v4501_v44  ;;  %v3253_v13 = vpop.f32.mrb[96].mxu1  ;;  %v3365_v15 = vpop.f32.mrb[160].mxu0  ;;  %v4543_v44 = vld [vmem:[#allocation2 + $0x20] ss:$8 sps:$4 sm:$0xff]   ;;  %v4546_v11 = vld [vmem:[#allocation2 + $0x34] ss:$8 sps:$4 sm:$0xff]  }
 0x35b   :  { %v3254_v16 = vpop.f32.mrb[97].mxu1  ;;  %v3366_v22 = vpop.f32.mrb[161].mxu0 }
 0x35c   :  { %v3255_v23 = vadd.f32 %v3254_v16, %v3253_v13  ;;  %v3367_v24 = vadd.f32 %v3366_v22, %v3365_v15  ;;  %v3256_v25 = vpop.f32.mrb[98].mxu1  ;;  %v3368_v26 = vpop.f32.mrb[162].mxu0 }
 0x35d   :  { %v3257_v27 = vpop.f32.mrb[99].mxu1  ;;  %v3369_v28 = vpop.f32.mrb[163].mxu0 }
 0x35e   :  { %v1923_v29 = vadd.f32 %v3367_v24, %v3255_v23  ;;  %v3258_v30 = vadd.f32 %v3257_v27, %v3256_v25  ;;  %v3370_v31 = vadd.f32 %v3369_v28, %v3368_v26 }
 0x360   :  { %v1926_v34 = vadd.f32 %v3370_v31, %v3258_v30 }
 0x362   :  { %v3259_v37 = vpop.f32.mrb[100].mxu1  ;;  %v3371_v40 = vpop.f32.mrb[164].mxu0  ;;  %v1993_v41 = vpack.c.bf16 %v1926_v34, %v1923_v29 }
 0x363   :  { %v3260_v45 = vpop.f32.mrb[101].mxu1  ;;  %v3372_v46 = vpop.f32.mrb[165].mxu0 }
 0x364   :  { %v3261_v47 = vadd.f32 %v3260_v45, %v3259_v37  ;;  %v3373_v48 = vadd.f32 %v3372_v46, %v3371_v40  ;;  %v3262_v49 = vpop.f32.mrb[102].mxu1  ;;  %v3374_v51 = vpop.f32.mrb[166].mxu0  ;;  %3413 = vmatprep.subr.bf16.mxu1 %v1993_v41 }
 0x365   :  { %v3263_v52 = vpop.f32.mrb[103].mxu1  ;;  %v3375_v55 = vpop.f32.mrb[167].mxu0  ;;  %3414 = vmatpush3.bf16.msra.mxu1 %v1985_v21 }
 0x366   :  { %v1931_v57 = vadd.f32 %v3373_v48, %v3261_v47  ;;  %v3264_v58 = vadd.f32 %v3263_v52, %v3262_v49  ;;  %v3376_v61 = vadd.f32 %v3375_v55, %v3374_v51 }
 0x368   :  { %v1934_v62 = vadd.f32 %v3376_v61, %v3264_v58 }
 0x36a   :  { %v3265_v63 = vpop.f32.mrb[104].mxu1  ;;  %v3377_v0 = vpop.f32.mrb[168].mxu0  ;;  %v1994_v2 = vpack.c.bf16 %v1934_v62, %v1931_v57 }
 0x36b   :  { %v3266_v3 = vpop.f32.mrb[105].mxu1  ;;  %v3378_v42 = vpop.f32.mrb[169].mxu0 }
 0x36c   :  { %v3267_v6 = vadd.f32 %v3266_v3, %v3265_v63  ;;  %v3379_v9 = vadd.f32 %v3378_v42, %v3377_v0  ;;  %v3268_v43 = vpop.f32.mrb[106].mxu1  ;;  %v3380_v8 = vpop.f32.mrb[170].mxu0  ;;  %3415 = vmatprep.subr.bf16.mxu1 %v1994_v2 }
 0x36d   :  { %v3269_v10 = vpop.f32.mrb[107].mxu1  ;;  %v3381_v13 = vpop.f32.mrb[171].mxu0  ;;  %3416 = vmatpush3.bf16.msra.mxu1 %v1986_v36 }
 0x36e   :  { %v1939_v17 = vadd.f32 %v3379_v9, %v3267_v6  ;;  %v3270_v20 = vadd.f32 %v3269_v10, %v3268_v43  ;;  %v3382_v21 = vadd.f32 %v3381_v13, %v3380_v8 }
 0x370   :  { %v1942_v15 = vadd.f32 %v3382_v21, %v3270_v20 }
 0x372   :  { %v3271_v16 = vpop.f32.mrb[108].mxu1  ;;  %v3383_v22 = vpop.f32.mrb[172].mxu0  ;;  %v1995_v23 = vpack.c.bf16 %v1942_v15, %v1939_v17 }
 0x373   :  { %v3272_v24 = vpop.f32.mrb[109].mxu1  ;;  %v3384_v25 = vpop.f32.mrb[173].mxu0 }
 0x374   :  { %v3273_v26 = vadd.f32 %v3272_v24, %v3271_v16  ;;  %v3385_v27 = vadd.f32 %v3384_v25, %v3383_v22  ;;  %v3274_v28 = vpop.f32.mrb[110].mxu1  ;;  %v3386_v29 = vpop.f32.mrb[174].mxu0  ;;  %3417 = vmatprep.subr.bf16.mxu1 %v1995_v23 }
 0x375   :  { %v3275_v30 = vpop.f32.mrb[111].mxu1  ;;  %v3387_v31 = vpop.f32.mrb[175].mxu0  ;;  %3418 = vmatpush3.bf16.msra.mxu1 %v1987_v54 }
 0x376   :  { %v1947_v32 = vadd.f32 %v3385_v27, %v3273_v26  ;;  %v3276_v35 = vadd.f32 %v3275_v30, %v3274_v28  ;;  %v3388_v36 = vadd.f32 %v3387_v31, %v3386_v29 }
 0x378   :  { %v1950_v34 = vadd.f32 %v3388_v36, %v3276_v35 }
 0x37a   :  { %v3277_v37 = vpop.f32.mrb[112].mxu1  ;;  %v3389_v40 = vpop.f32.mrb[176].mxu0  ;;  %v1996_v41 = vpack.c.bf16 %v1950_v34, %v1947_v32 }
 0x37b   :  { %v3278_v45 = vpop.f32.mrb[113].mxu1  ;;  %v3390_v46 = vpop.f32.mrb[177].mxu0 }
 0x37c   :  { %v3279_v47 = vadd.f32 %v3278_v45, %v3277_v37  ;;  %v3391_v48 = vadd.f32 %v3390_v46, %v3389_v40  ;;  %v3280_v49 = vpop.f32.mrb[114].mxu1  ;;  %v3392_v51 = vpop.f32.mrb[178].mxu0  ;;  %3419 = vmatprep.subr.bf16.mxu1 %v1996_v41  ;;  %v3938_v45 = vld [vmem:[#allocation9] sm:$0xff]   ;;  %v3939_v46 = vld [vmem:[#allocation9 + $0x8] sm:$0xff]  }
 0x37d   :  { %v3281_v52 = vpop.f32.mrb[115].mxu1  ;;  %v3393_v55 = vpop.f32.mrb[179].mxu0  ;;  %3420 = vmatpush3.bf16.msra.mxu1 %v1988_v5  ;;  %3685 = vmatprep.subr.bf16.mxu0 %v3938_v45 }
 0x37e   :  { %v1955_v50 = vadd.f32 %v3391_v48, %v3279_v47  ;;  %v3282_v53 = vadd.f32 %v3281_v52, %v3280_v49  ;;  %v3394_v54 = vadd.f32 %v3393_v55, %v3392_v51  ;;  %3686 = vmatpush3.bf16.msra.mxu0 %v3938_v45  ;;  %v3940_v48 = vld [vmem:[#allocation9 + $0x10] sm:$0xff]   ;;  %v4531_v49 = vld [vmem:[#allocation2] ss:$8 sps:$4 sm:$0xff]   ;;  %v4552_v51 = vld [vmem:[#allocation2 + $0x44] ss:$8 sps:$4 sm:$0xff]  }
 0x37f   :  { %3687 = vmatprep.subr.bf16.mxu0 %v3939_v46  ;;  %v4555_v52 = vld [vmem:[#allocation2 + $0x40] ss:$8 sps:$4 sm:$0xff]   ;;  %v4558_v55 = vld [vmem:[#allocation2 + $0x54] ss:$8 sps:$4 sm:$0xff]  }
 0x380   :  { %v1958_v57 = vadd.f32 %v3394_v54, %v3282_v53  ;;  %v4564_v53 = vld [vmem:[#allocation2 + $0x64] ss:$8 sps:$4 sm:$0xff]   ;;  %v4567_v54 = vld [vmem:[#allocation2 + $0x60] ss:$8 sps:$4 sm:$0xff]  }
 0x382   :  { %v3283_v58 = vpop.f32.mrb[116].mxu1  ;;  %v3395_v61 = vpop.f32.mrb[180].mxu0  ;;  %v1997_v62 = vpack.c.bf16 %v1958_v57, %v1955_v50  ;;  %3688 = vmatpush3.bf16.msra.mxu0 %v3939_v46  ;;  %v4561_v50 = vld [vmem:[#allocation2 + $0x50] ss:$8 sps:$4 sm:$0xff]   ;;  %v4570_v57 = vld [vmem:[#allocation2 + $0x74] ss:$8 sps:$4 sm:$0xff]  }
 0x383   :  { %v3284_v63 = vpop.f32.mrb[117].mxu1  ;;  %v3396_v0 = vpop.f32.mrb[181].mxu0  ;;  %3689 = vmatprep.subr.bf16.mxu0 %v3940_v48 }
 0x384   :  { %v3285_v2 = vadd.f32 %v3284_v63, %v3283_v58  ;;  %v3397_v3 = vadd.f32 %v3396_v0, %v3395_v61  ;;  %v3286_v42 = vpop.f32.mrb[118].mxu1  ;;  %v3398_v6 = vpop.f32.mrb[182].mxu0  ;;  %3421 = vmatprep.subr.bf16.mxu1 %v1997_v62  ;;  %v4573_v58 = vld [vmem:[#allocation2 + $0x70] ss:$8 sps:$4 sm:$0xff]   ;;  %v4576_v61 = vld [vmem:[#allocation2 + $0x84] ss:$8 sps:$4 sm:$0xff]  }
 0x385   :  { %v3287_v9 = vpop.f32.mrb[119].mxu1  ;;  %v3399_v43 = vpop.f32.mrb[183].mxu0  ;;  %3422 = vmatpush3.bf16.msra.mxu1 %v1989_v19  ;;  %v4579_v62 = vld [vmem:[#allocation2 + $0x80] ss:$8 sps:$4 sm:$0xff]   ;;  %v4582_v63 = vld [vmem:[#allocation2 + $0x94] ss:$8 sps:$4 sm:$0xff]  }
 0x386   :  { %v1963_v1 = vadd.f32 %v3397_v3, %v3285_v2  ;;  %v3288_v4 = vadd.f32 %v3287_v9, %v3286_v42  ;;  %v3400_v5 = vadd.f32 %v3399_v43, %v3398_v6  ;;  %3690 = vmatpush3.bf16.msra.mxu0 %v3940_v48  ;;  %v4585_v0 = vld [vmem:[#allocation2 + $0x90] ss:$8 sps:$4 sm:$0xff]   ;;  %v4588_v2 = vld [vmem:[#allocation2 + $0xa4] ss:$8 sps:$4 sm:$0xff]   ;;  %v4591_v3 = vld [vmem:[#allocation2 + $0xa0] ss:$8 sps:$4 sm:$0xff]  }
 0x387   :  { %v4594_v42 = vld [vmem:[#allocation2 + $0xb4] ss:$8 sps:$4 sm:$0xff]   ;;  %v3942_v9 = vld [vmem:[#allocation9 + $0x20] sm:$0xff]   ;;  %v4597_v43 = vld [vmem:[#allocation2 + $0xb0] ss:$8 sps:$4 sm:$0xff]  }
 0x388   :  { %v1966_v8 = vadd.f32 %v3400_v5, %v3288_v4  ;;  %v3941_v6 = vld [vmem:[#allocation9 + $0x18] sm:$0xff]   ;;  %v3943_v4 = vld [vmem:[#allocation9 + $0x28] sm:$0xff]   ;;  %v3944_v5 = vld [vmem:[#allocation9 + $0x30] sm:$0xff]  }
 0x389   :  { %3691 = vmatprep.subr.bf16.mxu0 %v3941_v6 }
 0x38a   :  { %v3289_v10 = vpop.f32.mrb[120].mxu1  ;;  %v3401_v13 = vpop.f32.mrb[184].mxu0  ;;  %v1998_v17 = vpack.c.bf16 %v1966_v8, %v1963_v1  ;;  %3692 = vmatpush3.bf16.msra.mxu0 %v3941_v6  ;;  %v4600_v1 = vld [vmem:[#allocation2 + $0xc4] ss:$8 sps:$4 sm:$0xff]   ;;  %v4603_v8 = vld [vmem:[#allocation2 + $0xc0] ss:$8 sps:$4 sm:$0xff]  }
 0x38b   :  { %v3290_v20 = vpop.f32.mrb[121].mxu1  ;;  %v3402_v21 = vpop.f32.mrb[185].mxu0  ;;  %3693 = vmatprep.subr.bf16.mxu0 %v3942_v9 }
 0x38c   :  { %v3291_v15 = vadd.f32 %v3290_v20, %v3289_v10  ;;  %v3403_v16 = vadd.f32 %v3402_v21, %v3401_v13  ;;  %v3292_v22 = vpop.f32.mrb[122].mxu1  ;;  %v3404_v23 = vpop.f32.mrb[186].mxu0  ;;  %3423 = vmatprep.subr.bf16.mxu1 %v1998_v17  ;;  %v4606_v10 = vld [vmem:[#allocation2 + $0xd4] ss:$8 sps:$4 sm:$0xff]   ;;  %v4609_v17 = vld [vmem:[#allocation2 + $0xd0] ss:$8 sps:$4 sm:$0xff]  }
 0x38d   :  { %v3293_v24 = vpop.f32.mrb[123].mxu1  ;;  %v3405_v25 = vpop.f32.mrb[187].mxu0  ;;  %3424 = vmatpush3.bf16.msra.mxu1 %v1990_v39  ;;  %v3945_v13 = vld [vmem:[#allocation9 + $0x38] sm:$0xff]   ;;  %v4612_v20 = vld [vmem:[#allocation2 + $0xe4] ss:$8 sps:$4 sm:$0xff]  }
 0x38e   :  { %v1971_v14 = vadd.f32 %v3403_v16, %v3291_v15  ;;  %v3294_v18 = vadd.f32 %v3293_v24, %v3292_v22  ;;  %v3406_v19 = vadd.f32 %v3405_v25, %v3404_v23  ;;  %3694 = vmatpush3.bf16.msra.mxu0 %v3942_v9  ;;  %v4615_v21 = vld [vmem:[#allocation2 + $0xe0] ss:$8 sps:$4 sm:$0xff]   ;;  %v4618_v15 = vld [vmem:[#allocation2 + $0xf4] ss:$8 sps:$4 sm:$0xff]   ;;  %v4621_v16 = vld [vmem:[#allocation2 + $0xf0] ss:$8 sps:$4 sm:$0xff]  }
 0x38f   :  { %3695 = vmatprep.subr.bf16.mxu0 %v3943_v4  ;;  %v4628_v23 = vld [vmem:[%s4868_s5] ss:$0 sm:$0xff] }
 0x390   :  { %v1974_v26 = vadd.f32 %v3406_v19, %v3294_v18 }
 0x392   :  { %v3295_v27 = vpop.f32.mrb[124].mxu1  ;;  %v3407_v28 = vpop.f32.mrb[188].mxu0  ;;  %v1999_v29 = vpack.c.bf16 %v1974_v26, %v1971_v14  ;;  %3696 = vmatpush3.bf16.msra.mxu0 %v3943_v4 }
 0x393   :  { %v3296_v30 = vpop.f32.mrb[125].mxu1  ;;  %v3408_v31 = vpop.f32.mrb[189].mxu0  ;;  %3697 = vmatprep.subr.bf16.mxu0 %v3944_v5 }
 0x394   :  { %v3297_v32 = vadd.f32 %v3296_v30, %v3295_v27  ;;  %v3409_v35 = vadd.f32 %v3408_v31, %v3407_v28  ;;  %v3298_v36 = vpop.f32.mrb[126].mxu1  ;;  %v3410_v34 = vpop.f32.mrb[190].mxu0  ;;  %3425 = vmatprep.subr.bf16.mxu1 %v1999_v29 }
 0x395   :  { %v3299_v37 = vpop.f32.mrb[127].mxu1  ;;  %v3411_v40 = vpop.f32.mrb[191].mxu0  ;;  %3426 = vmatpush3.bf16.msra.mxu1 %v1991_v60  ;;  %v4540_v60 = vld [vmem:[#allocation2 + $0x24] ss:$8 sps:$4 sm:$0xff]  }
 0x396   :  { %v1979_v33 = vadd.f32 %v3409_v35, %v3297_v32  ;;  %v3300_v38 = vadd.f32 %v3299_v37, %v3298_v36  ;;  %v3412_v39 = vadd.f32 %v3411_v40, %v3410_v34  ;;  %3698 = vmatpush3.bf16.msra.mxu0 %v3944_v5 }
 0x397   :  { %3699 = vmatprep.subr.bf16.mxu0 %v3945_v13 }
 0x398   :  { %v1982_v41 = vadd.f32 %v3412_v39, %v3300_v38 }
 0x39a   :  { %v2000_v47 = vpack.c.bf16 %v1982_v41, %v1979_v33  ;;  %3700 = vmatpush3.bf16.msra.mxu0 %v3945_v13 }
 0x39c   :  { %3427 = vmatprep.subr.bf16.mxu1 %v2000_v47 }
 0x39d   :  { %3428 = vmatpush3.bf16.msra.mxu1 %v1992_v12  ;;  %v4549_v12 = vld [vmem:[#allocation2 + $0x30] ss:$8 sps:$4 sm:$0xff]  }
 0x3a0   :  { %2041 = vmatmul.mubr.bf16.vlgmr.msra.gmra.mrb[128].mxu1 %v4531_v49 }
 0x3a1   :  { %2048 = vmatprep.mubr.bf16.mxu1 %v4534_v56 }
 0x3a8   :  { %2049 = vmatmul.mubr.bf16.gmra.mrb[132].mxu1 %v4537_v59 }
 0x3a9   :  { %2056 = vmatprep.mubr.bf16.mxu1 %v4540_v60 }
 0x3b0   :  { %2057 = vmatmul.mubr.bf16.gmra.mrb[136].mxu1 %v4543_v44 }
 0x3b1   :  { %2064 = vmatprep.mubr.bf16.mxu1 %v4546_v11 }
 0x3b8   :  { %2065 = vmatmul.mubr.bf16.gmra.mrb[140].mxu1 %v4549_v12 }
 0x3b9   :  { %2072 = vmatprep.mubr.bf16.mxu1 %v4552_v51 }
 0x3c0   :  { %2073 = vmatmul.mubr.bf16.gmra.mrb[144].mxu1 %v4555_v52 }
 0x3c1   :  { %2080 = vmatprep.mubr.bf16.mxu1 %v4558_v55 }
 0x3c8   :  { %2081 = vmatmul.mubr.bf16.gmra.mrb[148].mxu1 %v4561_v50 }
 0x3c9   :  { %2088 = vmatprep.mubr.bf16.mxu1 %v4564_v53 }
 0x3d0   :  { %2089 = vmatmul.mubr.bf16.gmra.mrb[152].mxu1 %v4567_v54 }
 0x3d1   :  { %2096 = vmatprep.mubr.bf16.mxu1 %v4570_v57 }
 0x3d8   :  { %2097 = vmatmul.mubr.bf16.gmra.mrb[156].mxu1 %v4573_v58 }
 0x3d9   :  { %2104 = vmatprep.mubr.bf16.mxu1 %v4576_v61 }
 0x3e0   :  { %2105 = vmatmul.mubr.bf16.gmra.mrb[160].mxu1 %v4579_v62 }
 0x3e1   :  { %2112 = vmatprep.mubr.bf16.mxu1 %v4582_v63 }
 0x3e8   :  { %2113 = vmatmul.mubr.bf16.gmra.mrb[164].mxu1 %v4585_v0 }
 0x3e9   :  { %2120 = vmatprep.mubr.bf16.mxu1 %v4588_v2 }
 0x3f0   :  { %2121 = vmatmul.mubr.bf16.gmra.mrb[168].mxu1 %v4591_v3 }
 0x3f1   :  { %2128 = vmatprep.mubr.bf16.mxu1 %v4594_v42 }
 0x3f8   :  { %2129 = vmatmul.mubr.bf16.gmra.mrb[172].mxu1 %v4597_v43 }
 0x3f9   :  { %2136 = vmatprep.mubr.bf16.mxu1 %v4600_v1 }
 0x400   :  { %2137 = vmatmul.mubr.bf16.gmra.mrb[176].mxu1 %v4603_v8 }
 0x401   :  { %2144 = vmatprep.mubr.bf16.mxu1 %v4606_v10 }
 0x408   :  { %2145 = vmatmul.mubr.bf16.gmra.mrb[180].mxu1 %v4609_v17 }
 0x409   :  { %2152 = vmatprep.mubr.bf16.mxu1 %v4612_v20 }
 0x410   :  { %2153 = vmatmul.mubr.bf16.gmra.mrb[184].mxu1 %v4615_v21 }
 0x411   :  { %2160 = vmatprep.mubr.bf16.mxu1 %v4618_v15 }
 0x418   :  { %2161 = vmatmul.mubr.bf16.gmra.mrb[188].mxu1 %v4621_v16 }
 0x419   :  { %2497 = vmatprep.mubr.bf16.mxu1 %v4456_v7 }
 0x473   :  { %v3429_v22 = vpop.f32.mrb[128].mxu1 }
 0x474   :  { %v3430_v24 = vpop.f32.mrb[129].mxu1 }
 0x475   :  { %v3431_v25 = vadd.f32 %v3430_v24, %v3429_v22  ;;  %v3432_v14 = vpop.f32.mrb[130].mxu1 }
 0x476   :  { %v3433_v18 = vpop.f32.mrb[131].mxu1 }
 0x477   :  { %v2043_v19 = vadd.f32 %v3431_v25, %v4628_v23  ;;  %v3434_v26 = vadd.f32 %v3433_v18, %v3432_v14 }
 0x479   :  { %v2046_v27 = vadd.f32 %v3434_v26, %v4628_v23  ;;  %v2169_v28 = vmax.f32 %v2043_v19, 0.0 }
 0x47b   :  { %v2170_v29 = vmax.f32 %v2046_v27, 0.0  ;;  %v3435_v30 = vpop.f32.mrb[132].mxu1 }
 0x47c   :  { %v3436_v31 = vpop.f32.mrb[133].mxu1 }
 0x47d   :  { %v3437_v7 = vadd.f32 %v3436_v31, %v3435_v30  ;;  %v3438_v32 = vpop.f32.mrb[134].mxu1  ;;  %v2201_v35 = vpack.c.bf16 %v2170_v29, %v2169_v28 }
 0x47e   :  { %v3439_v36 = vpop.f32.mrb[135].mxu1 }
 0x47f   :  { %v2051_v34 = vadd.f32 %v3437_v7, %v4628_v23  ;;  %v3440_v37 = vadd.f32 %v3439_v36, %v3438_v32  ;;  %3701 = vmatprep.mubr.bf16.mxu0 %v2201_v35 }
 0x481   :  { %v2054_v40 = vadd.f32 %v3440_v37, %v4628_v23  ;;  %v2171_v33 = vmax.f32 %v2051_v34, 0.0 }
 0x483   :  { %v2172_v38 = vmax.f32 %v2054_v40, 0.0  ;;  %v3441_v39 = vpop.f32.mrb[136].mxu1 }
 0x484   :  { %v3442_v41 = vpop.f32.mrb[137].mxu1 }
 0x485   :  { %v2202_v45 = vpack.c.bf16 %v2172_v38, %v2171_v33  ;;  %v3443_v46 = vadd.f32 %v3442_v41, %v3441_v39  ;;  %v3444_v47 = vpop.f32.mrb[138].mxu1 }
 0x486   :  { %v3445_v48 = vpop.f32.mrb[139].mxu1 }
 0x487   :  { %v2059_v6 = vadd.f32 %v3443_v46, %v4628_v23  ;;  %v3446_v9 = vadd.f32 %v3445_v48, %v3444_v47  ;;  %3702 = vmatmul.mubr.bf16.vlgmr.msra.gmra.mrb[192].mxu0 %v2202_v45 }
 0x489   :  { %v2062_v4 = vadd.f32 %v3446_v9, %v4628_v23  ;;  %v2173_v5 = vmax.f32 %v2059_v6, 0.0 }
 0x48b   :  { %v2174_v13 = vmax.f32 %v2062_v4, 0.0  ;;  %v3447_v22 = vpop.f32.mrb[140].mxu1 }
 0x48c   :  { %v3448_v24 = vpop.f32.mrb[141].mxu1 }
 0x48d   :  { %v3449_v25 = vadd.f32 %v3448_v24, %v3447_v22  ;;  %v3450_v14 = vpop.f32.mrb[142].mxu1  ;;  %v2203_v18 = vpack.c.bf16 %v2174_v13, %v2173_v5 }
 0x48e   :  { %v3451_v19 = vpop.f32.mrb[143].mxu1 }
 0x48f   :  { %v2067_v26 = vadd.f32 %v3449_v25, %v4628_v23  ;;  %v3452_v27 = vadd.f32 %v3451_v19, %v3450_v14  ;;  %3705 = vmatprep.mubr.bf16.mxu0 %v2203_v18 }
 0x491   :  { %v2070_v28 = vadd.f32 %v3452_v27, %v4628_v23  ;;  %v2175_v29 = vmax.f32 %v2067_v26, 0.0 }
 0x493   :  { %v2176_v30 = vmax.f32 %v2070_v28, 0.0  ;;  %v3453_v31 = vpop.f32.mrb[144].mxu1 }
 0x494   :  { %v3454_v7 = vpop.f32.mrb[145].mxu1 }
 0x495   :  { %v3455_v32 = vadd.f32 %v3454_v7, %v3453_v31  ;;  %v3456_v35 = vpop.f32.mrb[146].mxu1  ;;  %v2204_v36 = vpack.c.bf16 %v2176_v30, %v2175_v29 }
 0x496   :  { %v3457_v34 = vpop.f32.mrb[147].mxu1 }
 0x497   :  { %v2075_v37 = vadd.f32 %v3455_v32, %v4628_v23  ;;  %v3458_v40 = vadd.f32 %v3457_v34, %v3456_v35  ;;  %3706 = vmatmul.mubr.bf16.gmra.mrb[196].mxu0 %v2204_v36 }
 0x499   :  { %v2078_v33 = vadd.f32 %v3458_v40, %v4628_v23  ;;  %v2177_v38 = vmax.f32 %v2075_v37, 0.0 }
 0x49b   :  { %v2178_v39 = vmax.f32 %v2078_v33, 0.0  ;;  %v3459_v41 = vpop.f32.mrb[148].mxu1 }
 0x49c   :  { %v3460_v45 = vpop.f32.mrb[149].mxu1 }
 0x49d   :  { %v3461_v46 = vadd.f32 %v3460_v45, %v3459_v41  ;;  %v3462_v47 = vpop.f32.mrb[150].mxu1  ;;  %v2205_v48 = vpack.c.bf16 %v2178_v39, %v2177_v38 }
 0x49e   :  { %v3463_v6 = vpop.f32.mrb[151].mxu1 }
 0x49f   :  { %v2083_v9 = vadd.f32 %v3461_v46, %v4628_v23  ;;  %v3464_v4 = vadd.f32 %v3463_v6, %v3462_v47  ;;  %3709 = vmatprep.mubr.bf16.mxu0 %v2205_v48 }
 0x4a1   :  { %v2086_v5 = vadd.f32 %v3464_v4, %v4628_v23  ;;  %v2179_v13 = vmax.f32 %v2083_v9, 0.0 }
 0x4a3   :  { %v2180_v22 = vmax.f32 %v2086_v5, 0.0  ;;  %v3465_v24 = vpop.f32.mrb[152].mxu1 }
 0x4a4   :  { %v3466_v25 = vpop.f32.mrb[153].mxu1 }
 0x4a5   :  { %v3467_v14 = vadd.f32 %v3466_v25, %v3465_v24  ;;  %v3468_v18 = vpop.f32.mrb[154].mxu1  ;;  %v2206_v19 = vpack.c.bf16 %v2180_v22, %v2179_v13 }
 0x4a6   :  { %v3469_v26 = vpop.f32.mrb[155].mxu1 }
 0x4a7   :  { %v2091_v27 = vadd.f32 %v3467_v14, %v4628_v23  ;;  %v3470_v28 = vadd.f32 %v3469_v26, %v3468_v18  ;;  %3710 = vmatmul.mubr.bf16.gmra.mrb[200].mxu0 %v2206_v19 }
 0x4a9   :  { %v2094_v29 = vadd.f32 %v3470_v28, %v4628_v23  ;;  %v2181_v30 = vmax.f32 %v2091_v27, 0.0 }
 0x4ab   :  { %v2182_v31 = vmax.f32 %v2094_v29, 0.0  ;;  %v3471_v7 = vpop.f32.mrb[156].mxu1 }
 0x4ac   :  { %v3472_v32 = vpop.f32.mrb[157].mxu1 }
 0x4ad   :  { %v3473_v35 = vadd.f32 %v3472_v32, %v3471_v7  ;;  %v3474_v36 = vpop.f32.mrb[158].mxu1  ;;  %v2207_v34 = vpack.c.bf16 %v2182_v31, %v2181_v30 }
 0x4ae   :  { %v3475_v37 = vpop.f32.mrb[159].mxu1 }
 0x4af   :  { %v2099_v40 = vadd.f32 %v3473_v35, %v4628_v23  ;;  %v3476_v33 = vadd.f32 %v3475_v37, %v3474_v36  ;;  %3713 = vmatprep.mubr.bf16.mxu0 %v2207_v34 }
 0x4b1   :  { %v2102_v38 = vadd.f32 %v3476_v33, %v4628_v23  ;;  %v2183_v39 = vmax.f32 %v2099_v40, 0.0 }
 0x4b3   :  { %v2184_v41 = vmax.f32 %v2102_v38, 0.0  ;;  %v3477_v45 = vpop.f32.mrb[160].mxu1 }
 0x4b4   :  { %v3478_v46 = vpop.f32.mrb[161].mxu1 }
 0x4b5   :  { %v3479_v47 = vadd.f32 %v3478_v46, %v3477_v45  ;;  %v3480_v48 = vpop.f32.mrb[162].mxu1  ;;  %v2208_v6 = vpack.c.bf16 %v2184_v41, %v2183_v39 }
 0x4b6   :  { %v3481_v9 = vpop.f32.mrb[163].mxu1 }
 0x4b7   :  { %v2107_v4 = vadd.f32 %v3479_v47, %v4628_v23  ;;  %v3482_v5 = vadd.f32 %v3481_v9, %v3480_v48  ;;  %3714 = vmatmul.mubr.bf16.gmra.mrb[204].mxu0 %v2208_v6 }
 0x4b9   :  { %v2110_v13 = vadd.f32 %v3482_v5, %v4628_v23  ;;  %v2185_v22 = vmax.f32 %v2107_v4, 0.0 }
 0x4bb   :  { %v2186_v24 = vmax.f32 %v2110_v13, 0.0  ;;  %v3483_v25 = vpop.f32.mrb[164].mxu1 }
 0x4bc   :  { %v3484_v14 = vpop.f32.mrb[165].mxu1 }
 0x4bd   :  { %v3485_v18 = vadd.f32 %v3484_v14, %v3483_v25  ;;  %v3486_v19 = vpop.f32.mrb[166].mxu1  ;;  %v2209_v26 = vpack.c.bf16 %v2186_v24, %v2185_v22 }
 0x4be   :  { %v3487_v27 = vpop.f32.mrb[167].mxu1 }
 0x4bf   :  { %v2115_v28 = vadd.f32 %v3485_v18, %v4628_v23  ;;  %v3488_v29 = vadd.f32 %v3487_v27, %v3486_v19  ;;  %3717 = vmatprep.mubr.bf16.mxu0 %v2209_v26 }
 0x4c1   :  { %v2118_v30 = vadd.f32 %v3488_v29, %v4628_v23  ;;  %v2187_v31 = vmax.f32 %v2115_v28, 0.0 }
 0x4c3   :  { %v2188_v7 = vmax.f32 %v2118_v30, 0.0  ;;  %v3489_v32 = vpop.f32.mrb[168].mxu1 }
 0x4c4   :  { %v3490_v35 = vpop.f32.mrb[169].mxu1 }
 0x4c5   :  { %v2210_v36 = vpack.c.bf16 %v2188_v7, %v2187_v31  ;;  %v3491_v34 = vadd.f32 %v3490_v35, %v3489_v32  ;;  %v3492_v37 = vpop.f32.mrb[170].mxu1 }
 0x4c6   :  { %v3493_v40 = vpop.f32.mrb[171].mxu1 }
 0x4c7   :  { %3718 = vmatmul.mubr.bf16.gmra.mrb[208].mxu0 %v2210_v36  ;;  %v2123_v33 = vadd.f32 %v3491_v34, %v4628_v23  ;;  %v3494_v38 = vadd.f32 %v3493_v40, %v3492_v37 }
 0x4c9   :  { %v2126_v39 = vadd.f32 %v3494_v38, %v4628_v23  ;;  %v2189_v41 = vmax.f32 %v2123_v33, 0.0 }
 0x4cb   :  { %v2190_v45 = vmax.f32 %v2126_v39, 0.0  ;;  %v3495_v46 = vpop.f32.mrb[172].mxu1 }
 0x4cc   :  { %v3496_v47 = vpop.f32.mrb[173].mxu1 }
 0x4cd   :  { %v3497_v48 = vadd.f32 %v3496_v47, %v3495_v46  ;;  %v3498_v6 = vpop.f32.mrb[174].mxu1  ;;  %v2211_v9 = vpack.c.bf16 %v2190_v45, %v2189_v41 }
 0x4ce   :  { %v3499_v4 = vpop.f32.mrb[175].mxu1 }
 0x4cf   :  { %v2131_v5 = vadd.f32 %v3497_v48, %v4628_v23  ;;  %v3500_v13 = vadd.f32 %v3499_v4, %v3498_v6  ;;  %3721 = vmatprep.mubr.bf16.mxu0 %v2211_v9 }
 0x4d1   :  { %v2134_v22 = vadd.f32 %v3500_v13, %v4628_v23  ;;  %v2191_v24 = vmax.f32 %v2131_v5, 0.0 }
 0x4d3   :  { %v2192_v25 = vmax.f32 %v2134_v22, 0.0  ;;  %v3501_v14 = vpop.f32.mrb[176].mxu1 }
 0x4d4   :  { %v3502_v18 = vpop.f32.mrb[177].mxu1 }
 0x4d5   :  { %v2212_v19 = vpack.c.bf16 %v2192_v25, %v2191_v24  ;;  %v3503_v26 = vadd.f32 %v3502_v18, %v3501_v14  ;;  %v3504_v27 = vpop.f32.mrb[178].mxu1 }
 0x4d6   :  { %v3505_v28 = vpop.f32.mrb[179].mxu1 }
 0x4d7   :  { %3722 = vmatmul.mubr.bf16.gmra.mrb[212].mxu0 %v2212_v19  ;;  %v2139_v29 = vadd.f32 %v3503_v26, %v4628_v23  ;;  %v3506_v30 = vadd.f32 %v3505_v28, %v3504_v27 }
 0x4d9   :  { %v2142_v31 = vadd.f32 %v3506_v30, %v4628_v23  ;;  %v2193_v7 = vmax.f32 %v2139_v29, 0.0 }
 0x4db   :  { %v2194_v32 = vmax.f32 %v2142_v31, 0.0  ;;  %v3507_v35 = vpop.f32.mrb[180].mxu1 }
 0x4dc   :  { %v3508_v36 = vpop.f32.mrb[181].mxu1 }
 0x4dd   :  { %v3509_v34 = vadd.f32 %v3508_v36, %v3507_v35  ;;  %v3510_v37 = vpop.f32.mrb[182].mxu1  ;;  %v2213_v40 = vpack.c.bf16 %v2194_v32, %v2193_v7 }
 0x4de   :  { %v3511_v33 = vpop.f32.mrb[183].mxu1 }
 0x4df   :  { %v2147_v38 = vadd.f32 %v3509_v34, %v4628_v23  ;;  %v3512_v39 = vadd.f32 %v3511_v33, %v3510_v37  ;;  %3725 = vmatprep.mubr.bf16.mxu0 %v2213_v40 }
 0x4e1   :  { %v2150_v41 = vadd.f32 %v3512_v39, %v4628_v23  ;;  %v2195_v45 = vmax.f32 %v2147_v38, 0.0 }
 0x4e3   :  { %v2196_v46 = vmax.f32 %v2150_v41, 0.0  ;;  %v3513_v47 = vpop.f32.mrb[184].mxu1 }
 0x4e4   :  { %v3514_v48 = vpop.f32.mrb[185].mxu1 }
 0x4e5   :  { %v2214_v6 = vpack.c.bf16 %v2196_v46, %v2195_v45  ;;  %v3515_v9 = vadd.f32 %v3514_v48, %v3513_v47  ;;  %v3516_v4 = vpop.f32.mrb[186].mxu1 }
 0x4e6   :  { %v3517_v5 = vpop.f32.mrb[187].mxu1 }
 0x4e7   :  { %3726 = vmatmul.mubr.bf16.gmra.mrb[216].mxu0 %v2214_v6  ;;  %v2155_v13 = vadd.f32 %v3515_v9, %v4628_v23  ;;  %v3518_v22 = vadd.f32 %v3517_v5, %v3516_v4 }
 0x4e9   :  { %v2158_v24 = vadd.f32 %v3518_v22, %v4628_v23  ;;  %v2197_v25 = vmax.f32 %v2155_v13, 0.0 }
 0x4eb   :  { %v2198_v14 = vmax.f32 %v2158_v24, 0.0  ;;  %v3519_v18 = vpop.f32.mrb[188].mxu1 }
 0x4ec   :  { %v3520_v19 = vpop.f32.mrb[189].mxu1 }
 0x4ed   :  { %v3521_v26 = vadd.f32 %v3520_v19, %v3519_v18  ;;  %v3522_v27 = vpop.f32.mrb[190].mxu1  ;;  %v2215_v28 = vpack.c.bf16 %v2198_v14, %v2197_v25 }
 0x4ee   :  { %v3523_v29 = vpop.f32.mrb[191].mxu1 }
 0x4ef   :  { %v2163_v30 = vadd.f32 %v3521_v26, %v4628_v23  ;;  %v3524_v31 = vadd.f32 %v3523_v29, %v3522_v27  ;;  %3729 = vmatprep.mubr.bf16.mxu0 %v2215_v28 }
 0x4f1   :  { %v2166_v7 = vadd.f32 %v3524_v31, %v4628_v23  ;;  %v2199_v32 = vmax.f32 %v2163_v30, 0.0 }
 0x4f3   :  { %v2200_v35 = vmax.f32 %v2166_v7, 0.0 }
 0x4f5   :  { %v2216_v36 = vpack.c.bf16 %v2200_v35, %v2199_v32 }
 0x4f7   :  { %3730 = vmatmul.mubr.bf16.gmra.mrb[220].mxu0 %v2216_v36 }
 0x55a   :  { %v3703_v34 = vpop.f32.mrb[192].mxu0 }
 0x55b   :  { %v2315_v37 = vpop.f32.mrb[193].mxu0 }
 0x55c   :  { %v3704_v40 = vpop.f32.mrb[194].mxu0 }
 0x55d   :  { %v2443_v33 = vpack.c.bf16 %v3704_v40, %v3703_v34  ;;  %v2318_v38 = vpop.f32.mrb[195].mxu0 }
 0x55e   :  { %v2442_v39 = vpack.c.bf16 %v2318_v38, %v2315_v37 }
 0x56a   :  { %v3707_v41 = vpop.f32.mrb[196].mxu0 }
 0x56b   :  { %v2331_v45 = vpop.f32.mrb[197].mxu0 }
 0x56c   :  { %v3708_v46 = vpop.f32.mrb[198].mxu0 }
 0x56d   :  { %v2445_v47 = vpack.c.bf16 %v3708_v46, %v3707_v41  ;;  %v2334_v48 = vpop.f32.mrb[199].mxu0 }
 0x56e   :  { %v2444_v6 = vpack.c.bf16 %v2334_v48, %v2331_v45 }
 0x57a   :  { %v3711_v9 = vpop.f32.mrb[200].mxu0 }
 0x57b   :  { %v2347_v4 = vpop.f32.mrb[201].mxu0 }
 0x57c   :  { %v3712_v5 = vpop.f32.mrb[202].mxu0 }
 0x57d   :  { %v2447_v23 = vpack.c.bf16 %v3712_v5, %v3711_v9  ;;  %v2350_v13 = vpop.f32.mrb[203].mxu0 }
 0x57e   :  { %v2446_v22 = vpack.c.bf16 %v2350_v13, %v2347_v4 }
 0x58a   :  { %v3715_v24 = vpop.f32.mrb[204].mxu0 }
 0x58b   :  { %v2363_v25 = vpop.f32.mrb[205].mxu0 }
 0x58c   :  { %v3716_v14 = vpop.f32.mrb[206].mxu0 }
 0x58d   :  { %v2449_v18 = vpack.c.bf16 %v3716_v14, %v3715_v24  ;;  %v2366_v19 = vpop.f32.mrb[207].mxu0 }
 0x58e   :  { %v2448_v26 = vpack.c.bf16 %v2366_v19, %v2363_v25  ;;  %v3947_v25 = vld [vmem:[#allocation10 + $0x8] sm:$0xff]  }
 0x59a   :  { %v3719_v27 = vpop.f32.mrb[208].mxu0 }
 0x59b   :  { %v2379_v28 = vpop.f32.mrb[209].mxu0 }
 0x59c   :  { %v3720_v29 = vpop.f32.mrb[210].mxu0 }
 0x59d   :  { %v2451_v30 = vpack.c.bf16 %v3720_v29, %v3719_v27  ;;  %v2382_v31 = vpop.f32.mrb[211].mxu0 }
 0x59e   :  { %v2450_v7 = vpack.c.bf16 %v2382_v31, %v2379_v28 }
 0x5a0   :  { %3549 = vmatprep.subr.bf16.mxu1 %v2450_v7 }
 0x5a1   :  { %3550 = vmatpush3.bf16.msra.mxu1 %v2442_v39 }
 0x5a2   :  { %3551 = vmatprep.subr.bf16.mxu1 %v2451_v30 }
 0x5a5   :  { %3552 = vmatpush3.bf16.msra.mxu1 %v2443_v33 }
 0x5aa   :  { %v3723_v32 = vpop.f32.mrb[212].mxu0 }
 0x5ab   :  { %v2395_v35 = vpop.f32.mrb[213].mxu0 }
 0x5ac   :  { %v3724_v36 = vpop.f32.mrb[214].mxu0 }
 0x5ad   :  { %v2453_v34 = vpack.c.bf16 %v3724_v36, %v3723_v32  ;;  %v2398_v37 = vpop.f32.mrb[215].mxu0 }
 0x5ae   :  { %v2452_v40 = vpack.c.bf16 %v2398_v37, %v2395_v35 }
 0x5b0   :  { %3553 = vmatprep.subr.bf16.mxu1 %v2452_v40 }
 0x5b1   :  { %3554 = vmatpush3.bf16.msra.mxu1 %v2444_v6  ;;  %v3946_v6 = vld [vmem:[#allocation10] sm:$0xff]  }
 0x5b2   :  { %3555 = vmatprep.subr.bf16.mxu1 %v2453_v34  ;;  %3733 = vmatprep.subr.bf16.mxu0 %v3946_v6 }
 0x5b3   :  { %3734 = vmatpush3.bf16.msra.mxu0 %v3946_v6 }
 0x5b4   :  { %3735 = vmatprep.subr.bf16.mxu0 %v3947_v25 }
 0x5b5   :  { %3556 = vmatpush3.bf16.msra.mxu1 %v2445_v47  ;;  %v3948_v47 = vld [vmem:[#allocation10 + $0x10] sm:$0xff]  }
 0x5b7   :  { %3736 = vmatpush3.bf16.msra.mxu0 %v3947_v25 }
 0x5b8   :  { %3737 = vmatprep.subr.bf16.mxu0 %v3948_v47 }
 0x5ba   :  { %v3727_v38 = vpop.f32.mrb[216].mxu0 }
 0x5bb   :  { %v2411_v41 = vpop.f32.mrb[217].mxu0  ;;  %3738 = vmatpush3.bf16.msra.mxu0 %v3948_v47 }
 0x5bc   :  { %v3728_v45 = vpop.f32.mrb[218].mxu0 }
 0x5bd   :  { %v2455_v46 = vpack.c.bf16 %v3728_v45, %v3727_v38  ;;  %v2414_v48 = vpop.f32.mrb[219].mxu0 }
 0x5be   :  { %v2454_v9 = vpack.c.bf16 %v2414_v48, %v2411_v41 }
 0x5c0   :  { %3557 = vmatprep.subr.bf16.mxu1 %v2454_v9 }
 0x5c1   :  { %3558 = vmatpush3.bf16.msra.mxu1 %v2446_v22 }
 0x5c2   :  { %3559 = vmatprep.subr.bf16.mxu1 %v2455_v46 }
 0x5c5   :  { %3560 = vmatpush3.bf16.msra.mxu1 %v2447_v23  ;;  %v3949_v23 = vld [vmem:[#allocation10 + $0x18] sm:$0xff]  }
 0x5c6   :  { %3739 = vmatprep.subr.bf16.mxu0 %v3949_v23 }
 0x5c7   :  { %3740 = vmatpush3.bf16.msra.mxu0 %v3949_v23 }
 0x5ca   :  { %v3731_v33 = vpop.f32.mrb[220].mxu0 }
 0x5cb   :  { %v2427_v39 = vpop.f32.mrb[221].mxu0 }
 0x5cc   :  { %v3732_v4 = vpop.f32.mrb[222].mxu0 }
 0x5cd   :  { %v2457_v5 = vpack.c.bf16 %v3732_v4, %v3731_v33  ;;  %v2430_v13 = vpop.f32.mrb[223].mxu0 }
 0x5ce   :  { %v2456_v24 = vpack.c.bf16 %v2430_v13, %v2427_v39 }
 0x5d0   :  { %3561 = vmatprep.subr.bf16.mxu1 %v2456_v24 }
 0x5d1   :  { %3562 = vmatpush3.bf16.msra.mxu1 %v2448_v26 }
 0x5d2   :  { %3563 = vmatprep.subr.bf16.mxu1 %v2457_v5 }
 0x5d5   :  { %3564 = vmatpush3.bf16.msra.mxu1 %v2449_v18 }
 0x5d8   :  { %2498 = vmatmul.mubr.bf16.vlgmr.msra.gmra.mrb[192].mxu1 %v4531_v49  ;;  %v3950_v49 = vld [vmem:[#allocation10 + $0x20] sm:$0xff]  }
 0x5d9   :  { %2505 = vmatprep.mubr.bf16.mxu1 %v4534_v56  ;;  %3741 = vmatprep.subr.bf16.mxu0 %v3950_v49  ;;  %v3951_v56 = vld [vmem:[#allocation10 + $0x28] sm:$0xff]  }
 0x5da   :  { %3742 = vmatpush3.bf16.msra.mxu0 %v3950_v49 }
 0x5db   :  { %3743 = vmatprep.subr.bf16.mxu0 %v3951_v56 }
 0x5de   :  { %3744 = vmatpush3.bf16.msra.mxu0 %v3951_v56 }
 0x5e0   :  { %2506 = vmatmul.mubr.bf16.gmra.mrb[196].mxu1 %v4537_v59  ;;  %v3952_v59 = vld [vmem:[#allocation10 + $0x30] sm:$0xff]  }
 0x5e1   :  { %2513 = vmatprep.mubr.bf16.mxu1 %v4540_v60  ;;  %3745 = vmatprep.subr.bf16.mxu0 %v3952_v59  ;;  %v3953_v60 = vld [vmem:[#allocation10 + $0x38] sm:$0xff]  }
 0x5e2   :  { %3746 = vmatpush3.bf16.msra.mxu0 %v3952_v59 }
 0x5e3   :  { %3747 = vmatprep.subr.bf16.mxu0 %v3953_v60 }
 0x5e6   :  { %3748 = vmatpush3.bf16.msra.mxu0 %v3953_v60 }
 0x5e8   :  { %2514 = vmatmul.mubr.bf16.gmra.mrb[200].mxu1 %v4543_v44 }
 0x5e9   :  { %2521 = vmatprep.mubr.bf16.mxu1 %v4546_v11  ;;  %v4696_v11 = vld [vmem:[%s4870_s7] ss:$0 sm:$0xff] }
 0x5f0   :  { %2522 = vmatmul.mubr.bf16.gmra.mrb[204].mxu1 %v4549_v12 }
 0x5f1   :  { %2529 = vmatprep.mubr.bf16.mxu1 %v4552_v51 }
 0x5f8   :  { %2530 = vmatmul.mubr.bf16.gmra.mrb[208].mxu1 %v4555_v52 }
 0x5f9   :  { %2537 = vmatprep.mubr.bf16.mxu1 %v4558_v55 }
 0x600   :  { %2538 = vmatmul.mubr.bf16.gmra.mrb[212].mxu1 %v4561_v50 }
 0x601   :  { %2545 = vmatprep.mubr.bf16.mxu1 %v4564_v53 }
 0x608   :  { %2546 = vmatmul.mubr.bf16.gmra.mrb[216].mxu1 %v4567_v54 }
 0x609   :  { %2553 = vmatprep.mubr.bf16.mxu1 %v4570_v57 }
 0x610   :  { %2554 = vmatmul.mubr.bf16.gmra.mrb[220].mxu1 %v4573_v58 }
 0x611   :  { %2561 = vmatprep.mubr.bf16.mxu1 %v4576_v61 }
 0x618   :  { %2562 = vmatmul.mubr.bf16.gmra.mrb[224].mxu1 %v4579_v62 }
 0x619   :  { %2569 = vmatprep.mubr.bf16.mxu1 %v4582_v63 }
 0x620   :  { %2570 = vmatmul.mubr.bf16.gmra.mrb[228].mxu1 %v4585_v0 }
 0x621   :  { %2577 = vmatprep.mubr.bf16.mxu1 %v4588_v2 }
 0x628   :  { %2578 = vmatmul.mubr.bf16.gmra.mrb[232].mxu1 %v4591_v3 }
 0x629   :  { %2585 = vmatprep.mubr.bf16.mxu1 %v4594_v42 }
 0x630   :  { %2586 = vmatmul.mubr.bf16.gmra.mrb[236].mxu1 %v4597_v43 }
 0x631   :  { %2593 = vmatprep.mubr.bf16.mxu1 %v4600_v1 }
 0x638   :  { %2594 = vmatmul.mubr.bf16.gmra.mrb[240].mxu1 %v4603_v8 }
 0x639   :  { %2601 = vmatprep.mubr.bf16.mxu1 %v4606_v10 }
 0x640   :  { %2602 = vmatmul.mubr.bf16.gmra.mrb[244].mxu1 %v4609_v17 }
 0x641   :  { %2609 = vmatprep.mubr.bf16.mxu1 %v4612_v20 }
 0x648   :  { %2610 = vmatmul.mubr.bf16.gmra.mrb[248].mxu1 %v4615_v21 }
 0x649   :  { %2617 = vmatprep.mubr.bf16.mxu1 %v4618_v15 }
 0x650   :  { %2618 = vmatmul.mubr.bf16.gmra.mrb[252].mxu1 %v4621_v16 }
 0x6ab   :  { %v3565_v44 = vpop.f32.mrb[192].mxu1 }
 0x6ac   :  { %v3566_v12 = vpop.f32.mrb[193].mxu1 }
 0x6ad   :  { %v3567_v51 = vadd.f32 %v3566_v12, %v3565_v44  ;;  %v3568_v52 = vpop.f32.mrb[194].mxu1 }
 0x6ae   :  { %v3569_v55 = vpop.f32.mrb[195].mxu1 }
 0x6af   :  { %v2500_v50 = vadd.f32 %v3567_v51, %v4696_v11  ;;  %v3570_v53 = vadd.f32 %v3569_v55, %v3568_v52 }
 0x6b1   :  { %v2503_v54 = vadd.f32 %v3570_v53, %v4696_v11  ;;  %v2626_v57 = vmax.f32 %v2500_v50, 0.0 }
 0x6b3   :  { %v2627_v58 = vmax.f32 %v2503_v54, 0.0  ;;  %v3571_v61 = vpop.f32.mrb[196].mxu1 }
 0x6b4   :  { %v3572_v62 = vpop.f32.mrb[197].mxu1 }
 0x6b5   :  { %v3573_v63 = vadd.f32 %v3572_v62, %v3571_v61  ;;  %v3574_v0 = vpop.f32.mrb[198].mxu1  ;;  %v2658_v2 = vpack.c.bf16 %v2627_v58, %v2626_v57 }
 0x6b6   :  { %v3575_v3 = vpop.f32.mrb[199].mxu1 }
 0x6b7   :  { %v2508_v42 = vadd.f32 %v3573_v63, %v4696_v11  ;;  %v3576_v43 = vadd.f32 %v3575_v3, %v3574_v0  ;;  %3749 = vmatprep.mubr.bf16.mxu0 %v2658_v2 }
 0x6b9   :  { %v2511_v1 = vadd.f32 %v3576_v43, %v4696_v11  ;;  %v2628_v8 = vmax.f32 %v2508_v42, 0.0 }
 0x6bb   :  { %v2629_v10 = vmax.f32 %v2511_v1, 0.0  ;;  %v3577_v17 = vpop.f32.mrb[200].mxu1 }
 0x6bc   :  { %v3578_v20 = vpop.f32.mrb[201].mxu1 }
 0x6bd   :  { %v2659_v21 = vpack.c.bf16 %v2629_v10, %v2628_v8  ;;  %v3579_v15 = vadd.f32 %v3578_v20, %v3577_v17  ;;  %v3580_v16 = vpop.f32.mrb[202].mxu1 }
 0x6be   :  { %v3581_v22 = vpop.f32.mrb[203].mxu1 }
 0x6bf   :  { %v2516_v14 = vadd.f32 %v3579_v15, %v4696_v11  ;;  %3750 = vmatmul.mubr.bf16.vlgmr.msra.gmra.mrb[224].mxu0 %v2659_v21  ;;  %v3582_v18 = vadd.f32 %v3581_v22, %v3580_v16 }
 0x6c1   :  { %v2519_v19 = vadd.f32 %v3582_v18, %v4696_v11  ;;  %v2630_v26 = vmax.f32 %v2516_v14, 0.0 }
 0x6c3   :  { %v2631_v27 = vmax.f32 %v2519_v19, 0.0  ;;  %v3583_v28 = vpop.f32.mrb[204].mxu1 }
 0x6c4   :  { %v3584_v29 = vpop.f32.mrb[205].mxu1 }
 0x6c5   :  { %v3585_v30 = vadd.f32 %v3584_v29, %v3583_v28  ;;  %v3586_v31 = vpop.f32.mrb[206].mxu1  ;;  %v2660_v7 = vpack.c.bf16 %v2631_v27, %v2630_v26 }
 0x6c6   :  { %v3587_v32 = vpop.f32.mrb[207].mxu1 }
 0x6c7   :  { %v2524_v35 = vadd.f32 %v3585_v30, %v4696_v11  ;;  %v3588_v36 = vadd.f32 %v3587_v32, %v3586_v31  ;;  %3753 = vmatprep.mubr.bf16.mxu0 %v2660_v7 }
 0x6c9   :  { %v2527_v34 = vadd.f32 %v3588_v36, %v4696_v11  ;;  %v2632_v37 = vmax.f32 %v2524_v35, 0.0 }
 0x6cb   :  { %v2633_v40 = vmax.f32 %v2527_v34, 0.0  ;;  %v3589_v38 = vpop.f32.mrb[208].mxu1 }
 0x6cc   :  { %v3590_v41 = vpop.f32.mrb[209].mxu1 }
 0x6cd   :  { %v3591_v45 = vadd.f32 %v3590_v41, %v3589_v38  ;;  %v2661_v46 = vpack.c.bf16 %v2633_v40, %v2632_v37  ;;  %v3592_v48 = vpop.f32.mrb[210].mxu1 }
 0x6ce   :  { %v3593_v9 = vpop.f32.mrb[211].mxu1 }
 0x6cf   :  { %v2532_v33 = vadd.f32 %v3591_v45, %v4696_v11  ;;  %3754 = vmatmul.mubr.bf16.gmra.mrb[228].mxu0 %v2661_v46  ;;  %v3594_v39 = vadd.f32 %v3593_v9, %v3592_v48 }
 0x6d1   :  { %v2535_v4 = vadd.f32 %v3594_v39, %v4696_v11  ;;  %v2634_v5 = vmax.f32 %v2532_v33, 0.0 }
 0x6d3   :  { %v2635_v13 = vmax.f32 %v2535_v4, 0.0  ;;  %v3595_v24 = vpop.f32.mrb[212].mxu1 }
 0x6d4   :  { %v3596_v6 = vpop.f32.mrb[213].mxu1 }
 0x6d5   :  { %v3597_v25 = vadd.f32 %v3596_v6, %v3595_v24  ;;  %v3598_v47 = vpop.f32.mrb[214].mxu1  ;;  %v2662_v23 = vpack.c.bf16 %v2635_v13, %v2634_v5 }
 0x6d6   :  { %v3599_v49 = vpop.f32.mrb[215].mxu1 }
 0x6d7   :  { %v2540_v56 = vadd.f32 %v3597_v25, %v4696_v11  ;;  %v3600_v59 = vadd.f32 %v3599_v49, %v3598_v47  ;;  %3757 = vmatprep.mubr.bf16.mxu0 %v2662_v23 }
 0x6d9   :  { %v2543_v60 = vadd.f32 %v3600_v59, %v4696_v11  ;;  %v2636_v44 = vmax.f32 %v2540_v56, 0.0 }
 0x6db   :  { %v2637_v12 = vmax.f32 %v2543_v60, 0.0  ;;  %v3601_v51 = vpop.f32.mrb[216].mxu1 }
 0x6dc   :  { %v3602_v52 = vpop.f32.mrb[217].mxu1 }
 0x6dd   :  { %v3603_v55 = vadd.f32 %v3602_v52, %v3601_v51  ;;  %v2663_v50 = vpack.c.bf16 %v2637_v12, %v2636_v44  ;;  %v3604_v53 = vpop.f32.mrb[218].mxu1 }
 0x6de   :  { %v3605_v54 = vpop.f32.mrb[219].mxu1 }
 0x6df   :  { %v2548_v57 = vadd.f32 %v3603_v55, %v4696_v11  ;;  %3758 = vmatmul.mubr.bf16.gmra.mrb[232].mxu0 %v2663_v50  ;;  %v3606_v58 = vadd.f32 %v3605_v54, %v3604_v53 }
 0x6e1   :  { %v2551_v61 = vadd.f32 %v3606_v58, %v4696_v11  ;;  %v2638_v62 = vmax.f32 %v2548_v57, 0.0 }
 0x6e3   :  { %v2639_v63 = vmax.f32 %v2551_v61, 0.0  ;;  %v3607_v0 = vpop.f32.mrb[220].mxu1 }
 0x6e4   :  { %v3608_v2 = vpop.f32.mrb[221].mxu1 }
 0x6e5   :  { %v3609_v3 = vadd.f32 %v3608_v2, %v3607_v0  ;;  %v3610_v42 = vpop.f32.mrb[222].mxu1  ;;  %v2664_v43 = vpack.c.bf16 %v2639_v63, %v2638_v62 }
 0x6e6   :  { %v3611_v1 = vpop.f32.mrb[223].mxu1 }
 0x6e7   :  { %v2556_v8 = vadd.f32 %v3609_v3, %v4696_v11  ;;  %v3612_v10 = vadd.f32 %v3611_v1, %v3610_v42  ;;  %3761 = vmatprep.mubr.bf16.mxu0 %v2664_v43 }
 0x6e9   :  { %v2559_v17 = vadd.f32 %v3612_v10, %v4696_v11  ;;  %v2640_v20 = vmax.f32 %v2556_v8, 0.0 }
 0x6eb   :  { %v2641_v21 = vmax.f32 %v2559_v17, 0.0  ;;  %v3613_v15 = vpop.f32.mrb[224].mxu1 }
 0x6ec   :  { %v3614_v16 = vpop.f32.mrb[225].mxu1 }
 0x6ed   :  { %v3615_v22 = vadd.f32 %v3614_v16, %v3613_v15  ;;  %v2665_v14 = vpack.c.bf16 %v2641_v21, %v2640_v20  ;;  %v3616_v18 = vpop.f32.mrb[226].mxu1 }
 0x6ee   :  { %v3617_v19 = vpop.f32.mrb[227].mxu1 }
 0x6ef   :  { %v2564_v26 = vadd.f32 %v3615_v22, %v4696_v11  ;;  %3762 = vmatmul.mubr.bf16.gmra.mrb[236].mxu0 %v2665_v14  ;;  %v3618_v27 = vadd.f32 %v3617_v19, %v3616_v18 }
 0x6f1   :  { %v2567_v28 = vadd.f32 %v3618_v27, %v4696_v11  ;;  %v2642_v29 = vmax.f32 %v2564_v26, 0.0 }
 0x6f3   :  { %v2643_v30 = vmax.f32 %v2567_v28, 0.0  ;;  %v3619_v31 = vpop.f32.mrb[228].mxu1 }
 0x6f4   :  { %v3620_v7 = vpop.f32.mrb[229].mxu1 }
 0x6f5   :  { %v3621_v32 = vadd.f32 %v3620_v7, %v3619_v31  ;;  %v3622_v35 = vpop.f32.mrb[230].mxu1  ;;  %v2666_v36 = vpack.c.bf16 %v2643_v30, %v2642_v29 }
 0x6f6   :  { %v3623_v34 = vpop.f32.mrb[231].mxu1 }
 0x6f7   :  { %v2572_v37 = vadd.f32 %v3621_v32, %v4696_v11  ;;  %v3624_v40 = vadd.f32 %v3623_v34, %v3622_v35  ;;  %3765 = vmatprep.mubr.bf16.mxu0 %v2666_v36 }
 0x6f9   :  { %v2575_v38 = vadd.f32 %v3624_v40, %v4696_v11  ;;  %v2644_v41 = vmax.f32 %v2572_v37, 0.0 }
 0x6fb   :  { %v2645_v45 = vmax.f32 %v2575_v38, 0.0  ;;  %v3625_v46 = vpop.f32.mrb[232].mxu1 }
 0x6fc   :  { %v3626_v48 = vpop.f32.mrb[233].mxu1 }
 0x6fd   :  { %v3627_v9 = vadd.f32 %v3626_v48, %v3625_v46  ;;  %v2667_v33 = vpack.c.bf16 %v2645_v45, %v2644_v41  ;;  %v3628_v39 = vpop.f32.mrb[234].mxu1 }
 0x6fe   :  { %v3629_v4 = vpop.f32.mrb[235].mxu1 }
 0x6ff   :  { %v2580_v5 = vadd.f32 %v3627_v9, %v4696_v11  ;;  %3766 = vmatmul.mubr.bf16.gmra.mrb[240].mxu0 %v2667_v33  ;;  %v3630_v13 = vadd.f32 %v3629_v4, %v3628_v39  ;;  %v4733_v39 = vld [vmem:[%s4872_s9] ss:$0 sm:$0xff] }
 0x701   :  { %v2583_v24 = vadd.f32 %v3630_v13, %v4696_v11  ;;  %v2646_v6 = vmax.f32 %v2580_v5, 0.0 }
 0x703   :  { %v2647_v25 = vmax.f32 %v2583_v24, 0.0  ;;  %v3631_v47 = vpop.f32.mrb[236].mxu1 }
 0x704   :  { %v3632_v23 = vpop.f32.mrb[237].mxu1 }
 0x705   :  { %v3633_v49 = vadd.f32 %v3632_v23, %v3631_v47  ;;  %v3634_v56 = vpop.f32.mrb[238].mxu1  ;;  %v2668_v59 = vpack.c.bf16 %v2647_v25, %v2646_v6 }
 0x706   :  { %v3635_v60 = vpop.f32.mrb[239].mxu1 }
 0x707   :  { %v2588_v44 = vadd.f32 %v3633_v49, %v4696_v11  ;;  %v3636_v12 = vadd.f32 %v3635_v60, %v3634_v56  ;;  %3769 = vmatprep.mubr.bf16.mxu0 %v2668_v59 }
 0x709   :  { %v2591_v51 = vadd.f32 %v3636_v12, %v4696_v11  ;;  %v2648_v52 = vmax.f32 %v2588_v44, 0.0 }
 0x70b   :  { %v2649_v55 = vmax.f32 %v2591_v51, 0.0  ;;  %v3637_v50 = vpop.f32.mrb[240].mxu1 }
 0x70c   :  { %v3638_v53 = vpop.f32.mrb[241].mxu1 }
 0x70d   :  { %v3639_v54 = vadd.f32 %v3638_v53, %v3637_v50  ;;  %v2669_v57 = vpack.c.bf16 %v2649_v55, %v2648_v52  ;;  %v3640_v58 = vpop.f32.mrb[242].mxu1 }
 0x70e   :  { %v3641_v61 = vpop.f32.mrb[243].mxu1 }
 0x70f   :  { %v2596_v62 = vadd.f32 %v3639_v54, %v4696_v11  ;;  %3770 = vmatmul.mubr.bf16.gmra.mrb[244].mxu0 %v2669_v57  ;;  %v3642_v63 = vadd.f32 %v3641_v61, %v3640_v58 }
 0x711   :  { %v2599_v0 = vadd.f32 %v3642_v63, %v4696_v11  ;;  %v2650_v2 = vmax.f32 %v2596_v62, 0.0 }
 0x713   :  { %v2651_v3 = vmax.f32 %v2599_v0, 0.0  ;;  %v3643_v42 = vpop.f32.mrb[244].mxu1 }
 0x714   :  { %v3644_v43 = vpop.f32.mrb[245].mxu1 }
 0x715   :  { %v3645_v1 = vadd.f32 %v3644_v43, %v3643_v42  ;;  %v3646_v8 = vpop.f32.mrb[246].mxu1  ;;  %v2670_v10 = vpack.c.bf16 %v2651_v3, %v2650_v2 }
 0x716   :  { %v3647_v17 = vpop.f32.mrb[247].mxu1 }
 0x717   :  { %v2604_v20 = vadd.f32 %v3645_v1, %v4696_v11  ;;  %v3648_v21 = vadd.f32 %v3647_v17, %v3646_v8  ;;  %3773 = vmatprep.mubr.bf16.mxu0 %v2670_v10 }
 0x719   :  { %v2607_v15 = vadd.f32 %v3648_v21, %v4696_v11  ;;  %v2652_v16 = vmax.f32 %v2604_v20, 0.0 }
 0x71b   :  { %v2653_v22 = vmax.f32 %v2607_v15, 0.0  ;;  %v3649_v14 = vpop.f32.mrb[248].mxu1 }
 0x71c   :  { %v3650_v18 = vpop.f32.mrb[249].mxu1 }
 0x71d   :  { %v3651_v19 = vadd.f32 %v3650_v18, %v3649_v14  ;;  %v2671_v26 = vpack.c.bf16 %v2653_v22, %v2652_v16  ;;  %v3652_v27 = vpop.f32.mrb[250].mxu1 }
 0x71e   :  { %v3653_v28 = vpop.f32.mrb[251].mxu1 }
 0x71f   :  { %v2612_v29 = vadd.f32 %v3651_v19, %v4696_v11  ;;  %3774 = vmatmul.mubr.bf16.gmra.mrb[248].mxu0 %v2671_v26  ;;  %v3654_v30 = vadd.f32 %v3653_v28, %v3652_v27 }
 0x721   :  { %v2615_v31 = vadd.f32 %v3654_v30, %v4696_v11  ;;  %v2654_v7 = vmax.f32 %v2612_v29, 0.0 }
 0x723   :  { %v2655_v32 = vmax.f32 %v2615_v31, 0.0  ;;  %v3655_v35 = vpop.f32.mrb[252].mxu1 }
 0x724   :  { %v3656_v36 = vpop.f32.mrb[253].mxu1 }
 0x725   :  { %v3657_v34 = vadd.f32 %v3656_v36, %v3655_v35  ;;  %v3658_v37 = vpop.f32.mrb[254].mxu1  ;;  %v2672_v40 = vpack.c.bf16 %v2655_v32, %v2654_v7 }
 0x726   :  { %v3659_v38 = vpop.f32.mrb[255].mxu1 }
 0x727   :  { %v2620_v41 = vadd.f32 %v3657_v34, %v4696_v11  ;;  %v3660_v45 = vadd.f32 %v3659_v38, %v3658_v37  ;;  %3777 = vmatprep.mubr.bf16.mxu0 %v2672_v40 }
 0x729   :  { %v2623_v46 = vadd.f32 %v3660_v45, %v4696_v11  ;;  %v2656_v48 = vmax.f32 %v2620_v41, 0.0 }
 0x72b   :  { %v2657_v9 = vmax.f32 %v2623_v46, 0.0 }
 0x72d   :  { %v2673_v33 = vpack.c.bf16 %v2657_v9, %v2656_v48 }
 0x72f   :  { %3778 = vmatmul.mubr.bf16.gmra.mrb[252].mxu0 %v2673_v33 }
 0x792   :  { %v3751_v4 = vpop.f32.mrb[224].mxu0 }
 0x793   :  { %v2788_v5 = vadd.f32 %v3751_v4, %v4733_v39  ;;  %v2779_v13 = vpop.f32.mrb[225].mxu0 }
 0x794   :  { %v2780_v24 = vadd.f32 %v4733_v39, %v2779_v13  ;;  %v3752_v6 = vpop.f32.mrb[226].mxu0 }
 0x795   :  { %2908 = vst [vmem:[%s4873_s10 + $0x10] sm:$0xff] %v2788_v5  ;;  %v2791_v11 = vadd.f32 %v3752_v6, %v4733_v39  ;;  %v2782_v25 = vpop.f32.mrb[227].mxu0 }
 0x796   :  { %2906 = vst [vmem:[%s4873_s10] sm:$0xff] %v2780_v24  ;;  %v2783_v47 = vadd.f32 %v4733_v39, %v2782_v25 }
 0x797   :  { %2909 = vst [vmem:[%s4873_s10 + $0x18] sm:$0xff] %v2791_v11 }
 0x798   :  { %2907 = vst [vmem:[%s4873_s10 + $0x8] sm:$0xff] %v2783_v47 }
 0x7a2   :  { %v3755_v23 = vpop.f32.mrb[228].mxu0 }
 0x7a3   :  { %v2804_v49 = vadd.f32 %v3755_v23, %v4733_v39  ;;  %v2795_v56 = vpop.f32.mrb[229].mxu0 }
 0x7a4   :  { %v2796_v59 = vadd.f32 %v4733_v39, %v2795_v56  ;;  %v3756_v60 = vpop.f32.mrb[230].mxu0 }
 0x7a5   :  { %2912 = vst [vmem:[%s4873_s10 + $0x30] sm:$0xff] %v2804_v49  ;;  %v2807_v44 = vadd.f32 %v3756_v60, %v4733_v39  ;;  %v2798_v12 = vpop.f32.mrb[231].mxu0 }
 0x7a6   :  { %2910 = vst [vmem:[%s4873_s10 + $0x20] sm:$0xff] %v2796_v59  ;;  %v2799_v51 = vadd.f32 %v4733_v39, %v2798_v12 }
 0x7a7   :  { %2913 = vst [vmem:[%s4873_s10 + $0x38] sm:$0xff] %v2807_v44 }
 0x7a8   :  { %2911 = vst [vmem:[%s4873_s10 + $0x28] sm:$0xff] %v2799_v51 }
 0x7b2   :  { %v3759_v52 = vpop.f32.mrb[232].mxu0 }
 0x7b3   :  { %v2820_v55 = vadd.f32 %v3759_v52, %v4733_v39  ;;  %v2811_v50 = vpop.f32.mrb[233].mxu0 }
 0x7b4   :  { %v2812_v53 = vadd.f32 %v4733_v39, %v2811_v50  ;;  %v3760_v54 = vpop.f32.mrb[234].mxu0 }
 0x7b5   :  { %2916 = vst [vmem:[%s4873_s10 + $0x50] sm:$0xff] %v2820_v55  ;;  %v2823_v57 = vadd.f32 %v3760_v54, %v4733_v39  ;;  %v2814_v58 = vpop.f32.mrb[235].mxu0 }
 0x7b6   :  { %2914 = vst [vmem:[%s4873_s10 + $0x40] sm:$0xff] %v2812_v53  ;;  %v2815_v61 = vadd.f32 %v4733_v39, %v2814_v58 }
 0x7b7   :  { %2917 = vst [vmem:[%s4873_s10 + $0x58] sm:$0xff] %v2823_v57 }
 0x7b8   :  { %2915 = vst [vmem:[%s4873_s10 + $0x48] sm:$0xff] %v2815_v61 }
 0x7c2   :  { %v3763_v62 = vpop.f32.mrb[236].mxu0 }
 0x7c3   :  { %v2836_v63 = vadd.f32 %v3763_v62, %v4733_v39  ;;  %v2827_v0 = vpop.f32.mrb[237].mxu0 }
 0x7c4   :  { %v2828_v2 = vadd.f32 %v4733_v39, %v2827_v0  ;;  %v3764_v3 = vpop.f32.mrb[238].mxu0 }
 0x7c5   :  { %2920 = vst [vmem:[%s4873_s10 + $0x70] sm:$0xff] %v2836_v63  ;;  %v2839_v42 = vadd.f32 %v3764_v3, %v4733_v39  ;;  %v2830_v43 = vpop.f32.mrb[239].mxu0 }
 0x7c6   :  { %2918 = vst [vmem:[%s4873_s10 + $0x60] sm:$0xff] %v2828_v2  ;;  %v2831_v1 = vadd.f32 %v4733_v39, %v2830_v43 }
 0x7c7   :  { %2921 = vst [vmem:[%s4873_s10 + $0x78] sm:$0xff] %v2839_v42 }
 0x7c8   :  { %2919 = vst [vmem:[%s4873_s10 + $0x68] sm:$0xff] %v2831_v1 }
 0x7d2   :  { %v3767_v8 = vpop.f32.mrb[240].mxu0 }
 0x7d3   :  { %v2852_v10 = vadd.f32 %v3767_v8, %v4733_v39  ;;  %v2843_v17 = vpop.f32.mrb[241].mxu0 }
 0x7d4   :  { %v2844_v20 = vadd.f32 %v4733_v39, %v2843_v17  ;;  %v3768_v21 = vpop.f32.mrb[242].mxu0 }
 0x7d5   :  { %2924 = vst [vmem:[%s4873_s10 + $0x90] sm:$0xff] %v2852_v10  ;;  %v2855_v15 = vadd.f32 %v3768_v21, %v4733_v39  ;;  %v2846_v16 = vpop.f32.mrb[243].mxu0 }
 0x7d6   :  { %2922 = vst [vmem:[%s4873_s10 + $0x80] sm:$0xff] %v2844_v20  ;;  %v2847_v22 = vadd.f32 %v4733_v39, %v2846_v16 }
 0x7d7   :  { %2925 = vst [vmem:[%s4873_s10 + $0x98] sm:$0xff] %v2855_v15 }
 0x7d8   :  { %2923 = vst [vmem:[%s4873_s10 + $0x88] sm:$0xff] %v2847_v22 }
 0x7e2   :  { %v3771_v14 = vpop.f32.mrb[244].mxu0 }
 0x7e3   :  { %v2868_v18 = vadd.f32 %v3771_v14, %v4733_v39  ;;  %v2859_v19 = vpop.f32.mrb[245].mxu0 }
 0x7e4   :  { %v2860_v26 = vadd.f32 %v4733_v39, %v2859_v19  ;;  %v3772_v27 = vpop.f32.mrb[246].mxu0 }
 0x7e5   :  { %2928 = vst [vmem:[%s4873_s10 + $0xb0] sm:$0xff] %v2868_v18  ;;  %v2871_v28 = vadd.f32 %v3772_v27, %v4733_v39  ;;  %v2862_v29 = vpop.f32.mrb[247].mxu0 }
 0x7e6   :  { %2926 = vst [vmem:[%s4873_s10 + $0xa0] sm:$0xff] %v2860_v26  ;;  %v2863_v30 = vadd.f32 %v4733_v39, %v2862_v29 }
 0x7e7   :  { %2929 = vst [vmem:[%s4873_s10 + $0xb8] sm:$0xff] %v2871_v28 }
 0x7e8   :  { %2927 = vst [vmem:[%s4873_s10 + $0xa8] sm:$0xff] %v2863_v30 }
 0x7f2   :  { %v3775_v31 = vpop.f32.mrb[248].mxu0 }
 0x7f3   :  { %v2884_v7 = vadd.f32 %v3775_v31, %v4733_v39  ;;  %v2875_v32 = vpop.f32.mrb[249].mxu0 }
 0x7f4   :  { %v2876_v35 = vadd.f32 %v4733_v39, %v2875_v32  ;;  %v3776_v36 = vpop.f32.mrb[250].mxu0 }
 0x7f5   :  { %2932 = vst [vmem:[%s4873_s10 + $0xd0] sm:$0xff] %v2884_v7  ;;  %v2887_v34 = vadd.f32 %v3776_v36, %v4733_v39  ;;  %v2878_v37 = vpop.f32.mrb[251].mxu0 }
 0x7f6   :  { %2930 = vst [vmem:[%s4873_s10 + $0xc0] sm:$0xff] %v2876_v35  ;;  %v2879_v40 = vadd.f32 %v4733_v39, %v2878_v37 }
 0x7f7   :  { %2933 = vst [vmem:[%s4873_s10 + $0xd8] sm:$0xff] %v2887_v34 }
 0x7f8   :  { %2931 = vst [vmem:[%s4873_s10 + $0xc8] sm:$0xff] %v2879_v40 }
 0x802   :  { %v3779_v38 = vpop.f32.mrb[252].mxu0 }
 0x803   :  { %v2900_v41 = vadd.f32 %v3779_v38, %v4733_v39  ;;  %v2891_v45 = vpop.f32.mrb[253].mxu0 }
 0x804   :  { %v2892_v46 = vadd.f32 %v4733_v39, %v2891_v45  ;;  %v3780_v48 = vpop.f32.mrb[254].mxu0 }
 0x805   :  { %2936 = vst [vmem:[%s4873_s10 + $0xf0] sm:$0xff] %v2900_v41  ;;  %v2903_v9 = vadd.f32 %v3780_v48, %v4733_v39  ;;  %v2894_v33 = vpop.f32.mrb[255].mxu0 }
 0x806   :  { %2934 = vst [vmem:[%s4873_s10 + $0xe0] sm:$0xff] %v2892_v46  ;;  %v2895_v4 = vadd.f32 %v4733_v39, %v2894_v33 }
 0x807   :  { %2937 = vst [vmem:[%s4873_s10 + $0xf8] sm:$0xff] %v2903_v9 }
 0x808   :  { %2935 = vst [vmem:[%s4873_s10 + $0xe8] sm:$0xff] %v2895_v4 }
 0x809   :  { %2942 = vsyncpa [#allocation3], 1 }
 0x80a   :  { %2943 = vsyncpa [#allocation5], 1 }
 0x80b   :  { %2944 = vsyncpa [#allocation8], 1 }
 0x80c   :  { %2945 = vsyncpa [#allocation11], 1 }

</bundles_post_ra>
